<compile_context>
chip_gen: v7x
topology: tpu7x:2x2x1
jax: 0.10.0
libtpu: 0.0.40
codegen_flags: <defaults>
</compile_context>

<pallas_src>
import functools

import jax
import jax.numpy as jnp
from jax.experimental import pallas as pl
from jax.experimental.pallas import tpu as pltpu

LN_EPS = 1e-5


# ----------------------------------------------------------------------------
# Pallas kernel: full encoder stack, one (batch tile, layer) per grid step.
# ----------------------------------------------------------------------------
def _encoder_stack_kernel(x_ref, negb_ref, d1_ref, d2_ref, jmat_ref,
                          wq_ref, wk_ref, wv_ref, wo_ref, w1_ref, w2_ref,
                          bq_ref, bk_ref, bv_ref, bo_ref, b1_ref, b2_ref,
                          g1_ref, be1_ref, g2_ref, be2_ref,
                          o_ref, h_ref,
                          *, num_heads, head_dim, batch_block, seq_len):
    l = pl.program_id(1)
    num_layers = pl.num_programs(1)
    Bb, S, H, hd = batch_block, seq_len, num_heads, head_dim
    D = x_ref.shape[-1]

    # layer 0: load the (Bb, S, D) input tile into the resident activation.
    @pl.when(l == 0)
    def _():
        h_ref[...] = x_ref[...].reshape(Bb * S, D)

    x = h_ref[...]                                     # (Bb*S, D) f32
    xb = x.astype(jnp.bfloat16)

    # ---- attention: fused QKV projections (bf16 operands, f32 accum) ------
    q = jnp.dot(xb, wq_ref[0], preferred_element_type=jnp.float32) + bq_ref[0]
    k = jnp.dot(xb, wk_ref[0], preferred_element_type=jnp.float32) + bk_ref[0]
    v = jnp.dot(xb, wv_ref[0], preferred_element_type=jnp.float32) + bv_ref[0]

    # per-position block-diag-2x2 rotation on q/k, all heads at once:
    #   rot(q)[:, j] = d1[:, j]*q[:, j] + d2[:, j]*q[:, j^1];  q @ J swaps pairs.
    d1, d2, jmat = d1_ref[...], d2_ref[...], jmat_ref[...]
    q = d1 * q + d2 * jnp.dot(q, jmat, preferred_element_type=jnp.float32)
    k = d1 * k + d2 * jnp.dot(k, jmat, preferred_element_type=jnp.float32)
    q = q * (1.0 / (hd ** 0.5))

    negb = negb_ref[...]                               # (Bb, 1, S): 0 / -1e9 key mask

    # scores / softmax / context are inherently per-head contractions (must not
    # mix heads); batch them over the Bb batch rows and collect the contexts
    # for a single fused output projection.
    ctx_heads = []
    for h in range(H):                                 # static, small
        sl = slice(h * hd, (h + 1) * hd)
        qh = q[:, sl].reshape(Bb, S, hd).astype(jnp.bfloat16)
        kh = k[:, sl].reshape(Bb, S, hd).astype(jnp.bfloat16)
        vh = v[:, sl].reshape(Bb, S, hd).astype(jnp.bfloat16)
        s_h = jnp.einsum("bqd,bkd->bqk", qh, kh,
                         preferred_element_type=jnp.float32) + negb   # f32
        m = jnp.max(s_h, axis=-1, keepdims=True)
        e = jnp.exp(s_h - m)
        p = e * pl.reciprocal(jnp.sum(e, axis=-1, keepdims=True), approx=True)
        ctx = jnp.einsum("bqk,bkd->bqd", p.astype(jnp.bfloat16), vh,
                         preferred_element_type=jnp.float32)
        ctx_heads.append(ctx.reshape(Bb * S, hd))
    ctx_all = jnp.concatenate(ctx_heads, axis=-1)      # (Bb*S, H*hd)

    attn = jnp.dot(ctx_all.astype(jnp.bfloat16), wo_ref[0],
                   preferred_element_type=jnp.float32) + bo_ref[0]

    # ---- residual + LayerNorm 1 (f32) -------------------------------------
    h1 = x + attn
    mu1 = jnp.mean(h1, axis=-1, keepdims=True)
    var1 = jnp.mean(jnp.square(h1 - mu1), axis=-1, keepdims=True)
    y1 = (h1 - mu1) * jax.lax.rsqrt(var1 + LN_EPS) * g1_ref[0] + be1_ref[0]

    # ---- feed-forward (GELU), bf16 matmul operands -------------------------
    f = jnp.dot(y1.astype(jnp.bfloat16), w1_ref[0],
                preferred_element_type=jnp.float32) + b1_ref[0]
    f = jax.nn.gelu(f, approximate=True)
    f = jnp.dot(f.astype(jnp.bfloat16), w2_ref[0],
                preferred_element_type=jnp.float32) + b2_ref[0]

    # ---- residual + LayerNorm 2 (f32) --------------------------------------
    h2 = y1 + f
    mu2 = jnp.mean(h2, axis=-1, keepdims=True)
    var2 = jnp.mean(jnp.square(h2 - mu2), axis=-1, keepdims=True)
    y2 = (h2 - mu2) * jax.lax.rsqrt(var2 + LN_EPS) * g2_ref[0] + be2_ref[0]

    h_ref[...] = y2                                    # resident for next layer

    # final layer: write back only position 0 of every batch row
    # (TermEncoder.forward returns dense_features[:, 0]).
    @pl.when(l == num_layers - 1)
    def _():
        rows = [y2[b * S:b * S + 1, :] for b in range(Bb)]
        o_ref[...] = jnp.concatenate(rows, axis=0)


# ----------------------------------------------------------------------------
# TermEncoder.forward wrapper
# ----------------------------------------------------------------------------
def term_encoder_forward(dense_features, padding_mask, reference_mask,
                         reference_ids, reference_storage, rotator,
                         layer_params, *, num_heads, head_dim, batch_block=None):
    B, S, D = dense_features.shape
    H, hd = num_heads, head_dim
    Hhd = H * hd
    L = len(layer_params)
    Bb = B if batch_block is None else batch_block
    assert B % Bb == 0

    # dense_features[reference_mask] = reference_storage[reference_ids]
    # (boolean-mask assignment in row-major order) -- data-dependent scatter,
    # done in plain JAX outside the kernel.
    R = reference_ids.shape[0]
    flat_mask = reference_mask.reshape(-1)
    gathered = reference_storage[reference_ids]
    pos = jnp.cumsum(flat_mask.astype(jnp.int32)) - 1
    repl = gathered[jnp.clip(pos, 0, R - 1)]
    x = jnp.where(flat_mask[:, None], repl,
                  dense_features.reshape(B * S, D)).reshape(B, S, D)
    x = x.astype(jnp.float32)

    # additive key-padding bias (layer-invariant, computed once).
    neg_bias = jnp.where(padding_mask, 0.0, -1e9).astype(jnp.float32).reshape(B, 1, S)

    # decompose the block-diag-2x2 rotator into elementwise factors + pair swap.
    idx = jnp.arange(hd)
    d1 = rotator[:, idx, idx]                           # (S, hd) diagonal
    d2 = rotator[:, idx, idx ^ 1]                       # (S, hd) off-diagonal
    d1 = jnp.tile(jnp.tile(d1, (1, H)), (Bb, 1)).astype(jnp.float32)   # (Bb*S, Hhd)
    d2 = jnp.tile(jnp.tile(d2, (1, H)), (Bb, 1)).astype(jnp.float32)
    perm = jnp.arange(Hhd) ^ 1
    jmat = jnp.eye(Hhd, dtype=jnp.float32)[perm]        # within-pair swap permutation

    # stack per-layer params along a leading L axis; matmul weights -> bf16.
    def stack(name, dtype=jnp.float32):
        return jnp.stack([p[name] for p in layer_params]).astype(dtype)

    WQ, WK, WV = (stack(n, jnp.bfloat16) for n in ("wq", "wk", "wv"))
    WO = stack("wo", jnp.bfloat16)
    W1, W2 = stack("w1", jnp.bfloat16), stack("w2", jnp.bfloat16)
    BQ, BK, BV = stack("bq"), stack("bk"), stack("bv")
    BO, B1, B2 = stack("bo"), stack("b1"), stack("b2")
    G1, BE1, G2, BE2 = stack("g1"), stack("be1"), stack("g2"), stack("be2")
    DF = W1.shape[-1]

    def wspec(e1, e2):
        return pl.BlockSpec((1, e1, e2), lambda b, l: (l, 0, 0))

    in_specs = [
        pl.BlockSpec((Bb, S, D), lambda b, l: (b, 0, 0)),       # x
        pl.BlockSpec((Bb, 1, S), lambda b, l: (b, 0, 0)),       # key-padding bias
        pl.BlockSpec((Bb * S, Hhd), lambda b, l: (0, 0)),       # d1
        pl.BlockSpec((Bb * S, Hhd), lambda b, l: (0, 0)),       # d2
        pl.BlockSpec((Hhd, Hhd), lambda b, l: (0, 0)),          # jmat
        wspec(D, Hhd), wspec(D, Hhd), wspec(D, Hhd),            # WQ WK WV
        wspec(Hhd, D),                                          # WO
        wspec(D, DF), wspec(DF, D),                             # W1 W2
        wspec(1, Hhd), wspec(1, Hhd), wspec(1, Hhd),            # BQ BK BV
        wspec(1, D), wspec(1, DF), wspec(1, D),                 # BO B1 B2
        wspec(1, D), wspec(1, D), wspec(1, D), wspec(1, D),     # G1 BE1 G2 BE2
    ]
    out_spec = pl.BlockSpec((Bb, D), lambda b, l: (b, 0))

    kern = functools.partial(_encoder_stack_kernel,
                             num_heads=H, head_dim=hd,
                             batch_block=Bb, seq_len=S)

    return pl.pallas_call(
        kern,
        grid_spec=pltpu.PrefetchScalarGridSpec(
            num_scalar_prefetch=0,
            grid=(B // Bb, L),
            in_specs=in_specs,
            out_specs=out_spec,
            scratch_shapes=[pltpu.VMEM((Bb * S, D), jnp.float32)],
        ),
        out_shape=jax.ShapeDtypeStruct((B, D), jnp.float32),
        compiler_params=pltpu.CompilerParams(
            dimension_semantics=("parallel", "arbitrary"),
            vmem_limit_bytes=64 * 1024 * 1024),
    )(x, neg_bias, d1, d2, jmat,
      WQ, WK, WV, WO, W1, W2,
      BQ, BK, BV, BO, B1, B2, G1, BE1, G2, BE2)


# ----------------------------------------------------------------------------
# pure-JAX reference (f32, general per-position rotator) for correctness check
# ----------------------------------------------------------------------------
def _layer_norm(x, g, b):
    mu = jnp.mean(x, axis=-1, keepdims=True)
    var = jnp.mean(jnp.square(x - mu), axis=-1, keepdims=True)
    return (x - mu) * jax.lax.rsqrt(var + LN_EPS) * g + b


def reference_forward(dense_features, padding_mask, reference_mask, reference_ids,
                      reference_storage, rotator, layer_params, *, num_heads, head_dim):
    B, S, D = dense_features.shape
    H, hd = num_heads, head_dim
    flat_mask = reference_mask.reshape(-1)
    gathered = reference_storage[reference_ids]
    pos = jnp.cumsum(flat_mask.astype(jnp.int32)) - 1
    repl = gathered[jnp.clip(pos, 0, reference_ids.shape[0] - 1)]
    x = jnp.where(flat_mask[:, None], repl,
                  dense_features.reshape(B * S, D)).reshape(B, S, D)
    neg = jnp.where(padding_mask, 0.0, -1e9)[:, None, None, :]       # (B,1,1,S)
    for p in layer_params:
        q = (x @ p["wq"] + p["bq"]).reshape(B, S, H, hd)
        k = (x @ p["wk"] + p["bk"]).reshape(B, S, H, hd)
        v = (x @ p["wv"] + p["bv"]).reshape(B, S, H, hd)
        q = jnp.einsum("sij,bshj->bshi", rotator, q)
        k = jnp.einsum("sij,bshj->bshi", rotator, k)
        sc = jnp.einsum("bqhd,bkhd->bhqk", q, k) / jnp.sqrt(float(hd)) + neg
        a = jax.nn.softmax(sc, axis=-1)
        ctx = jnp.einsum("bhqk,bkhd->bqhd", a, v).reshape(B, S, H * hd)
        attn = ctx @ p["wo"] + p["bo"]
        y1 = _layer_norm(x + attn, p["g1"], p["be1"])
        f = jax.nn.gelu(y1 @ p["w1"] + p["b1"], approximate=True)
        x = _layer_norm(y1 + (f @ p["w2"] + p["b2"]), p["g2"], p["be2"])
    return x[:, 0]


# ----------------------------------------------------------------------------
# deterministic synthetic parameters / inputs
# ----------------------------------------------------------------------------
def init_params(key, num_layers, num_heads, dim, head_dim, ff_dim):
    HHD = num_heads * head_dim
    params = []
    for layer in range(num_layers):
        ks = jax.random.split(jax.random.fold_in(key, layer), 6)
        s = 0.05
        params.append(dict(
            wq=jax.random.normal(ks[0], (dim, HHD), jnp.float32) * s,
            bq=jnp.zeros((1, HHD), jnp.float32),
            wk=jax.random.normal(ks[1], (dim, HHD), jnp.float32) * s,
            bk=jnp.zeros((1, HHD), jnp.float32),
            wv=jax.random.normal(ks[2], (dim, HHD), jnp.float32) * s,
            bv=jnp.zeros((1, HHD), jnp.float32),
            wo=jax.random.normal(ks[3], (HHD, dim), jnp.float32) * s,
            bo=jnp.zeros((1, dim), jnp.float32),
            g1=jnp.ones((1, dim), jnp.float32),
            be1=jnp.zeros((1, dim), jnp.float32),
            w1=jax.random.normal(ks[4], (dim, ff_dim), jnp.float32) * s,
            b1=jnp.zeros((1, ff_dim), jnp.float32),
            w2=jax.random.normal(ks[5], (ff_dim, dim), jnp.float32) * s,
            b2=jnp.zeros((1, dim), jnp.float32),
            g2=jnp.ones((1, dim), jnp.float32),
            be2=jnp.zeros((1, dim), jnp.float32),
        ))
    return params


def make_rotator(S, hd):
    """Per-position orthogonal rotation matrices (RoPE-style block-diag 2x2)."""
    inv_freq = 1.0 / (10000.0 ** (jnp.arange(0, hd, 2, dtype=jnp.float32) / hd))
    ang = jnp.arange(S, dtype=jnp.float32)[:, None] * inv_freq[None, :]  # (S, hd//2)
    cos, sin = jnp.cos(ang), jnp.sin(ang)
    rot = jnp.zeros((S, hd, hd), jnp.float32)
    for i in range(hd // 2):
        rot = rot.at[:, 2 * i, 2 * i].set(cos[:, i])
        rot = rot.at[:, 2 * i, 2 * i + 1].set(-sin[:, i])
        rot = rot.at[:, 2 * i + 1, 2 * i].set(sin[:, i])
        rot = rot.at[:, 2 * i + 1, 2 * i + 1].set(cos[:, i])
    return rot


if __name__ == "__main__":
    B, S = 2, 8
    num_layers, num_heads, dim, head_dim = 2, 4, 32, 8
    ff_dim = 4 * dim
    dropout_rate = 0.1  # unused (eval-mode forward)

    key = jax.random.PRNGKey(0)
    k_x, k_store, k_par = jax.random.split(key, 3)

    dense_features = jax.random.normal(k_x, (B, S, dim), jnp.float32)
    padding_mask = jnp.array([[1, 1, 1, 1, 1, 1, 0, 0],
                              [1, 1, 1, 1, 1, 1, 1, 1]], dtype=bool)  # True = valid
    reference_mask = (jnp.zeros((B, S), dtype=bool)
                      .at[0, 2].set(True).at[0, 5].set(True).at[1, 3].set(True))
    reference_ids = jnp.array([7, 1, 4], dtype=jnp.int32)        # 3 == mask.sum()
    reference_storage = jax.random.normal(k_store, (10, dim), jnp.float32)
    rotator = make_rotator(S, head_dim)

    params = init_params(k_par, num_layers, num_heads, dim, head_dim, ff_dim)

    out = term_encoder_forward(dense_features, padding_mask, reference_mask,
                               reference_ids, reference_storage, rotator,
                               params, num_heads=num_heads, head_dim=head_dim)
    out = jax.block_until_ready(out)

    assert out.shape == (B, dim), out.shape
    assert bool(jnp.all(jnp.isfinite(out)))

    ref = reference_forward(dense_features, padding_mask, reference_mask,
                            reference_ids, reference_storage, rotator,
                            params, num_heads=num_heads, head_dim=head_dim)
    ref = jax.block_until_ready(ref)
    assert bool(jnp.allclose(out, ref, rtol=1e-1, atol=1e-1)), (out, ref)
    print("KERNEL_OK")
</pallas_src>

<mosaic_0001>
module attributes {stable_mosaic.version = 11 : i64} {
  func.func @_encoder_stack_kernel(%arg0: i32, %arg1: i32, %arg2: memref<2x8x32xf32, #tpu.memory_space<vmem>>, %arg3: memref<2x1x8xf32, #tpu.memory_space<vmem>>, %arg4: memref<16x32xf32, #tpu.memory_space<vmem>>, %arg5: memref<16x32xf32, #tpu.memory_space<vmem>>, %arg6: memref<32x32xf32, #tpu.memory_space<vmem>>, %arg7: memref<1x32x32xbf16, #tpu.memory_space<vmem>>, %arg8: memref<1x32x32xbf16, #tpu.memory_space<vmem>>, %arg9: memref<1x32x32xbf16, #tpu.memory_space<vmem>>, %arg10: memref<1x32x32xbf16, #tpu.memory_space<vmem>>, %arg11: memref<1x32x128xbf16, #tpu.memory_space<vmem>>, %arg12: memref<1x128x32xbf16, #tpu.memory_space<vmem>>, %arg13: memref<1x1x32xf32, #tpu.memory_space<vmem>>, %arg14: memref<1x1x32xf32, #tpu.memory_space<vmem>>, %arg15: memref<1x1x32xf32, #tpu.memory_space<vmem>>, %arg16: memref<1x1x32xf32, #tpu.memory_space<vmem>>, %arg17: memref<1x1x128xf32, #tpu.memory_space<vmem>>, %arg18: memref<1x1x32xf32, #tpu.memory_space<vmem>>, %arg19: memref<1x1x32xf32, #tpu.memory_space<vmem>>, %arg20: memref<1x1x32xf32, #tpu.memory_space<vmem>>, %arg21: memref<1x1x32xf32, #tpu.memory_space<vmem>>, %arg22: memref<1x1x32xf32, #tpu.memory_space<vmem>>, %arg23: memref<2x32xf32, #tpu.memory_space<vmem>>, %arg24: memref<16x32xf32, #tpu.memory_space<vmem>>) attributes {dimension_semantics = [#tpu.dimension_semantics<parallel>, #tpu.dimension_semantics<arbitrary>], iteration_bounds = array<i64: 1, 2>, scalar_prefetch = 0 : i64, scratch_operands = 1 : i64, tpu.core_type = #tpu.core_type<tc>, window_params = [{transform_indices = @transform_0, window_bounds = array<i64: 2, 8, 32>}, {transform_indices = @transform_1, window_bounds = array<i64: 2, 1, 8>}, {pipeline_mode = #tpu.pipeline_mode<synchronous>, transform_indices = @transform_2, window_bounds = array<i64: 16, 32>}, {pipeline_mode = #tpu.pipeline_mode<synchronous>, transform_indices = @transform_3, window_bounds = array<i64: 16, 32>}, {pipeline_mode = #tpu.pipeline_mode<synchronous>, transform_indices = @transform_4, window_bounds = array<i64: 32, 32>}, {transform_indices = @transform_5, window_bounds = array<i64: 1, 32, 32>}, {transform_indices = @transform_6, window_bounds = array<i64: 1, 32, 32>}, {transform_indices = @transform_7, window_bounds = array<i64: 1, 32, 32>}, {transform_indices = @transform_8, window_bounds = array<i64: 1, 32, 32>}, {transform_indices = @transform_9, window_bounds = array<i64: 1, 32, 128>}, {transform_indices = @transform_10, window_bounds = array<i64: 1, 128, 32>}, {transform_indices = @transform_11, window_bounds = array<i64: 1, 1, 32>}, {transform_indices = @transform_12, window_bounds = array<i64: 1, 1, 32>}, {transform_indices = @transform_13, window_bounds = array<i64: 1, 1, 32>}, {transform_indices = @transform_14, window_bounds = array<i64: 1, 1, 32>}, {transform_indices = @transform_15, window_bounds = array<i64: 1, 1, 128>}, {transform_indices = @transform_16, window_bounds = array<i64: 1, 1, 32>}, {transform_indices = @transform_17, window_bounds = array<i64: 1, 1, 32>}, {transform_indices = @transform_18, window_bounds = array<i64: 1, 1, 32>}, {transform_indices = @transform_19, window_bounds = array<i64: 1, 1, 32>}, {transform_indices = @transform_20, window_bounds = array<i64: 1, 1, 32>}, {transform_indices = @transform_21, window_bounds = array<i64: 2, 32>}]} {
    %c0_i32 = arith.constant 0 : i32
    %0 = arith.cmpi eq, %arg1, %c0_i32 : i32
    %1 = arith.extui %0 : i1 to i32
    %c0_i32_0 = arith.constant 0 : i32
    %2 = arith.cmpi ne, %1, %c0_i32_0 : i32
    scf.if %2 {
      %c0_100 = arith.constant 0 : index
      %c0_101 = arith.constant 0 : index
      %c0_102 = arith.constant 0 : index
      %236 = vector.load %arg2[%c0_100, %c0_101, %c0_102] : memref<2x8x32xf32, #tpu.memory_space<vmem>>, vector<2x8x32xf32>
      %237 = vector.shape_cast %236 : vector<2x8x32xf32> to vector<16x32xf32>
      %c0_103 = arith.constant 0 : index
      %c0_104 = arith.constant 0 : index
      %238 = vector.load %arg24[%c0_103, %c0_104] : memref<16x32xf32, #tpu.memory_space<vmem>>, vector<16x32xf32>
      tpu.vector_store %arg24[%c0_103, %c0_104], %237 {strides = array<i32>} : memref<16x32xf32, #tpu.memory_space<vmem>>, vector<16x32xf32>,
    } else {
    }
    %c0 = arith.constant 0 : index
    %c0_1 = arith.constant 0 : index
    %3 = vector.load %arg24[%c0, %c0_1] : memref<16x32xf32, #tpu.memory_space<vmem>>, vector<16x32xf32>
    %4 = arith.truncf %3 : vector<16x32xf32> to vector<16x32xbf16>
    %c0_2 = arith.constant 0 : index
    %c0_3 = arith.constant 0 : index
    %c0_4 = arith.constant 0 : index
    %5 = vector.load %arg7[%c0_2, %c0_3, %c0_4] : memref<1x32x32xbf16, #tpu.memory_space<vmem>>, vector<1x32x32xbf16>
    %6 = vector.shape_cast %5 : vector<1x32x32xbf16> to vector<32x32xbf16>
    %cst = arith.constant dense<0.000000e+00> : vector<16x32xf32>
    %7 = tpu.matmul %4, %6, %cst {dimension_numbers = #tpu.dot_dimension_numbers<[1], [0], [0], [1], [0, 0, 1, 1], [], []>} : vector<16x32xbf16>, vector<32x32xbf16>, vector<16x32xf32> -> vector<16x32xf32>
    %c0_5 = arith.constant 0 : index
    %c0_6 = arith.constant 0 : index
    %c0_7 = arith.constant 0 : index
    %8 = vector.load %arg13[%c0_5, %c0_6, %c0_7] : memref<1x1x32xf32, #tpu.memory_space<vmem>>, vector<1x1x32xf32>
    %9 = vector.shape_cast %8 : vector<1x1x32xf32> to vector<1x32xf32>
    %10 = vector.broadcast %9 : vector<1x32xf32> to vector<16x32xf32>
    %11 = arith.addf %7, %10 : vector<16x32xf32>
    %c0_8 = arith.constant 0 : index
    %c0_9 = arith.constant 0 : index
    %c0_10 = arith.constant 0 : index
    %12 = vector.load %arg8[%c0_8, %c0_9, %c0_10] : memref<1x32x32xbf16, #tpu.memory_space<vmem>>, vector<1x32x32xbf16>
    %13 = vector.shape_cast %12 : vector<1x32x32xbf16> to vector<32x32xbf16>
    %cst_11 = arith.constant dense<0.000000e+00> : vector<16x32xf32>
    %14 = tpu.matmul %4, %13, %cst_11 {dimension_numbers = #tpu.dot_dimension_numbers<[1], [0], [0], [1], [0, 0, 1, 1], [], []>} : vector<16x32xbf16>, vector<32x32xbf16>, vector<16x32xf32> -> vector<16x32xf32>
    %c0_12 = arith.constant 0 : index
    %c0_13 = arith.constant 0 : index
    %c0_14 = arith.constant 0 : index
    %15 = vector.load %arg14[%c0_12, %c0_13, %c0_14] : memref<1x1x32xf32, #tpu.memory_space<vmem>>, vector<1x1x32xf32>
    %16 = vector.shape_cast %15 : vector<1x1x32xf32> to vector<1x32xf32>
    %17 = vector.broadcast %16 : vector<1x32xf32> to vector<16x32xf32>
    %18 = arith.addf %14, %17 : vector<16x32xf32>
    %c0_15 = arith.constant 0 : index
    %c0_16 = arith.constant 0 : index
    %c0_17 = arith.constant 0 : index
    %19 = vector.load %arg9[%c0_15, %c0_16, %c0_17] : memref<1x32x32xbf16, #tpu.memory_space<vmem>>, vector<1x32x32xbf16>
    %20 = vector.shape_cast %19 : vector<1x32x32xbf16> to vector<32x32xbf16>
    %cst_18 = arith.constant dense<0.000000e+00> : vector<16x32xf32>
    %21 = tpu.matmul %4, %20, %cst_18 {dimension_numbers = #tpu.dot_dimension_numbers<[1], [0], [0], [1], [0, 0, 1, 1], [], []>} : vector<16x32xbf16>, vector<32x32xbf16>, vector<16x32xf32> -> vector<16x32xf32>
    %c0_19 = arith.constant 0 : index
    %c0_20 = arith.constant 0 : index
    %c0_21 = arith.constant 0 : index
    %22 = vector.load %arg15[%c0_19, %c0_20, %c0_21] : memref<1x1x32xf32, #tpu.memory_space<vmem>>, vector<1x1x32xf32>
    %23 = vector.shape_cast %22 : vector<1x1x32xf32> to vector<1x32xf32>
    %24 = vector.broadcast %23 : vector<1x32xf32> to vector<16x32xf32>
    %25 = arith.addf %21, %24 : vector<16x32xf32>
    %c0_22 = arith.constant 0 : index
    %c0_23 = arith.constant 0 : index
    %26 = vector.load %arg4[%c0_22, %c0_23] : memref<16x32xf32, #tpu.memory_space<vmem>>, vector<16x32xf32>
    %c0_24 = arith.constant 0 : index
    %c0_25 = arith.constant 0 : index
    %27 = vector.load %arg5[%c0_24, %c0_25] : memref<16x32xf32, #tpu.memory_space<vmem>>, vector<16x32xf32>
    %c0_26 = arith.constant 0 : index
    %c0_27 = arith.constant 0 : index
    %28 = vector.load %arg6[%c0_26, %c0_27] : memref<32x32xf32, #tpu.memory_space<vmem>>, vector<32x32xf32>
    %29 = arith.mulf %26, %11 : vector<16x32xf32>
    %cst_28 = arith.constant dense<0.000000e+00> : vector<16x32xf32>
    %30 = tpu.matmul %11, %28, %cst_28 {dimension_numbers = #tpu.dot_dimension_numbers<[1], [0], [0], [1], [0, 0, 1, 1], [], []>} : vector<16x32xf32>, vector<32x32xf32>, vector<16x32xf32> -> vector<16x32xf32>
    %31 = arith.mulf %27, %30 : vector<16x32xf32>
    %32 = arith.addf %29, %31 : vector<16x32xf32>
    %33 = arith.mulf %26, %18 : vector<16x32xf32>
    %cst_29 = arith.constant dense<0.000000e+00> : vector<16x32xf32>
    %34 = tpu.matmul %18, %28, %cst_29 {dimension_numbers = #tpu.dot_dimension_numbers<[1], [0], [0], [1], [0, 0, 1, 1], [], []>} : vector<16x32xf32>, vector<32x32xf32>, vector<16x32xf32> -> vector<16x32xf32>
    %35 = arith.mulf %27, %34 : vector<16x32xf32>
    %36 = arith.addf %33, %35 : vector<16x32xf32>
    %cst_30 = arith.constant 0.353553385 : f32
    %37 = vector.broadcast %cst_30 : f32 to vector<16x32xf32>
    %38 = arith.mulf %32, %37 : vector<16x32xf32>
    %c0_31 = arith.constant 0 : index
    %c0_32 = arith.constant 0 : index
    %c0_33 = arith.constant 0 : index
    %39 = vector.load %arg3[%c0_31, %c0_32, %c0_33] : memref<2x1x8xf32, #tpu.memory_space<vmem>>, vector<2x1x8xf32>
    %40 = vector.extract_strided_slice %38 {offsets = [0, 0], sizes = [16, 8], strides = [1, 1]} : vector<16x32xf32> to vector<16x8xf32>
    %41 = vector.shape_cast %40 : vector<16x8xf32> to vector<2x8x8xf32>
    %42 = arith.truncf %41 : vector<2x8x8xf32> to vector<2x8x8xbf16>
    %43 = vector.extract_strided_slice %36 {offsets = [0, 0], sizes = [16, 8], strides = [1, 1]} : vector<16x32xf32> to vector<16x8xf32>
    %44 = vector.shape_cast %43 : vector<16x8xf32> to vector<2x8x8xf32>
    %45 = arith.truncf %44 : vector<2x8x8xf32> to vector<2x8x8xbf16>
    %46 = vector.extract_strided_slice %25 {offsets = [0, 0], sizes = [16, 8], strides = [1, 1]} : vector<16x32xf32> to vector<16x8xf32>
    %47 = vector.shape_cast %46 : vector<16x8xf32> to vector<2x8x8xf32>
    %48 = arith.truncf %47 : vector<2x8x8xf32> to vector<2x8x8xbf16>
    "tpu.trace_start"() <{level = 10 : i32, message = "bqd,bkd->bqk"}> : () -> ()
    %cst_34 = arith.constant dense<0.000000e+00> : vector<2x8x8xf32>
    %49 = tpu.matmul %42, %45, %cst_34 {dimension_numbers = #tpu.dot_dimension_numbers<[2], [2], [1], [1], [0, 0, 0, 1, 1, 1], [0], [0]>} : vector<2x8x8xbf16>, vector<2x8x8xbf16>, vector<2x8x8xf32> -> vector<2x8x8xf32>
    "tpu.trace_stop"() : () -> ()
    %50 = vector.broadcast %39 : vector<2x1x8xf32> to vector<2x8x8xf32>
    %51 = arith.addf %49, %50 : vector<2x8x8xf32>
    %cst_35 = arith.constant dense<0xFF800000> : vector<2x8xf32>
    %52 = vector.multi_reduction <maximumf>, %51, %cst_35 [2] : vector<2x8x8xf32> to vector<2x8xf32>
    %53 = vector.shape_cast %52 : vector<2x8xf32> to vector<2x8x1xf32>
    %54 = vector.broadcast %53 : vector<2x8x1xf32> to vector<2x8x8xf32>
    %55 = arith.subf %51, %54 : vector<2x8x8xf32>
    %56 = math.exp %55 : vector<2x8x8xf32>
    %cst_36 = arith.constant dense<0.000000e+00> : vector<2x8xf32>
    %57 = vector.multi_reduction <add>, %56, %cst_36 [2] : vector<2x8x8xf32> to vector<2x8xf32>
    %58 = vector.shape_cast %57 : vector<2x8xf32> to vector<2x8x1xf32>
    %59 = tpu.reciprocal %58 {approx = true} : vector<2x8x1xf32> -> vector<2x8x1xf32>
    %60 = vector.broadcast %59 : vector<2x8x1xf32> to vector<2x8x8xf32>
    %61 = arith.mulf %56, %60 : vector<2x8x8xf32>
    %62 = arith.truncf %61 : vector<2x8x8xf32> to vector<2x8x8xbf16>
    "tpu.trace_start"() <{level = 10 : i32, message = "bqk,bkd->bqd"}> : () -> ()
    %cst_37 = arith.constant dense<0.000000e+00> : vector<2x8x8xf32>
    %63 = tpu.matmul %62, %48, %cst_37 {dimension_numbers = #tpu.dot_dimension_numbers<[2], [1], [1], [2], [0, 0, 0, 1, 1, 2], [0], [0]>} : vector<2x8x8xbf16>, vector<2x8x8xbf16>, vector<2x8x8xf32> -> vector<2x8x8xf32>
    "tpu.trace_stop"() : () -> ()
    %64 = vector.shape_cast %63 : vector<2x8x8xf32> to vector<16x8xf32>
    %65 = vector.extract_strided_slice %38 {offsets = [0, 8], sizes = [16, 8], strides = [1, 1]} : vector<16x32xf32> to vector<16x8xf32>
    %66 = vector.shape_cast %65 : vector<16x8xf32> to vector<2x8x8xf32>
    %67 = arith.truncf %66 : vector<2x8x8xf32> to vector<2x8x8xbf16>
    %68 = vector.extract_strided_slice %36 {offsets = [0, 8], sizes = [16, 8], strides = [1, 1]} : vector<16x32xf32> to vector<16x8xf32>
    %69 = vector.shape_cast %68 : vector<16x8xf32> to vector<2x8x8xf32>
    %70 = arith.truncf %69 : vector<2x8x8xf32> to vector<2x8x8xbf16>
    %71 = vector.extract_strided_slice %25 {offsets = [0, 8], sizes = [16, 8], strides = [1, 1]} : vector<16x32xf32> to vector<16x8xf32>
    %72 = vector.shape_cast %71 : vector<16x8xf32> to vector<2x8x8xf32>
    %73 = arith.truncf %72 : vector<2x8x8xf32> to vector<2x8x8xbf16>
    "tpu.trace_start"() <{level = 10 : i32, message = "bqd,bkd->bqk"}> : () -> ()
    %cst_38 = arith.constant dense<0.000000e+00> : vector<2x8x8xf32>
    %74 = tpu.matmul %67, %70, %cst_38 {dimension_numbers = #tpu.dot_dimension_numbers<[2], [2], [1], [1], [0, 0, 0, 1, 1, 1], [0], [0]>} : vector<2x8x8xbf16>, vector<2x8x8xbf16>, vector<2x8x8xf32> -> vector<2x8x8xf32>
    "tpu.trace_stop"() : () -> ()
    %75 = vector.broadcast %39 : vector<2x1x8xf32> to vector<2x8x8xf32>
    %76 = arith.addf %74, %75 : vector<2x8x8xf32>
    %cst_39 = arith.constant dense<0xFF800000> : vector<2x8xf32>
    %77 = vector.multi_reduction <maximumf>, %76, %cst_39 [2] : vector<2x8x8xf32> to vector<2x8xf32>
    %78 = vector.shape_cast %77 : vector<2x8xf32> to vector<2x8x1xf32>
    %79 = vector.broadcast %78 : vector<2x8x1xf32> to vector<2x8x8xf32>
    %80 = arith.subf %76, %79 : vector<2x8x8xf32>
    %81 = math.exp %80 : vector<2x8x8xf32>
    %cst_40 = arith.constant dense<0.000000e+00> : vector<2x8xf32>
    %82 = vector.multi_reduction <add>, %81, %cst_40 [2] : vector<2x8x8xf32> to vector<2x8xf32>
    %83 = vector.shape_cast %82 : vector<2x8xf32> to vector<2x8x1xf32>
    %84 = tpu.reciprocal %83 {approx = true} : vector<2x8x1xf32> -> vector<2x8x1xf32>
    %85 = vector.broadcast %84 : vector<2x8x1xf32> to vector<2x8x8xf32>
    %86 = arith.mulf %81, %85 : vector<2x8x8xf32>
    %87 = arith.truncf %86 : vector<2x8x8xf32> to vector<2x8x8xbf16>
    "tpu.trace_start"() <{level = 10 : i32, message = "bqk,bkd->bqd"}> : () -> ()
    %cst_41 = arith.constant dense<0.000000e+00> : vector<2x8x8xf32>
    %88 = tpu.matmul %87, %73, %cst_41 {dimension_numbers = #tpu.dot_dimension_numbers<[2], [1], [1], [2], [0, 0, 0, 1, 1, 2], [0], [0]>} : vector<2x8x8xbf16>, vector<2x8x8xbf16>, vector<2x8x8xf32> -> vector<2x8x8xf32>
    "tpu.trace_stop"() : () -> ()
    %89 = vector.shape_cast %88 : vector<2x8x8xf32> to vector<16x8xf32>
    %90 = vector.extract_strided_slice %38 {offsets = [0, 16], sizes = [16, 8], strides = [1, 1]} : vector<16x32xf32> to vector<16x8xf32>
    %91 = vector.shape_cast %90 : vector<16x8xf32> to vector<2x8x8xf32>
    %92 = arith.truncf %91 : vector<2x8x8xf32> to vector<2x8x8xbf16>
    %93 = vector.extract_strided_slice %36 {offsets = [0, 16], sizes = [16, 8], strides = [1, 1]} : vector<16x32xf32> to vector<16x8xf32>
    %94 = vector.shape_cast %93 : vector<16x8xf32> to vector<2x8x8xf32>
    %95 = arith.truncf %94 : vector<2x8x8xf32> to vector<2x8x8xbf16>
    %96 = vector.extract_strided_slice %25 {offsets = [0, 16], sizes = [16, 8], strides = [1, 1]} : vector<16x32xf32> to vector<16x8xf32>
    %97 = vector.shape_cast %96 : vector<16x8xf32> to vector<2x8x8xf32>
    %98 = arith.truncf %97 : vector<2x8x8xf32> to vector<2x8x8xbf16>
    "tpu.trace_start"() <{level = 10 : i32, message = "bqd,bkd->bqk"}> : () -> ()
    %cst_42 = arith.constant dense<0.000000e+00> : vector<2x8x8xf32>
    %99 = tpu.matmul %92, %95, %cst_42 {dimension_numbers = #tpu.dot_dimension_numbers<[2], [2], [1], [1], [0, 0, 0, 1, 1, 1], [0], [0]>} : vector<2x8x8xbf16>, vector<2x8x8xbf16>, vector<2x8x8xf32> -> vector<2x8x8xf32>
    "tpu.trace_stop"() : () -> ()
    %100 = vector.broadcast %39 : vector<2x1x8xf32> to vector<2x8x8xf32>
    %101 = arith.addf %99, %100 : vector<2x8x8xf32>
    %cst_43 = arith.constant dense<0xFF800000> : vector<2x8xf32>
    %102 = vector.multi_reduction <maximumf>, %101, %cst_43 [2] : vector<2x8x8xf32> to vector<2x8xf32>
    %103 = vector.shape_cast %102 : vector<2x8xf32> to vector<2x8x1xf32>
    %104 = vector.broadcast %103 : vector<2x8x1xf32> to vector<2x8x8xf32>
    %105 = arith.subf %101, %104 : vector<2x8x8xf32>
    %106 = math.exp %105 : vector<2x8x8xf32>
    %cst_44 = arith.constant dense<0.000000e+00> : vector<2x8xf32>
    %107 = vector.multi_reduction <add>, %106, %cst_44 [2] : vector<2x8x8xf32> to vector<2x8xf32>
    %108 = vector.shape_cast %107 : vector<2x8xf32> to vector<2x8x1xf32>
    %109 = tpu.reciprocal %108 {approx = true} : vector<2x8x1xf32> -> vector<2x8x1xf32>
    %110 = vector.broadcast %109 : vector<2x8x1xf32> to vector<2x8x8xf32>
    %111 = arith.mulf %106, %110 : vector<2x8x8xf32>
    %112 = arith.truncf %111 : vector<2x8x8xf32> to vector<2x8x8xbf16>
    "tpu.trace_start"() <{level = 10 : i32, message = "bqk,bkd->bqd"}> : () -> ()
    %cst_45 = arith.constant dense<0.000000e+00> : vector<2x8x8xf32>
    %113 = tpu.matmul %112, %98, %cst_45 {dimension_numbers = #tpu.dot_dimension_numbers<[2], [1], [1], [2], [0, 0, 0, 1, 1, 2], [0], [0]>} : vector<2x8x8xbf16>, vector<2x8x8xbf16>, vector<2x8x8xf32> -> vector<2x8x8xf32>
    "tpu.trace_stop"() : () -> ()
    %114 = vector.shape_cast %113 : vector<2x8x8xf32> to vector<16x8xf32>
    %115 = vector.extract_strided_slice %38 {offsets = [0, 24], sizes = [16, 8], strides = [1, 1]} : vector<16x32xf32> to vector<16x8xf32>
    %116 = vector.shape_cast %115 : vector<16x8xf32> to vector<2x8x8xf32>
    %117 = arith.truncf %116 : vector<2x8x8xf32> to vector<2x8x8xbf16>
    %118 = vector.extract_strided_slice %36 {offsets = [0, 24], sizes = [16, 8], strides = [1, 1]} : vector<16x32xf32> to vector<16x8xf32>
    %119 = vector.shape_cast %118 : vector<16x8xf32> to vector<2x8x8xf32>
    %120 = arith.truncf %119 : vector<2x8x8xf32> to vector<2x8x8xbf16>
    %121 = vector.extract_strided_slice %25 {offsets = [0, 24], sizes = [16, 8], strides = [1, 1]} : vector<16x32xf32> to vector<16x8xf32>
    %122 = vector.shape_cast %121 : vector<16x8xf32> to vector<2x8x8xf32>
    %123 = arith.truncf %122 : vector<2x8x8xf32> to vector<2x8x8xbf16>
    "tpu.trace_start"() <{level = 10 : i32, message = "bqd,bkd->bqk"}> : () -> ()
    %cst_46 = arith.constant dense<0.000000e+00> : vector<2x8x8xf32>
    %124 = tpu.matmul %117, %120, %cst_46 {dimension_numbers = #tpu.dot_dimension_numbers<[2], [2], [1], [1], [0, 0, 0, 1, 1, 1], [0], [0]>} : vector<2x8x8xbf16>, vector<2x8x8xbf16>, vector<2x8x8xf32> -> vector<2x8x8xf32>
    "tpu.trace_stop"() : () -> ()
    %125 = vector.broadcast %39 : vector<2x1x8xf32> to vector<2x8x8xf32>
    %126 = arith.addf %124, %125 : vector<2x8x8xf32>
    %cst_47 = arith.constant dense<0xFF800000> : vector<2x8xf32>
    %127 = vector.multi_reduction <maximumf>, %126, %cst_47 [2] : vector<2x8x8xf32> to vector<2x8xf32>
    %128 = vector.shape_cast %127 : vector<2x8xf32> to vector<2x8x1xf32>
    %129 = vector.broadcast %128 : vector<2x8x1xf32> to vector<2x8x8xf32>
    %130 = arith.subf %126, %129 : vector<2x8x8xf32>
    %131 = math.exp %130 : vector<2x8x8xf32>
    %cst_48 = arith.constant dense<0.000000e+00> : vector<2x8xf32>
    %132 = vector.multi_reduction <add>, %131, %cst_48 [2] : vector<2x8x8xf32> to vector<2x8xf32>
    %133 = vector.shape_cast %132 : vector<2x8xf32> to vector<2x8x1xf32>
    %134 = tpu.reciprocal %133 {approx = true} : vector<2x8x1xf32> -> vector<2x8x1xf32>
    %135 = vector.broadcast %134 : vector<2x8x1xf32> to vector<2x8x8xf32>
    %136 = arith.mulf %131, %135 : vector<2x8x8xf32>
    %137 = arith.truncf %136 : vector<2x8x8xf32> to vector<2x8x8xbf16>
    "tpu.trace_start"() <{level = 10 : i32, message = "bqk,bkd->bqd"}> : () -> ()
    %cst_49 = arith.constant dense<0.000000e+00> : vector<2x8x8xf32>
    %138 = tpu.matmul %137, %123, %cst_49 {dimension_numbers = #tpu.dot_dimension_numbers<[2], [1], [1], [2], [0, 0, 0, 1, 1, 2], [0], [0]>} : vector<2x8x8xbf16>, vector<2x8x8xbf16>, vector<2x8x8xf32> -> vector<2x8x8xf32>
    "tpu.trace_stop"() : () -> ()
    %139 = vector.shape_cast %138 : vector<2x8x8xf32> to vector<16x8xf32>
    %140 = tpu.concatenate %64, %89, %114, %139 in 1 : vector<16x8xf32>, vector<16x8xf32>, vector<16x8xf32>, vector<16x8xf32> -> vector<16x32xf32>
    %141 = arith.truncf %140 : vector<16x32xf32> to vector<16x32xbf16>
    %c0_50 = arith.constant 0 : index
    %c0_51 = arith.constant 0 : index
    %c0_52 = arith.constant 0 : index
    %142 = vector.load %arg10[%c0_50, %c0_51, %c0_52] : memref<1x32x32xbf16, #tpu.memory_space<vmem>>, vector<1x32x32xbf16>
    %143 = vector.shape_cast %142 : vector<1x32x32xbf16> to vector<32x32xbf16>
    %cst_53 = arith.constant dense<0.000000e+00> : vector<16x32xf32>
    %144 = tpu.matmul %141, %143, %cst_53 {dimension_numbers = #tpu.dot_dimension_numbers<[1], [0], [0], [1], [0, 0, 1, 1], [], []>} : vector<16x32xbf16>, vector<32x32xbf16>, vector<16x32xf32> -> vector<16x32xf32>
    %c0_54 = arith.constant 0 : index
    %c0_55 = arith.constant 0 : index
    %c0_56 = arith.constant 0 : index
    %145 = vector.load %arg16[%c0_54, %c0_55, %c0_56] : memref<1x1x32xf32, #tpu.memory_space<vmem>>, vector<1x1x32xf32>
    %146 = vector.shape_cast %145 : vector<1x1x32xf32> to vector<1x32xf32>
    %147 = vector.broadcast %146 : vector<1x32xf32> to vector<16x32xf32>
    %148 = arith.addf %144, %147 : vector<16x32xf32>
    %149 = arith.addf %3, %148 : vector<16x32xf32>
    %cst_57 = arith.constant dense<0.000000e+00> : vector<16xf32>
    %150 = vector.multi_reduction <add>, %149, %cst_57 [1] : vector<16x32xf32> to vector<16xf32>
    %151 = vector.shape_cast %150 : vector<16xf32> to vector<16x1xf32>
    %cst_58 = arith.constant 3.200000e+01 : f32
    %152 = vector.broadcast %cst_58 : f32 to vector<16x1xf32>
    %153 = arith.divf %151, %152 : vector<16x1xf32>
    %154 = vector.broadcast %153 : vector<16x1xf32> to vector<16x32xf32>
    %155 = arith.subf %149, %154 : vector<16x32xf32>
    %156 = arith.mulf %155, %155 : vector<16x32xf32>
    %cst_59 = arith.constant dense<0.000000e+00> : vector<16xf32>
    %157 = vector.multi_reduction <add>, %156, %cst_59 [1] : vector<16x32xf32> to vector<16xf32>
    %158 = vector.shape_cast %157 : vector<16xf32> to vector<16x1xf32>
    %cst_60 = arith.constant 3.200000e+01 : f32
    %159 = vector.broadcast %cst_60 : f32 to vector<16x1xf32>
    %160 = arith.divf %158, %159 : vector<16x1xf32>
    %161 = vector.broadcast %153 : vector<16x1xf32> to vector<16x32xf32>
    %162 = arith.subf %149, %161 : vector<16x32xf32>
    %cst_61 = arith.constant 9.99999974E-6 : f32
    %163 = vector.broadcast %cst_61 : f32 to vector<16x1xf32>
    %164 = arith.addf %160, %163 : vector<16x1xf32>
    %165 = math.rsqrt %164 : vector<16x1xf32>
    %166 = vector.broadcast %165 : vector<16x1xf32> to vector<16x32xf32>
    %167 = arith.mulf %162, %166 : vector<16x32xf32>
    %c0_62 = arith.constant 0 : index
    %c0_63 = arith.constant 0 : index
    %c0_64 = arith.constant 0 : index
    %168 = vector.load %arg19[%c0_62, %c0_63, %c0_64] : memref<1x1x32xf32, #tpu.memory_space<vmem>>, vector<1x1x32xf32>
    %169 = vector.shape_cast %168 : vector<1x1x32xf32> to vector<1x32xf32>
    %170 = vector.broadcast %169 : vector<1x32xf32> to vector<16x32xf32>
    %171 = arith.mulf %167, %170 : vector<16x32xf32>
    %c0_65 = arith.constant 0 : index
    %c0_66 = arith.constant 0 : index
    %c0_67 = arith.constant 0 : index
    %172 = vector.load %arg20[%c0_65, %c0_66, %c0_67] : memref<1x1x32xf32, #tpu.memory_space<vmem>>, vector<1x1x32xf32>
    %173 = vector.shape_cast %172 : vector<1x1x32xf32> to vector<1x32xf32>
    %174 = vector.broadcast %173 : vector<1x32xf32> to vector<16x32xf32>
    %175 = arith.addf %171, %174 : vector<16x32xf32>
    %176 = arith.truncf %175 : vector<16x32xf32> to vector<16x32xbf16>
    %c0_68 = arith.constant 0 : index
    %c0_69 = arith.constant 0 : index
    %c0_70 = arith.constant 0 : index
    %177 = vector.load %arg11[%c0_68, %c0_69, %c0_70] : memref<1x32x128xbf16, #tpu.memory_space<vmem>>, vector<1x32x128xbf16>
    %178 = vector.shape_cast %177 : vector<1x32x128xbf16> to vector<32x128xbf16>
    %cst_71 = arith.constant dense<0.000000e+00> : vector<16x128xf32>
    %179 = tpu.matmul %176, %178, %cst_71 {dimension_numbers = #tpu.dot_dimension_numbers<[1], [0], [0], [1], [0, 0, 1, 1], [], []>} : vector<16x32xbf16>, vector<32x128xbf16>, vector<16x128xf32> -> vector<16x128xf32>
    %c0_72 = arith.constant 0 : index
    %c0_73 = arith.constant 0 : index
    %c0_74 = arith.constant 0 : index
    %180 = vector.load %arg17[%c0_72, %c0_73, %c0_74] : memref<1x1x128xf32, #tpu.memory_space<vmem>>, vector<1x1x128xf32>
    %181 = vector.shape_cast %180 : vector<1x1x128xf32> to vector<1x128xf32>
    %182 = vector.broadcast %181 : vector<1x128xf32> to vector<16x128xf32>
    %183 = arith.addf %179, %182 : vector<16x128xf32>
    %184 = arith.mulf %183, %183 : vector<16x128xf32>
    %185 = arith.mulf %183, %184 : vector<16x128xf32>
    %cst_75 = arith.constant 4.471500e-02 : f32
    %186 = vector.broadcast %cst_75 : f32 to vector<16x128xf32>
    %187 = arith.mulf %186, %185 : vector<16x128xf32>
    %188 = arith.addf %183, %187 : vector<16x128xf32>
    %cst_76 = arith.constant 0.797884583 : f32
    %189 = vector.broadcast %cst_76 : f32 to vector<16x128xf32>
    %190 = arith.mulf %189, %188 : vector<16x128xf32>
    %191 = math.tanh %190 : vector<16x128xf32>
    %cst_77 = arith.constant 1.000000e+00 : f32
    %192 = vector.broadcast %cst_77 : f32 to vector<16x128xf32>
    %193 = arith.addf %192, %191 : vector<16x128xf32>
    %cst_78 = arith.constant 5.000000e-01 : f32
    %194 = vector.broadcast %cst_78 : f32 to vector<16x128xf32>
    %195 = arith.mulf %194, %193 : vector<16x128xf32>
    %196 = arith.mulf %183, %195 : vector<16x128xf32>
    %197 = arith.truncf %196 : vector<16x128xf32> to vector<16x128xbf16>
    %c0_79 = arith.constant 0 : index
    %c0_80 = arith.constant 0 : index
    %c0_81 = arith.constant 0 : index
    %198 = vector.load %arg12[%c0_79, %c0_80, %c0_81] : memref<1x128x32xbf16, #tpu.memory_space<vmem>>, vector<1x128x32xbf16>
    %199 = vector.shape_cast %198 : vector<1x128x32xbf16> to vector<128x32xbf16>
    %cst_82 = arith.constant dense<0.000000e+00> : vector<16x32xf32>
    %200 = tpu.matmul %197, %199, %cst_82 {dimension_numbers = #tpu.dot_dimension_numbers<[1], [0], [0], [1], [0, 0, 1, 1], [], []>} : vector<16x128xbf16>, vector<128x32xbf16>, vector<16x32xf32> -> vector<16x32xf32>
    %c0_83 = arith.constant 0 : index
    %c0_84 = arith.constant 0 : index
    %c0_85 = arith.constant 0 : index
    %201 = vector.load %arg18[%c0_83, %c0_84, %c0_85] : memref<1x1x32xf32, #tpu.memory_space<vmem>>, vector<1x1x32xf32>
    %202 = vector.shape_cast %201 : vector<1x1x32xf32> to vector<1x32xf32>
    %203 = vector.broadcast %202 : vector<1x32xf32> to vector<16x32xf32>
    %204 = arith.addf %200, %203 : vector<16x32xf32>
    %205 = arith.addf %175, %204 : vector<16x32xf32>
    %cst_86 = arith.constant dense<0.000000e+00> : vector<16xf32>
    %206 = vector.multi_reduction <add>, %205, %cst_86 [1] : vector<16x32xf32> to vector<16xf32>
    %207 = vector.shape_cast %206 : vector<16xf32> to vector<16x1xf32>
    %cst_87 = arith.constant 3.200000e+01 : f32
    %208 = vector.broadcast %cst_87 : f32 to vector<16x1xf32>
    %209 = arith.divf %207, %208 : vector<16x1xf32>
    %210 = vector.broadcast %209 : vector<16x1xf32> to vector<16x32xf32>
    %211 = arith.subf %205, %210 : vector<16x32xf32>
    %212 = arith.mulf %211, %211 : vector<16x32xf32>
    %cst_88 = arith.constant dense<0.000000e+00> : vector<16xf32>
    %213 = vector.multi_reduction <add>, %212, %cst_88 [1] : vector<16x32xf32> to vector<16xf32>
    %214 = vector.shape_cast %213 : vector<16xf32> to vector<16x1xf32>
    %cst_89 = arith.constant 3.200000e+01 : f32
    %215 = vector.broadcast %cst_89 : f32 to vector<16x1xf32>
    %216 = arith.divf %214, %215 : vector<16x1xf32>
    %217 = vector.broadcast %209 : vector<16x1xf32> to vector<16x32xf32>
    %218 = arith.subf %205, %217 : vector<16x32xf32>
    %cst_90 = arith.constant 9.99999974E-6 : f32
    %219 = vector.broadcast %cst_90 : f32 to vector<16x1xf32>
    %220 = arith.addf %216, %219 : vector<16x1xf32>
    %221 = math.rsqrt %220 : vector<16x1xf32>
    %222 = vector.broadcast %221 : vector<16x1xf32> to vector<16x32xf32>
    %223 = arith.mulf %218, %222 : vector<16x32xf32>
    %c0_91 = arith.constant 0 : index
    %c0_92 = arith.constant 0 : index
    %c0_93 = arith.constant 0 : index
    %224 = vector.load %arg21[%c0_91, %c0_92, %c0_93] : memref<1x1x32xf32, #tpu.memory_space<vmem>>, vector<1x1x32xf32>
    %225 = vector.shape_cast %224 : vector<1x1x32xf32> to vector<1x32xf32>
    %226 = vector.broadcast %225 : vector<1x32xf32> to vector<16x32xf32>
    %227 = arith.mulf %223, %226 : vector<16x32xf32>
    %c0_94 = arith.constant 0 : index
    %c0_95 = arith.constant 0 : index
    %c0_96 = arith.constant 0 : index
    %228 = vector.load %arg22[%c0_94, %c0_95, %c0_96] : memref<1x1x32xf32, #tpu.memory_space<vmem>>, vector<1x1x32xf32>
    %229 = vector.shape_cast %228 : vector<1x1x32xf32> to vector<1x32xf32>
    %230 = vector.broadcast %229 : vector<1x32xf32> to vector<16x32xf32>
    %231 = arith.addf %227, %230 : vector<16x32xf32>
    %c0_97 = arith.constant 0 : index
    %c0_98 = arith.constant 0 : index
    %232 = vector.load %arg24[%c0_97, %c0_98] : memref<16x32xf32, #tpu.memory_space<vmem>>, vector<16x32xf32>
    tpu.vector_store %arg24[%c0_97, %c0_98], %231 {strides = array<i32>} : memref<16x32xf32, #tpu.memory_space<vmem>>, vector<16x32xf32>,
    %c1_i32 = arith.constant 1 : i32
    %233 = arith.cmpi eq, %arg1, %c1_i32 : i32
    %234 = arith.extui %233 : i1 to i32
    %c0_i32_99 = arith.constant 0 : i32
    %235 = arith.cmpi ne, %234, %c0_i32_99 : i32
    scf.if %235 {
      %236 = vector.extract_strided_slice %231 {offsets = [0, 0], sizes = [1, 32], strides = [1, 1]} : vector<16x32xf32> to vector<1x32xf32>
      %237 = vector.extract_strided_slice %231 {offsets = [8, 0], sizes = [1, 32], strides = [1, 1]} : vector<16x32xf32> to vector<1x32xf32>
      %238 = tpu.concatenate %236, %237 in 0 : vector<1x32xf32>, vector<1x32xf32> -> vector<2x32xf32>
      %c0_100 = arith.constant 0 : index
      %c0_101 = arith.constant 0 : index
      %239 = vector.load %arg23[%c0_100, %c0_101] : memref<2x32xf32, #tpu.memory_space<vmem>>, vector<2x32xf32>
      tpu.vector_store %arg23[%c0_100, %c0_101], %238 {strides = array<i32>} : memref<2x32xf32, #tpu.memory_space<vmem>>, vector<2x32xf32>,
    } else {
    }
    return
  }
  func.func @transform_0(%arg0: i32, %arg1: i32) -> (i32, i32, i32) {
    %c0_i32 = arith.constant 0 : i32
    %c0_i32_0 = arith.constant 0 : i32
    %c0_i32_1 = arith.constant 0 : i32
    return %arg0, %c0_i32, %c0_i32_0 : i32, i32, i32
  }
  func.func @transform_1(%arg0: i32, %arg1: i32) -> (i32, i32, i32) {
    %c0_i32 = arith.constant 0 : i32
    %c0_i32_0 = arith.constant 0 : i32
    %c0_i32_1 = arith.constant 0 : i32
    return %arg0, %c0_i32, %c0_i32_0 : i32, i32, i32
  }
  func.func @transform_2(%arg0: i32, %arg1: i32) -> (i32, i32) {
    %c0_i32 = arith.constant 0 : i32
    %c0_i32_0 = arith.constant 0 : i32
    %c0_i32_1 = arith.constant 0 : i32
    return %c0_i32, %c0_i32_0 : i32, i32
  }
  func.func @transform_3(%arg0: i32, %arg1: i32) -> (i32, i32) {
    %c0_i32 = arith.constant 0 : i32
    %c0_i32_0 = arith.constant 0 : i32
    %c0_i32_1 = arith.constant 0 : i32
    return %c0_i32, %c0_i32_0 : i32, i32
  }
  func.func @transform_4(%arg0: i32, %arg1: i32) -> (i32, i32) {
    %c0_i32 = arith.constant 0 : i32
    %c0_i32_0 = arith.constant 0 : i32
    %c0_i32_1 = arith.constant 0 : i32
    return %c0_i32, %c0_i32_0 : i32, i32
  }
  func.func @transform_5(%arg0: i32, %arg1: i32) -> (i32, i32, i32) {
    %c0_i32 = arith.constant 0 : i32
    %c0_i32_0 = arith.constant 0 : i32
    %c0_i32_1 = arith.constant 0 : i32
    return %arg1, %c0_i32, %c0_i32_0 : i32, i32, i32
  }
  func.func @transform_6(%arg0: i32, %arg1: i32) -> (i32, i32, i32) {
    %c0_i32 = arith.constant 0 : i32
    %c0_i32_0 = arith.constant 0 : i32
    %c0_i32_1 = arith.constant 0 : i32
    return %arg1, %c0_i32, %c0_i32_0 : i32, i32, i32
  }
  func.func @transform_7(%arg0: i32, %arg1: i32) -> (i32, i32, i32) {
    %c0_i32 = arith.constant 0 : i32
    %c0_i32_0 = arith.constant 0 : i32
    %c0_i32_1 = arith.constant 0 : i32
    return %arg1, %c0_i32, %c0_i32_0 : i32, i32, i32
  }
  func.func @transform_8(%arg0: i32, %arg1: i32) -> (i32, i32, i32) {
    %c0_i32 = arith.constant 0 : i32
    %c0_i32_0 = arith.constant 0 : i32
    %c0_i32_1 = arith.constant 0 : i32
    return %arg1, %c0_i32, %c0_i32_0 : i32, i32, i32
  }
  func.func @transform_9(%arg0: i32, %arg1: i32) -> (i32, i32, i32) {
    %c0_i32 = arith.constant 0 : i32
    %c0_i32_0 = arith.constant 0 : i32
    %c0_i32_1 = arith.constant 0 : i32
    return %arg1, %c0_i32, %c0_i32_0 : i32, i32, i32
  }
  func.func @transform_10(%arg0: i32, %arg1: i32) -> (i32, i32, i32) {
    %c0_i32 = arith.constant 0 : i32
    %c0_i32_0 = arith.constant 0 : i32
    %c0_i32_1 = arith.constant 0 : i32
    return %arg1, %c0_i32, %c0_i32_0 : i32, i32, i32
  }
  func.func @transform_11(%arg0: i32, %arg1: i32) -> (i32, i32, i32) {
    %c0_i32 = arith.constant 0 : i32
    %c0_i32_0 = arith.constant 0 : i32
    %c0_i32_1 = arith.constant 0 : i32
    return %arg1, %c0_i32, %c0_i32_0 : i32, i32, i32
  }
  func.func @transform_12(%arg0: i32, %arg1: i32) -> (i32, i32, i32) {
    %c0_i32 = arith.constant 0 : i32
    %c0_i32_0 = arith.constant 0 : i32
    %c0_i32_1 = arith.constant 0 : i32
    return %arg1, %c0_i32, %c0_i32_0 : i32, i32, i32
  }
  func.func @transform_13(%arg0: i32, %arg1: i32) -> (i32, i32, i32) {
    %c0_i32 = arith.constant 0 : i32
    %c0_i32_0 = arith.constant 0 : i32
    %c0_i32_1 = arith.constant 0 : i32
    return %arg1, %c0_i32, %c0_i32_0 : i32, i32, i32
  }
  func.func @transform_14(%arg0: i32, %arg1: i32) -> (i32, i32, i32) {
    %c0_i32 = arith.constant 0 : i32
    %c0_i32_0 = arith.constant 0 : i32
    %c0_i32_1 = arith.constant 0 : i32
    return %arg1, %c0_i32, %c0_i32_0 : i32, i32, i32
  }
  func.func @transform_15(%arg0: i32, %arg1: i32) -> (i32, i32, i32) {
    %c0_i32 = arith.constant 0 : i32
    %c0_i32_0 = arith.constant 0 : i32
    %c0_i32_1 = arith.constant 0 : i32
    return %arg1, %c0_i32, %c0_i32_0 : i32, i32, i32
  }
  func.func @transform_16(%arg0: i32, %arg1: i32) -> (i32, i32, i32) {
    %c0_i32 = arith.constant 0 : i32
    %c0_i32_0 = arith.constant 0 : i32
    %c0_i32_1 = arith.constant 0 : i32
    return %arg1, %c0_i32, %c0_i32_0 : i32, i32, i32
  }
  func.func @transform_17(%arg0: i32, %arg1: i32) -> (i32, i32, i32) {
    %c0_i32 = arith.constant 0 : i32
    %c0_i32_0 = arith.constant 0 : i32
    %c0_i32_1 = arith.constant 0 : i32
    return %arg1, %c0_i32, %c0_i32_0 : i32, i32, i32
  }
  func.func @transform_18(%arg0: i32, %arg1: i32) -> (i32, i32, i32) {
    %c0_i32 = arith.constant 0 : i32
    %c0_i32_0 = arith.constant 0 : i32
    %c0_i32_1 = arith.constant 0 : i32
    return %arg1, %c0_i32, %c0_i32_0 : i32, i32, i32
  }
  func.func @transform_19(%arg0: i32, %arg1: i32) -> (i32, i32, i32) {
    %c0_i32 = arith.constant 0 : i32
    %c0_i32_0 = arith.constant 0 : i32
    %c0_i32_1 = arith.constant 0 : i32
    return %arg1, %c0_i32, %c0_i32_0 : i32, i32, i32
  }
  func.func @transform_20(%arg0: i32, %arg1: i32) -> (i32, i32, i32) {
    %c0_i32 = arith.constant 0 : i32
    %c0_i32_0 = arith.constant 0 : i32
    %c0_i32_1 = arith.constant 0 : i32
    return %arg1, %c0_i32, %c0_i32_0 : i32, i32, i32
  }
  func.func @transform_21(%arg0: i32, %arg1: i32) -> (i32, i32) {
    %c0_i32 = arith.constant 0 : i32
    %c0_i32_0 = arith.constant 0 : i32
    return %arg0, %c0_i32 : i32, i32
  }
}

</mosaic_0001>

<bundles_post_ra>
// kernel: tpu_custom_call.1
= control target key start
LH: loop header
LB: loop body
LE: loop exit
PB: predicated region body
PF: predicated region fallthrough
CT: control target
= control target key end

     0   :  { %s5947_s0 = inlined_call_operand.hbm [shape: f32[2,8,32], index: 0, kind: input, shape index: {}]   ;;  %s5948_s1 = inlined_call_operand.hbm [shape: f32[2,1,8], index: 1, kind: input, shape index: {}]   ;;  %s5949_s2 = inlined_call_operand.hbm [shape: f32[16,32], index: 2, kind: input, shape index: {}]   ;;  %s5950_s3 = inlined_call_operand.hbm [shape: f32[16,32], index: 3, kind: input, shape index: {}]   ;;  %s5951_s4 = inlined_call_operand.hbm [shape: f32[32,32], index: 4, kind: input, shape index: {}]   ;;  %s5952_s5 = inlined_call_operand.hbm [shape: bf16[2,32,32], index: 5, kind: input, shape index: {}]   ;;  %s5953_s6 = inlined_call_operand.hbm [shape: bf16[2,32,32], index: 6, kind: input, shape index: {}]   ;;  %s5954_s7 = inlined_call_operand.hbm [shape: bf16[2,32,32], index: 7, kind: input, shape index: {}]   ;;  %s5955_s8 = inlined_call_operand.hbm [shape: bf16[2,32,32], index: 8, kind: input, shape index: {}]   ;;  %s5956_s9 = inlined_call_operand.hbm [shape: bf16[2,32,128], index: 9, kind: input, shape index: {}]   ;;  %s5957_s10 = inlined_call_operand.hbm [shape: bf16[2,128,32], index: 10, kind: input, shape index: {}]   ;;  %s5958_s11 = inlined_call_operand.hbm [shape: f32[2,1,32], index: 11, kind: input, shape index: {}]   ;;  %s5959_s12 = inlined_call_operand.hbm [shape: f32[2,1,32], index: 12, kind: input, shape index: {}]   ;;  %s5960_s13 = inlined_call_operand.hbm [shape: f32[2,1,32], index: 13, kind: input, shape index: {}]   ;;  %s5961_s14 = inlined_call_operand.hbm [shape: f32[2,1,32], index: 14, kind: input, shape index: {}]   ;;  %s5962_s15 = inlined_call_operand.hbm [shape: f32[2,1,128], index: 15, kind: input, shape index: {}]   ;;  %s5963_s16 = inlined_call_operand.hbm [shape: f32[2,1,32], index: 16, kind: input, shape index: {}]   ;;  %s5964_s17 = inlined_call_operand.hbm [shape: f32[2,1,32], index: 17, kind: input, shape index: {}]   ;;  %s5965_s18 = inlined_call_operand.hbm [shape: f32[2,1,32], index: 18, kind: input, shape index: {}]   ;;  %s5966_s19 = inlined_call_operand.hbm [shape: f32[2,1,32], index: 19, kind: input, shape index: {}]   ;;  %s5967_s20 = inlined_call_operand.hbm [shape: f32[2,1,32], index: 20, kind: input, shape index: {}]   ;;  %s5968_s21 = inlined_call_operand.hbm [shape: f32[2,32], index: 21, kind: output, shape index: {}]  }
   0x1   :  { %6015 = sst [smem:[#allocation56_spill]] %s5947_s0 }
   0x2   :  { %6016 = sst [smem:[#allocation57_spill]] %s5948_s1 }
   0x3   :  { %6017 = sst [smem:[#allocation58_spill]] %s5949_s2 }
   0x4   :  { %6018 = sst [smem:[#allocation59_spill]] %s5950_s3 }
   0x5   :  { %6019 = sst [smem:[#allocation60_spill]] %s5951_s4 }
   0x6   :  { %6020 = sst [smem:[#allocation61_spill]] %s5952_s5 }
   0x7   :  { %6021 = sst [smem:[#allocation62_spill]] %s5953_s6 }
   0x8   :  { %6022 = sst [smem:[#allocation63_spill]] %s5954_s7 }
   0x9   :  { %6023 = sst [smem:[#allocation64_spill]] %s5955_s8 }
   0xa   :  { %6024 = sst [smem:[#allocation65_spill]] %s5957_s10 }
   0xb   :  { %6025 = sst [smem:[#allocation66_spill]] %s5959_s12 }
   0xc   :  { %6026 = sst [smem:[#allocation67_spill]] %s5961_s14 }
   0xd   :  { %6027 = sst [smem:[#allocation68_spill]] %s5963_s16 }
   0xe   :  { %6028 = sst [smem:[#allocation69_spill]] %s5965_s18 }
   0xf   :  { %6029 = sst [smem:[#allocation70_spill]] %s5966_s19 }
  0x10   :  { %6030 = sst [smem:[#allocation71_spill]] %s5967_s20 }
  0x11   :  { %6031 = sst [smem:[#allocation72_spill]] %s5968_s21 }
  0x12   :  { %26 = vsyncpa [#allocation4], 0 }
  0x13   :  { %27 = vsyncpa [#allocation7], 0 }
  0x14   :  { %28 = vsyncpa [#allocation10], 0 }
  0x15   :  { %29 = vsyncpa [#allocation13], 0 }
  0x16   :  { %31 = vsyncpa [#allocation13 + $0x1], 0 }
  0x17   :  { %32 = vsyncpa [#allocation16], 0 }
  0x18   :  { %34 = vsyncpa [#allocation16 + $0x1], 0 }
  0x19   :  { %35 = vsyncpa [#allocation19], 0 }
  0x1a   :  { %37 = vsyncpa [#allocation19 + $0x1], 0 }
  0x1b   :  { %38 = vsyncpa [#allocation22], 0 }
  0x1c   :  { %40 = vsyncpa [#allocation22 + $0x1], 0 }
  0x1d   :  { %41 = vsyncpa [#allocation25], 0 }
  0x1e   :  { %43 = vsyncpa [#allocation25 + $0x1], 0 }
  0x1f   :  { %44 = vsyncpa [#allocation28], 0 }
  0x20   :  { %46 = vsyncpa [#allocation28 + $0x1], 0 }
  0x21   :  { %47 = vsyncpa [#allocation31], 0 }
  0x22   :  { %49 = vsyncpa [#allocation31 + $0x1], 0 }
  0x23   :  { %50 = vsyncpa [#allocation34], 0 }
  0x24   :  { %52 = vsyncpa [#allocation34 + $0x1], 0 }
  0x25   :  { %53 = vsyncpa [#allocation5], 0  ;;  %s4858_s2 = smov 0   ;;  %s4860_s25 = smov 0  }
  0x26   :  { %s4862_s26 = smov 0   ;;  %s4864_s27 = smov 0  }
  0x27   :  { %s4866_s3 = smov 0   ;;  %s4868_s28 = smov 0  }
  0x28 LB: > { %6032 = sst [smem:[#allocation49_spill]] %s4694_s25  ;;  %s4887_s29 = sadd.s32 4294967295, %s4710_s28   ;;  %s4710_s28 = sphi %s4868_s28, %s59_s28   ;;  %s4706_s3 = sphi %s4866_s3, %s6107_s3   ;;  %s4702_s27 = sphi %s4864_s27, %s6106_s27   ;;  %s4698_s26 = sphi %s4862_s26, %s6105_s26   ;;  %s4694_s25 = sphi %s4860_s25, %s6104_s25   ;;  %s4690_s2 = sphi %s4858_s2, %s6101_s2  }
  0x29   : > { %6033 = sst [smem:[#allocation50_spill]] %s4702_s27  ;;  %s68_s0 = sadd.s32 1, %s4706_s3 }
  0x2a   : > { %6034 = sst [smem:[#allocation51_spill]] %s4887_s29  ;;  %p69_p0 = scmp.ge.s32.totalorder %s68_s0, 2 }
  0x2b   : > { %s193_s4 = sadd.s32 1, %s4698_s26  ;;  %p200_p1 = scmp.ne.s32.totalorder %s4698_s26, %s4694_s25 }
  0x2c   : > { %p201_p2 = scmp.eq.s32.totalorder %s4710_s28, 0  ;;  %s6109_s0 = smov (%p69_p0, %s68_s0), 0 }
  0x2d   : > { %6035 = sst [smem:[#allocation52_spill]] %s6109_s0  ;;  %p206_p4 = scmp.ne.s32.totalorder %s4694_s25, %s4690_s2 }
  0x2e   : > { %p4896_p3 = por %p201_p2, %p200_p1  ;;  %s190_s5 = ssub.s32 %s4706_s3, %s6109_s0 }
  0x2f   : > { %p5986_p5 = scmp.eq.s32.totalorder %s4887_s29, 0  ;;  %p191_p6 = scmp.eq.s32.totalorder %s190_s5, 0 }
  0x30   : > { %s6036_s30 = scalar_select %p4896_p3, 1, 0 }
  0x31   : > { %p3397_p7 = scmp.ge.s32.totalorder %s4710_s28, 1  ;;  %p4907_p8 = por %p5986_p5, %p206_p4 }
  0x32   : > { %p633_p9 = scmp.lt.s32.totalorder %s4710_s28, 3  ;;  %s4712_s24 = smov [#allocation6]  }
  0x33   : > { %s6037_s22 = scalar_select %p4907_p8, 1, 0 }
  0x34   : > { %s4913_s23 = scalar_select %p191_p6, %s4698_s26, %s193_s4  }
  0x35   : > { %6038 = sst [smem:[#allocation53_spill]] %s6037_s22  ;;  %p4915_p10 = pnand %p3397_p7, %p633_p9 }
  0x36   : > { %6039 = sst [smem:[#allocation54_spill]] %s4913_s23  ;;  %s664_s2 = sshll.u32 %s4712_s24, 4  ;;  %s665_s2 = int_to_ptr.vmem [resolvable:$true] %s664_s2 }
  0x37   : > { %s6040_s1 = scalar_select %p4915_p10, 1, 0 }
  0x38   : > { %p3829_p11 = pneg %p4915_p10  ;;  %s4713_s0 = smov [#allocation9]  }
  0x39   : > { %6041 = sst [smem:[#allocation55_spill]] %s6040_s1  ;;  %s690_s21 = sshll.u32 %s4713_s0, 4  ;;  %s691_s21 = int_to_ptr.vmem [resolvable:$true] %s690_s21 }
  0x3a   : > { %p4923_p12 = pnand %p3829_p11, %p5986_p5  ;;  %s6043_s27 = sld [smem:[#allocation57_spill]] }
  0x3c   : > { %p4935_p0 = pneg %p4923_p12 }
  0x40   : > { %s6044_s22 = smov %s6043_s27  ;;  %s4002_s25 = scalar_lea.hbm %s6043_s27, 32 }
  0x41   : > { %p4003_p13 = scmp.ne.s32.totalorder %s6044_s22, %s4002_s25  ;;  %p4009_p4 = scmp.lt.u32.totalorder %s4002_s25, %s6044_s22 }
  0x43   : > { %p4005_p1 = pnand %p4935_p0, %p4003_p13 }
  0x45   : > { %p4006_p2 = pneg %p4005_p1 }
  0x47   : > { %p4011_p6 = pnand %p4009_p4, %p4006_p2 }
  0x49   : > { %4014 = shalt.err (!%p4011_p6)
}
  0x4a   : > { %s4015_s27 = scalar_lea.vmem %s665_s2, 32  ;;  %p4023_p5 = scmp.lt.s32.totalorder %s665_s2, %s665_s2 }
  0x4b   : > { %p4016_p7 = scmp.ne.s32.totalorder %s665_s2, %s4015_s27  ;;  %p4024_p8 = scmp.lt.s32.totalorder %s4015_s27, %s4015_s27 }
  0x4d   : > { %p4018_p9 = pnand %p4016_p7, %p4935_p0  ;;  %p4025_p10 = por %p4024_p8, %p4023_p5 }
  0x4f   : > { %p4019_p11 = pneg %p4018_p9 }
  0x51   : > { %p4026_p3 = pnand %p4025_p10, %p4019_p11 }
  0x53   : > { %4029 = shalt.err (!%p4026_p3)
}
  0x54   : > { %s4714_s18 = smov 16   ;;  %s4715_s20 = smov 1  }
  0x55   : > { %3835 = dma.hbm_to_vmem [thread:$0]  (!%p4923_p12), %s6044_s22, 32, %s665_s2, [#allocation7], %s4714_s18, %s4714_s18, %s4715_s20  }
  0x56   : > { %s6046_s1 = sld [smem:[#allocation59_spill]] }
  0x5c   : > { %s4030_s4 = scalar_lea.hbm %s6046_s1, 256 }
  0x5d   : > { %p4031_p5 = scmp.ne.s32.totalorder %s6046_s1, %s4030_s4  ;;  %p4037_p10 = scmp.lt.u32.totalorder %s4030_s4, %s6046_s1 }
  0x5f   : > { %p4033_p3 = pnand %p4031_p5, %p4935_p0 }
  0x61   : > { %p4034_p8 = pneg %p4033_p3 }
  0x63   : > { %p4039_p13 = pnand %p4037_p10, %p4034_p8 }
  0x65   : > { %4042 = shalt.err (!%p4039_p13)
}
  0x66   : > { %s4043_s29 = scalar_lea.vmem %s691_s21, 256  ;;  %p4051_p6 = scmp.lt.s32.totalorder %s691_s21, %s691_s21 }
  0x67   : > { %p4044_p1 = scmp.ne.s32.totalorder %s691_s21, %s4043_s29  ;;  %p4052_p7 = scmp.lt.s32.totalorder %s4043_s29, %s4043_s29 }
  0x69   : > { %p4046_p2 = pnand %p4044_p1, %p4935_p0  ;;  %p4053_p9 = por %p4052_p7, %p4051_p6 }
  0x6b   : > { %p4047_p4 = pneg %p4046_p2 }
  0x6d   : > { %p4054_p11 = pnand %p4053_p9, %p4047_p4 }
  0x6f   : > { %4057 = shalt.err (!%p4054_p11)
}
  0x70   : > { %s4716_s14 = smov 128   ;;  %s4717_s16 = smov 8  }
  0x71   : > { %3841 = dma.hbm_to_vmem [thread:$0]  (!%p4923_p12), %s6046_s1, 256, %s691_s21, [#allocation10], %s4716_s14, %s4716_s14, %s4717_s16  }
  0x72   : > { %s4718_s18 = smov [#allocation3]   ;;  %s4719_s25 = smov [#allocation8]  }
  0x73   : > { %s648_s20 = sshll.u32 %s4718_s18, 4  ;;  %s677_s0 = sshll.u32 %s4719_s25, 4  ;;  %s649_s20 = int_to_ptr.vmem [resolvable:$true] %s648_s20  ;;  %s678_s0 = int_to_ptr.vmem [resolvable:$true] %s677_s0 }
  0x74   : > { %s6047_s27 = sld [smem:[#allocation56_spill]] }
  0x7a   : > { %s6048_s29 = smov %s6047_s27  ;;  %s4058_s22 = scalar_lea.hbm %s6047_s27, 256 }
  0x7b   : > { %p4059_p5 = scmp.ne.s32.totalorder %s6048_s29, %s4058_s22  ;;  %p4065_p10 = scmp.lt.u32.totalorder %s4058_s22, %s6048_s29 }
  0x7d   : > { %p4061_p3 = pnand %p4059_p5, %p4935_p0 }
  0x7f   : > { %p4062_p8 = pneg %p4061_p3 }
  0x81   : > { %p4067_p13 = pnand %p4065_p10, %p4062_p8 }
  0x83   : > { %4070 = shalt.err (!%p4067_p13)
}
  0x84   : > { %s4071_s21 = scalar_lea.vmem %s649_s20, 256  ;;  %p4079_p6 = scmp.lt.s32.totalorder %s649_s20, %s649_s20 }
  0x85   : > { %p4072_p1 = scmp.ne.s32.totalorder %s649_s20, %s4071_s21  ;;  %p4080_p7 = scmp.lt.s32.totalorder %s4071_s21, %s4071_s21 }
  0x87   : > { %p4074_p2 = pnand %p4072_p1, %p4935_p0  ;;  %p4081_p9 = por %p4080_p7, %p4079_p6 }
  0x89   : > { %p4075_p4 = pneg %p4074_p2 }
  0x8b   : > { %p4082_p11 = pnand %p4081_p9, %p4075_p4 }
  0x8d   : > { %4085 = shalt.err (!%p4082_p11)
}
  0x8e   : > { %3832 = dma.hbm_to_vmem [thread:$0]  (!%p4923_p12), %s6048_s29, 256, %s649_s20, [#allocation4], %s4716_s14, %s4716_s14, %s4717_s16  }
  0x8f   : > { %s6049_s22 = sld [smem:[#allocation58_spill]] }
  0x95   : > { %s4086_s12 = scalar_lea.hbm %s6049_s22, 256 }
  0x96   : > { %p4087_p5 = scmp.ne.s32.totalorder %s6049_s22, %s4086_s12  ;;  %p4093_p10 = scmp.lt.u32.totalorder %s4086_s12, %s6049_s22 }
  0x98   : > { %p4089_p3 = pnand %p4087_p5, %p4935_p0 }
  0x9a   : > { %p4090_p8 = pneg %p4089_p3 }
  0x9c   : > { %p4095_p13 = pnand %p4093_p10, %p4090_p8 }
  0x9e   : > { %4098 = shalt.err (!%p4095_p13)
}
  0x9f   : > { %s4099_s4 = scalar_lea.vmem %s678_s0, 256  ;;  %p4107_p6 = scmp.lt.s32.totalorder %s678_s0, %s678_s0 }
  0xa0   : > { %p4100_p1 = scmp.ne.s32.totalorder %s678_s0, %s4099_s4  ;;  %p4108_p7 = scmp.lt.s32.totalorder %s4099_s4, %s4099_s4 }
  0xa2   : > { %p4102_p2 = pnand %p4100_p1, %p4935_p0  ;;  %p4109_p9 = por %p4108_p7, %p4107_p6 }
  0xa4   : > { %p4103_p4 = pneg %p4102_p2 }
  0xa6   : > { %p4110_p11 = pnand %p4109_p9, %p4103_p4 }
  0xa8   : > { %4113 = shalt.err (!%p4110_p11)
}
  0xa9   : > { %3838 = dma.hbm_to_vmem [thread:$0]  (!%p4923_p12), %s6049_s22, 256, %s678_s0, [#allocation7], %s4716_s14, %s4716_s14, %s4717_s16  }
  0xaa   : > { %s4720_s21 = smov [#allocation11]   ;;  %s6050_s19 = sld [smem:[#allocation60_spill]] }
  0xab   : > { %s703_s6 = sshll.u32 %s4720_s21, 4  ;;  %s704_s6 = int_to_ptr.vmem [resolvable:$true] %s703_s6 }
  0xb0   : > { %s4114_s12 = scalar_lea.hbm %s6050_s19, 512 }
  0xb1   : > { %p4115_p5 = scmp.ne.s32.totalorder %s6050_s19, %s4114_s12  ;;  %p4121_p10 = scmp.lt.u32.totalorder %s4114_s12, %s6050_s19 }
  0xb3   : > { %p4117_p3 = pnand %p4115_p5, %p4935_p0 }
  0xb5   : > { %p4118_p8 = pneg %p4117_p3 }
  0xb7   : > { %p4123_p13 = pnand %p4121_p10, %p4118_p8 }
  0xb9   : > { %4126 = shalt.err (!%p4123_p13)
}
  0xba   : > { %s4127_s0 = scalar_lea.vmem %s704_s6, 512  ;;  %p4135_p6 = scmp.lt.s32.totalorder %s704_s6, %s704_s6 }
  0xbb   : > { %p4128_p1 = scmp.ne.s32.totalorder %s704_s6, %s4127_s0  ;;  %p4136_p7 = scmp.lt.s32.totalorder %s4127_s0, %s4127_s0 }
  0xbd   : > { %p4130_p2 = pnand %p4128_p1, %p4935_p0  ;;  %p4137_p9 = por %p4136_p7, %p4135_p6 }
  0xbf   : > { %p4131_p4 = pneg %p4130_p2 }
  0xc1   : > { %p4138_p11 = pnand %p4137_p9, %p4131_p4 }
  0xc3   : > { %4141 = shalt.err (!%p4138_p11)
}
  0xc4   : > { %3844 = dma.hbm_to_vmem [thread:$0]  (!%p4923_p12), %s6050_s19, 512, %s704_s6, [#allocation10], %s4716_s14, %s4716_s14, %s4717_s16  }
  0xc5   : > { %p3403_p5 = scmp.ge.s32.totalorder %s4710_s28, 2 }
  0xc6   : > { %s5037_s24 = sand.u32 (!%p3403_p5), 1, %s4710_s28   ;;  %s5040_s27 = sand.u32 (!%p3403_p5), 1, %s4698_s26  }
  0xc7   : > { %713 = sbr.rel (%p3403_p5) target bundleno = 626 (0x272), region = 36  ;;  %s5043_s5 = sshll.u32 (!%p3403_p5), %s5040_s27, 4 }
  0xc8   : > { %s5046_s21 = sshll.u32 (!%p3403_p5), %s4706_s3, 8  ;;  %s6051_s6 = sld [smem:[#allocation61_spill]] (!%p3403_p5) }
  0xc9   : > { %s721_s10 = scalar_lea.vmem (!%p3403_p5), [#allocation12], %s5043_s5  ;;  %s5998_s2 = scalar_lea.sflag (!%p3403_p5), [#allocation13], %s5037_s24 }
  0xca   : > { %s728_s12 = sshll.u32 (!%p3403_p5), %s721_s10, 4  ;;  %p6052_p0 = scmp.ne.s32.totalorder (!%p3403_p5), %s6036_s30, 0  ;;  %s5055_s12 = int_to_ptr.vmem [resolvable:$true] %s728_s12 }
  0xce   : > { %s5052_s8 = scalar_lea.hbm %s6051_s6, %s5046_s21  ;;  %s4146_s0 = scalar_lea.hbm %s6051_s6, 512 }
  0xcf   : > { %s4142_s18 = scalar_lea.hbm %s5052_s8, 256  ;;  %p4147_p10 = scmp.lt.u32.totalorder %s5052_s8, %s6051_s6 }
  0xd0   : > { %p4143_p12 = scmp.ne.s32.totalorder %s5052_s8, %s4142_s18  ;;  %p4148_p13 = scmp.lt.u32.totalorder %s4146_s0, %s4142_s18 }
  0xd1   : > { %p4150_p2 = scmp.lt.u32.totalorder %s4142_s18, %s5052_s8 }
  0xd2   : > { %p4144_p3 = pnand %p4143_p12, %p6052_p0  ;;  %p4149_p1 = por %p4148_p13, %p4147_p10 }
  0xd4   : > { %p4145_p8 = pneg %p4144_p3  ;;  %p4151_p4 = por %p4150_p2, %p4149_p1 }
  0xd6   : > { %p4152_p6 = pnand %p4151_p4, %p4145_p8 }
  0xd8   : > { %4155 = shalt.err (!%p4152_p6)
}
  0xd9   : > { %s4156_s14 = scalar_lea.vmem %s5055_s12, 256  ;;  %s4721_s16 = smov [#allocation12]  }
  0xda   : > { %p4157_p7 = scmp.ne.s32.totalorder %s5055_s12, %s4156_s14  ;;  %s4160_s10 = sshll.u32 %s4721_s16, 4  ;;  %s4161_s10 = int_to_ptr.vmem [resolvable:$false] %s4160_s10 }
  0xdb   : > { %s4162_s25 = scalar_lea.vmem %s4161_s10, 512  ;;  %p4163_p5 = scmp.lt.s32.totalorder %s5055_s12, %s4161_s10 }
  0xdc   : > { %p4158_p9 = pnand %p4157_p7, %p6052_p0  ;;  %p4164_p12 = scmp.lt.s32.totalorder %s4162_s25, %s4156_s14 }
  0xde   : > { %p4159_p11 = pneg %p4158_p9  ;;  %p4165_p3 = por %p4164_p12, %p4163_p5 }
  0xe0   : > { %p4166_p10 = pnand %p4165_p3, %p4159_p11 }
  0xe2   : > { %4169 = shalt.err (!%p4166_p10)
}
  0xe3   : > { %s6002_s18 = smov 64   ;;  %s6004_s23 = smov 4  }
  0xe4   : > { %3783 = dma.hbm_to_vmem [thread:$0]  (%p6052_p0), %s5052_s8, 256, %s5055_s12, %s5998_s2, %s6002_s18, %s6002_s18, %s6004_s23  }
  0xe5   : > { %s6053_s7 = sld [smem:[#allocation63_spill]]  ;;  %s763_s14 = scalar_lea.vmem [#allocation15], %s5043_s5 }
  0xe6   : > { %s770_s16 = sshll.u32 %s763_s14, 4  ;;  %s5999_s10 = scalar_lea.sflag [#allocation16], %s5037_s24  ;;  %s5091_s16 = int_to_ptr.vmem [resolvable:$true] %s770_s16 }
  0xeb   : > { %s5088_s20 = scalar_lea.hbm %s6053_s7, %s5046_s21  ;;  %s4174_s0 = scalar_lea.hbm %s6053_s7, 512 }
  0xec   : > { %s4170_s25 = scalar_lea.hbm %s5088_s20, 256  ;;  %p4175_p2 = scmp.lt.u32.totalorder %s5088_s20, %s6053_s7 }
  0xed   : > { %p4171_p8 = scmp.ne.s32.totalorder %s5088_s20, %s4170_s25  ;;  %p4176_p4 = scmp.lt.u32.totalorder %s4174_s0, %s4170_s25 }
  0xee   : > { %p4178_p7 = scmp.lt.u32.totalorder %s4170_s25, %s5088_s20 }
  0xef   : > { %p4172_p13 = pnand %p4171_p8, %p6052_p0  ;;  %p4177_p6 = por %p4176_p4, %p4175_p2 }
  0xf1   : > { %p4173_p1 = pneg %p4172_p13  ;;  %p4179_p9 = por %p4178_p7, %p4177_p6 }
  0xf3   : > { %p4180_p11 = pnand %p4179_p9, %p4173_p1 }
  0xf5   : > { %4183 = shalt.err (!%p4180_p11)
}
  0xf6   : > { %s4184_s14 = scalar_lea.vmem %s5091_s16, 256  ;;  %s4724_s8 = smov [#allocation15]  }
  0xf7   : > { %p4185_p5 = scmp.ne.s32.totalorder %s5091_s16, %s4184_s14  ;;  %s4188_s12 = sshll.u32 %s4724_s8, 4  ;;  %s4189_s12 = int_to_ptr.vmem [resolvable:$false] %s4188_s12 }
  0xf8   : > { %s4190_s2 = scalar_lea.vmem %s4189_s12, 512  ;;  %p4191_p10 = scmp.lt.s32.totalorder %s5091_s16, %s4189_s12 }
  0xf9   : > { %p4186_p12 = pnand %p4185_p5, %p6052_p0  ;;  %p4192_p8 = scmp.lt.s32.totalorder %s4190_s2, %s4184_s14 }
  0xfb   : > { %p4187_p3 = pneg %p4186_p12  ;;  %p4193_p13 = por %p4192_p8, %p4191_p10 }
  0xfd   : > { %p4194_p2 = pnand %p4193_p13, %p4187_p3 }
  0xff   : > { %4197 = shalt.err (!%p4194_p2)
}
 0x100   : > { %3785 = dma.hbm_to_vmem [thread:$0]  (%p6052_p0), %s5088_s20, 256, %s5091_s16, %s5999_s10, %s6002_s18, %s6002_s18, %s6004_s23  }
 0x101   : > { %s5124_s4 = scalar_lea.hbm %s5956_s9, %s5046_s21  ;;  %s805_s14 = scalar_lea.vmem [#allocation18], %s5043_s5 }
 0x102   : > { %s812_s8 = sshll.u32 %s805_s14, 4  ;;  %s6001_s12 = scalar_lea.sflag [#allocation19], %s5037_s24  ;;  %s5127_s8 = int_to_ptr.vmem [resolvable:$true] %s812_s8 }
 0x103   : > { %s4198_s2 = scalar_lea.hbm %s5124_s4, 256  ;;  %s4202_s25 = scalar_lea.hbm %s5956_s9, 512 }
 0x104   : > { %p4199_p1 = scmp.ne.s32.totalorder %s5124_s4, %s4198_s2  ;;  %p4203_p7 = scmp.lt.u32.totalorder %s5124_s4, %s5956_s9 }
 0x105   : > { %p4204_p9 = scmp.lt.u32.totalorder %s4202_s25, %s4198_s2  ;;  %p4206_p5 = scmp.lt.u32.totalorder %s4198_s2, %s5124_s4 }
 0x106   : > { %p4200_p4 = pnand %p4199_p1, %p6052_p0 }
 0x107   : > { %p4205_p11 = por %p4204_p9, %p4203_p7 }
 0x108   : > { %p4201_p6 = pneg %p4200_p4 }
 0x109   : > { %p4207_p12 = por %p4206_p5, %p4205_p11 }
 0x10b   : > { %p4208_p3 = pnand %p4207_p12, %p4201_p6 }
 0x10d   : > { %4211 = shalt.err (!%p4208_p3)
}
 0x10e   : > { %s4212_s14 = scalar_lea.vmem %s5127_s8, 256  ;;  %s4725_s20 = smov [#allocation18]  }
 0x10f   : > { %p4213_p10 = scmp.ne.s32.totalorder %s5127_s8, %s4212_s14  ;;  %s4216_s16 = sshll.u32 %s4725_s20, 4  ;;  %s4217_s16 = int_to_ptr.vmem [resolvable:$false] %s4216_s16 }
 0x110   : > { %s4218_s10 = scalar_lea.vmem %s4217_s16, 512  ;;  %p4219_p2 = scmp.lt.s32.totalorder %s5127_s8, %s4217_s16 }
 0x111   : > { %p4214_p8 = pnand %p4213_p10, %p6052_p0  ;;  %p4220_p1 = scmp.lt.s32.totalorder %s4218_s10, %s4212_s14 }
 0x113   : > { %p4215_p13 = pneg %p4214_p8  ;;  %p4221_p4 = por %p4220_p1, %p4219_p2 }
 0x115   : > { %p4222_p7 = pnand %p4221_p4, %p4215_p13 }
 0x117   : > { %4225 = shalt.err (!%p4222_p7)
}
 0x118   : > { %3787 = dma.hbm_to_vmem [thread:$0]  (%p6052_p0), %s5124_s4, 256, %s5127_s8, %s6001_s12, %s6002_s18, %s6002_s18, %s6004_s23  }
 0x119   : > { %s5157_s2 = sshll.u32 %s4706_s3, 4  ;;  %s846_s20 = scalar_lea.vmem [#allocation21], %s5040_s27 }
 0x11a   : > { %s5163_s14 = scalar_lea.hbm %s5958_s11, %s5157_s2  ;;  %s853_s16 = sshll.u32 %s846_s20, 4  ;;  %s854_s16 = int_to_ptr.vmem [resolvable:$true] %s853_s16 }
 0x11b   : > { %s6006_s10 = scalar_lea.sflag [#allocation22], %s5037_s24  ;;  %s4226_s1 = scalar_lea.hbm %s5163_s14, 16 }
 0x11c   : > { %p4227_p6 = scmp.ne.s32.totalorder %s5163_s14, %s4226_s1  ;;  %s4230_s12 = scalar_lea.hbm %s5958_s11, 32 }
 0x11d   : > { %p4231_p5 = scmp.lt.u32.totalorder %s5163_s14, %s5958_s11  ;;  %p4232_p12 = scmp.lt.u32.totalorder %s4230_s12, %s4226_s1 }
 0x11e   : > { %p4228_p9 = pnand %p4227_p6, %p6052_p0  ;;  %p4234_p10 = scmp.lt.u32.totalorder %s4226_s1, %s5163_s14 }
 0x11f   : > { %p4233_p3 = por %p4232_p12, %p4231_p5 }
 0x120   : > { %p4229_p11 = pneg %p4228_p9 }
 0x121   : > { %p4235_p8 = por %p4234_p10, %p4233_p3 }
 0x123   : > { %p4236_p13 = pnand %p4235_p8, %p4229_p11 }
 0x125   : > { %4239 = shalt.err (!%p4236_p13)
}
 0x126   : > { %s4240_s20 = scalar_lea.vmem %s854_s16, 16  ;;  %s4726_s18 = smov [#allocation21]  }
 0x127   : > { %p4241_p2 = scmp.ne.s32.totalorder %s854_s16, %s4240_s20  ;;  %s4244_s23 = sshll.u32 %s4726_s18, 4  ;;  %s4245_s23 = int_to_ptr.vmem [resolvable:$false] %s4244_s23 }
 0x128   : > { %s4246_s4 = scalar_lea.vmem %s4245_s23, 32  ;;  %p4247_p7 = scmp.lt.s32.totalorder %s854_s16, %s4245_s23 }
 0x129   : > { %p4242_p1 = pnand %p4241_p2, %p6052_p0  ;;  %p4248_p6 = scmp.lt.s32.totalorder %s4246_s4, %s4240_s20 }
 0x12b   : > { %p4243_p4 = pneg %p4242_p1  ;;  %p4249_p9 = por %p4248_p6, %p4247_p7 }
 0x12d   : > { %p4250_p5 = pnand %p4249_p9, %p4243_p4 }
 0x12f   : > { %4253 = shalt.err (!%p4250_p5)
}
 0x130   : > { %3789 = dma.hbm_to_vmem [thread:$0]  (%p6052_p0), %s5163_s14, 16, %s854_s16, %s6006_s10  }
 0x131   : > { %s5190_s18 = scalar_lea.hbm %s5960_s13, %s5157_s2  ;;  %s880_s23 = scalar_lea.vmem [#allocation24], %s5040_s27 }
 0x132   : > { %s887_s8 = sshll.u32 %s880_s23, 4  ;;  %s6007_s25 = scalar_lea.sflag [#allocation25], %s5037_s24  ;;  %s888_s8 = int_to_ptr.vmem [resolvable:$true] %s887_s8 }
 0x133   : > { %s4254_s0 = scalar_lea.hbm %s5190_s18, 16  ;;  %s4258_s16 = scalar_lea.hbm %s5960_s13, 32 }
 0x134   : > { %p4255_p11 = scmp.ne.s32.totalorder %s5190_s18, %s4254_s0  ;;  %p4259_p10 = scmp.lt.u32.totalorder %s5190_s18, %s5960_s13 }
 0x135   : > { %p4260_p8 = scmp.lt.u32.totalorder %s4258_s16, %s4254_s0  ;;  %p4262_p2 = scmp.lt.u32.totalorder %s4254_s0, %s5190_s18 }
 0x136   : > { %p4256_p12 = pnand %p4255_p11, %p6052_p0 }
 0x137   : > { %p4261_p13 = por %p4260_p8, %p4259_p10 }
 0x138   : > { %p4257_p3 = pneg %p4256_p12 }
 0x139   : > { %p4263_p1 = por %p4262_p2, %p4261_p13 }
 0x13b   : > { %p4264_p4 = pnand %p4263_p1, %p4257_p3 }
 0x13d   : > { %4267 = shalt.err (!%p4264_p4)
}
 0x13e   : > { %s4268_s12 = scalar_lea.vmem %s888_s8, 16  ;;  %s4727_s23 = smov [#allocation24]  }
 0x13f   : > { %p4269_p7 = scmp.ne.s32.totalorder %s888_s8, %s4268_s12  ;;  %s4272_s10 = sshll.u32 %s4727_s23, 4  ;;  %s4273_s10 = int_to_ptr.vmem [resolvable:$false] %s4272_s10 }
 0x140   : > { %s4274_s20 = scalar_lea.vmem %s4273_s10, 32  ;;  %p4275_p5 = scmp.lt.s32.totalorder %s888_s8, %s4273_s10 }
 0x141   : > { %p4270_p6 = pnand %p4269_p7, %p6052_p0  ;;  %p4276_p11 = scmp.lt.s32.totalorder %s4274_s20, %s4268_s12 }
 0x143   : > { %p4271_p9 = pneg %p4270_p6  ;;  %p4277_p12 = por %p4276_p11, %p4275_p5 }
 0x145   : > { %p4278_p8 = pnand %p4277_p12, %p4271_p9 }
 0x147   : > { %4281 = shalt.err (!%p4278_p8)
}
 0x148   : > { %3791 = dma.hbm_to_vmem [thread:$0]  (%p6052_p0), %s5190_s18, 16, %s888_s8, %s6007_s25  }
 0x149   : > { %s5217_s16 = scalar_lea.hbm %s5962_s15, %s5157_s2  ;;  %s914_s10 = scalar_lea.vmem [#allocation27], %s5040_s27 }
 0x14a   : > { %s921_s4 = sshll.u32 %s914_s10, 4  ;;  %s6008_s1 = scalar_lea.sflag [#allocation28], %s5037_s24  ;;  %s922_s4 = int_to_ptr.vmem [resolvable:$true] %s921_s4 }
 0x14b   : > { %s4282_s12 = scalar_lea.hbm %s5217_s16, 16  ;;  %s4286_s8 = scalar_lea.hbm %s5962_s15, 32 }
 0x14c   : > { %p4283_p3 = scmp.ne.s32.totalorder %s5217_s16, %s4282_s12  ;;  %p4287_p2 = scmp.lt.u32.totalorder %s5217_s16, %s5962_s15 }
 0x14d   : > { %p4288_p1 = scmp.lt.u32.totalorder %s4286_s8, %s4282_s12  ;;  %p4290_p7 = scmp.lt.u32.totalorder %s4282_s12, %s5217_s16 }
 0x14e   : > { %p4284_p10 = pnand %p4283_p3, %p6052_p0 }
 0x14f   : > { %p4289_p4 = por %p4288_p1, %p4287_p2 }
 0x150   : > { %p4285_p13 = pneg %p4284_p10 }
 0x151   : > { %p4291_p6 = por %p4290_p7, %p4289_p4 }
 0x153   : > { %p4292_p9 = pnand %p4291_p6, %p4285_p13 }
 0x155   : > { %4295 = shalt.err (!%p4292_p9)
}
 0x156   : > { %s4296_s14 = scalar_lea.vmem %s922_s4, 16  ;;  %s4728_s10 = smov [#allocation27]  }
 0x157   : > { %p4297_p5 = scmp.ne.s32.totalorder %s922_s4, %s4296_s14  ;;  %s4300_s25 = sshll.u32 %s4728_s10, 4  ;;  %s4301_s25 = int_to_ptr.vmem [resolvable:$false] %s4300_s25 }
 0x158   : > { %s4302_s23 = scalar_lea.vmem %s4301_s25, 32  ;;  %p4303_p8 = scmp.lt.s32.totalorder %s922_s4, %s4301_s25 }
 0x159   : > { %p4298_p11 = pnand %p4297_p5, %p6052_p0  ;;  %p4304_p3 = scmp.lt.s32.totalorder %s4302_s23, %s4296_s14 }
 0x15b   : > { %p4299_p12 = pneg %p4298_p11  ;;  %p4305_p10 = por %p4304_p3, %p4303_p8 }
 0x15d   : > { %p4306_p1 = pnand %p4305_p10, %p4299_p12 }
 0x15f   : > { %4309 = shalt.err (!%p4306_p1)
}
 0x160   : > { %3793 = dma.hbm_to_vmem [thread:$0]  (%p6052_p0), %s5217_s16, 16, %s922_s4, %s6008_s1  }
 0x161   : > { %s5244_s8 = scalar_lea.hbm %s5964_s17, %s5157_s2  ;;  %s948_s25 = scalar_lea.vmem [#allocation30], %s5040_s27 }
 0x162   : > { %s955_s20 = sshll.u32 %s948_s25, 4  ;;  %s6009_s0 = scalar_lea.sflag [#allocation31], %s5037_s24  ;;  %s956_s20 = int_to_ptr.vmem [resolvable:$true] %s955_s20 }
 0x163   : > { %s4310_s14 = scalar_lea.hbm %s5244_s8, 16  ;;  %s4314_s4 = scalar_lea.hbm %s5964_s17, 32 }
 0x164   : > { %p4311_p13 = scmp.ne.s32.totalorder %s5244_s8, %s4310_s14  ;;  %p4315_p7 = scmp.lt.u32.totalorder %s5244_s8, %s5964_s17 }
 0x165   : > { %p4316_p6 = scmp.lt.u32.totalorder %s4314_s4, %s4310_s14  ;;  %p4318_p5 = scmp.lt.u32.totalorder %s4310_s14, %s5244_s8 }
 0x166   : > { %p4312_p2 = pnand %p4311_p13, %p6052_p0 }
 0x167   : > { %p4317_p9 = por %p4316_p6, %p4315_p7 }
 0x168   : > { %p4313_p4 = pneg %p4312_p2 }
 0x169   : > { %p4319_p11 = por %p4318_p5, %p4317_p9 }
 0x16b   : > { %p4320_p12 = pnand %p4319_p11, %p4313_p4 }
 0x16d   : > { %4323 = shalt.err (!%p4320_p12)
}
 0x16e   : > { %s4324_s18 = scalar_lea.vmem %s956_s20, 16  ;;  %s4729_s25 = smov [#allocation30]  }
 0x16f   : > { %p4325_p8 = scmp.ne.s32.totalorder %s956_s20, %s4324_s18  ;;  %s4328_s1 = sshll.u32 %s4729_s25, 4  ;;  %s4329_s1 = int_to_ptr.vmem [resolvable:$false] %s4328_s1 }
 0x170   : > { %s4330_s10 = scalar_lea.vmem %s4329_s1, 32  ;;  %p4331_p1 = scmp.lt.s32.totalorder %s956_s20, %s4329_s1 }
 0x171   : > { %p4326_p3 = pnand %p4325_p8, %p6052_p0  ;;  %p4332_p13 = scmp.lt.s32.totalorder %s4330_s10, %s4324_s18 }
 0x173   : > { %p4327_p10 = pneg %p4326_p3  ;;  %p4333_p2 = por %p4332_p13, %p4331_p1 }
 0x175   : > { %p4334_p6 = pnand %p4333_p2, %p4327_p10 }
 0x177   : > { %4337 = shalt.err (!%p4334_p6)
}
 0x178   : > { %3795 = dma.hbm_to_vmem [thread:$0]  (%p6052_p0), %s5244_s8, 16, %s956_s20, %s6009_s0  }
 0x179   : > { %s6054_s4 = sld [smem:[#allocation70_spill]]  ;;  %s982_s1 = scalar_lea.vmem [#allocation33], %s5040_s27 }
 0x17a   : > { %s989_s12 = sshll.u32 %s982_s1, 4  ;;  %s990_s12 = int_to_ptr.vmem [resolvable:$true] %s989_s12 }
 0x17f   : > { %s5271_s23 = scalar_lea.hbm %s6054_s4, %s5157_s2  ;;  %s4342_s20 = scalar_lea.hbm %s6054_s4, 32 }
 0x180   : > { %s4338_s25 = scalar_lea.hbm %s5271_s23, 16  ;;  %p4343_p5 = scmp.lt.u32.totalorder %s5271_s23, %s6054_s4 }
 0x181   : > { %p4339_p4 = scmp.ne.s32.totalorder %s5271_s23, %s4338_s25  ;;  %p4344_p11 = scmp.lt.u32.totalorder %s4342_s20, %s4338_s25 }
 0x182   : > { %p4346_p8 = scmp.lt.u32.totalorder %s4338_s25, %s5271_s23 }
 0x183   : > { %p4340_p7 = pnand %p4339_p4, %p6052_p0  ;;  %p4345_p12 = por %p4344_p11, %p4343_p5 }
 0x185   : > { %p4341_p9 = pneg %p4340_p7  ;;  %p4347_p3 = por %p4346_p8, %p4345_p12 }
 0x187   : > { %p4348_p10 = pnand %p4347_p3, %p4341_p9 }
 0x189   : > { %4351 = shalt.err (!%p4348_p10)
}
 0x18a   : > { %s4352_s1 = scalar_lea.vmem %s990_s12, 16  ;;  %s4730_s0 = smov [#allocation33]  }
 0x18b   : > { %p4353_p1 = scmp.ne.s32.totalorder %s990_s12, %s4352_s1  ;;  %s4356_s18 = sshll.u32 %s4730_s0, 4  ;;  %s4357_s18 = int_to_ptr.vmem [resolvable:$false] %s4356_s18 }
 0x18c   : > { %s4358_s10 = scalar_lea.vmem %s4357_s18, 32  ;;  %p4359_p6 = scmp.lt.s32.totalorder %s990_s12, %s4357_s18 }
 0x18d   : > { %p4354_p13 = pnand %p4353_p1, %p6052_p0  ;;  %p4360_p4 = scmp.lt.s32.totalorder %s4358_s10, %s4352_s1 }
 0x18f   : > { %p4355_p2 = pneg %p4354_p13  ;;  %p4361_p7 = por %p4360_p4, %p4359_p6 }
 0x191   : > { %p4362_p5 = pnand %p4361_p7, %p4355_p2 }
 0x193   : > { %4365 = shalt.err (!%p4362_p5)
}
 0x194   : > { %s6055_s25 = scalar_lea.sflag [#allocation34], %s5037_s24  ;;  %s6056_s14 = sld [smem:[#allocation62_spill]] }
 0x195   : > { %3797 = dma.hbm_to_vmem [thread:$0]  (%p6052_p0), %s5271_s23, 16, %s990_s12, %s6055_s25  }
 0x196   : > { %s742_s18 = scalar_lea.vmem [#allocation14], %s5043_s5 }
 0x197   : > { %s749_s16 = sshll.u32 %s742_s18, 4  ;;  %s5301_s16 = int_to_ptr.vmem [resolvable:$true] %s749_s16 }
 0x19a   : > { %s5298_s0 = scalar_lea.hbm %s6056_s14, %s5046_s21  ;;  %s4370_s12 = scalar_lea.hbm %s6056_s14, 512 }
 0x19b   : > { %s4366_s1 = scalar_lea.hbm %s5298_s0, 256  ;;  %p4371_p8 = scmp.lt.u32.totalorder %s5298_s0, %s6056_s14 }
 0x19c   : > { %p4367_p9 = scmp.ne.s32.totalorder %s5298_s0, %s4366_s1  ;;  %p4372_p3 = scmp.lt.u32.totalorder %s4370_s12, %s4366_s1 }
 0x19d   : > { %p4374_p1 = scmp.lt.u32.totalorder %s4366_s1, %s5298_s0 }
 0x19e   : > { %p4368_p11 = pnand %p4367_p9, %p6052_p0  ;;  %p4373_p10 = por %p4372_p3, %p4371_p8 }
 0x1a0   : > { %p4369_p12 = pneg %p4368_p11  ;;  %p4375_p13 = por %p4374_p1, %p4373_p10 }
 0x1a2   : > { %p4376_p2 = pnand %p4375_p13, %p4369_p12 }
 0x1a4   : > { %4379 = shalt.err (!%p4376_p2)
}
 0x1a5   : > { %s4380_s20 = scalar_lea.vmem %s5301_s16, 256  ;;  %s4731_s18 = smov [#allocation14]  }
 0x1a6   : > { %p4381_p6 = scmp.ne.s32.totalorder %s5301_s16, %s4380_s20  ;;  %s4384_s10 = sshll.u32 %s4731_s18, 4  ;;  %s4385_s10 = int_to_ptr.vmem [resolvable:$false] %s4384_s10 }
 0x1a7   : > { %s4386_s23 = scalar_lea.vmem %s4385_s10, 512  ;;  %p4387_p5 = scmp.lt.s32.totalorder %s5301_s16, %s4385_s10 }
 0x1a8   : > { %p4382_p4 = pnand %p4381_p6, %p6052_p0  ;;  %p4388_p9 = scmp.lt.s32.totalorder %s4386_s23, %s4380_s20 }
 0x1aa   : > { %p4383_p7 = pneg %p4382_p4  ;;  %p4389_p11 = por %p4388_p9, %p4387_p5 }
 0x1ac   : > { %p4390_p8 = pnand %p4389_p11, %p4383_p7 }
 0x1ae   : > { %4393 = shalt.err (!%p4390_p8)
}
 0x1af   : > { %s6057_s1 = smov 4   ;;  %s6058_s12 = smov 64  }
 0x1b0   : > { %s6059_s25 = scalar_lea.sflag [#allocation13], %s5037_s24  ;;  %s6060_s20 = sld [smem:[#allocation64_spill]] }
 0x1b1   : > { %3784 = dma.hbm_to_vmem [thread:$0]  (%p6052_p0), %s5298_s0, 256, %s5301_s16, %s6059_s25, %s6058_s12, %s6058_s12, %s6057_s1  }
 0x1b2   : > { %s784_s23 = scalar_lea.vmem [#allocation17], %s5043_s5  ;;  %s3419_s6 = sshll.u32 %s5040_s27, 6 }
 0x1b3   : > { %s791_s4 = sshll.u32 %s784_s23, 4  ;;  %s5336_s4 = int_to_ptr.vmem [resolvable:$true] %s791_s4 }
 0x1b6   : > { %s5333_s10 = scalar_lea.hbm %s6060_s20, %s5046_s21  ;;  %s4398_s25 = scalar_lea.hbm %s6060_s20, 512 }
 0x1b7   : > { %s4394_s7 = scalar_lea.hbm %s5333_s10, 256  ;;  %p4399_p1 = scmp.lt.u32.totalorder %s5333_s10, %s6060_s20 }
 0x1b8   : > { %p4395_p12 = scmp.ne.s32.totalorder %s5333_s10, %s4394_s7  ;;  %p4400_p13 = scmp.lt.u32.totalorder %s4398_s25, %s4394_s7 }
 0x1b9   : > { %p4402_p6 = scmp.lt.u32.totalorder %s4394_s7, %s5333_s10 }
 0x1ba   : > { %p4396_p3 = pnand %p4395_p12, %p6052_p0  ;;  %p4401_p2 = por %p4400_p13, %p4399_p1 }
 0x1bc   : > { %p4397_p10 = pneg %p4396_p3  ;;  %p4403_p4 = por %p4402_p6, %p4401_p2 }
 0x1be   : > { %p4404_p7 = pnand %p4403_p4, %p4397_p10 }
 0x1c0   : > { %4407 = shalt.err (!%p4404_p7)
}
 0x1c1   : > { %s4408_s5 = scalar_lea.vmem %s5336_s4, 256  ;;  %s4732_s18 = smov [#allocation17]  }
 0x1c2   : > { %p4409_p5 = scmp.ne.s32.totalorder %s5336_s4, %s4408_s5  ;;  %s4412_s23 = sshll.u32 %s4732_s18, 4  ;;  %s4413_s23 = int_to_ptr.vmem [resolvable:$false] %s4412_s23 }
 0x1c3   : > { %s4414_s0 = scalar_lea.vmem %s4413_s23, 512  ;;  %p4415_p8 = scmp.lt.s32.totalorder %s5336_s4, %s4413_s23 }
 0x1c4   : > { %p4410_p9 = pnand %p4409_p5, %p6052_p0  ;;  %p4416_p12 = scmp.lt.s32.totalorder %s4414_s0, %s4408_s5 }
 0x1c6   : > { %p4411_p11 = pneg %p4410_p9  ;;  %p4417_p3 = por %p4416_p12, %p4415_p8 }
 0x1c8   : > { %p4418_p1 = pnand %p4417_p3, %p4411_p11 }
 0x1ca   : > { %4421 = shalt.err (!%p4418_p1)
}
 0x1cb   : > { %s6061_s7 = scalar_lea.sflag [#allocation16], %s5037_s24  ;;  %s3510_s16 = sshll.u32 %s4706_s3, 10 }
 0x1cc   : > { %3786 = dma.hbm_to_vmem [thread:$0]  (%p6052_p0), %s5333_s10, 256, %s5336_s4, %s6061_s7, %s6058_s12, %s6058_s12, %s6057_s1  }
 0x1cd   : > { %s6062_s8 = sld [smem:[#allocation65_spill]]  ;;  %s826_s18 = scalar_lea.vmem [#allocation20], %s3419_s6 }
 0x1ce   : > { %s833_s23 = sshll.u32 %s826_s18, 4  ;;  %s5373_s23 = int_to_ptr.vmem [resolvable:$true] %s833_s23 }
 0x1d3   : > { %s5369_s5 = scalar_lea.hbm %s6062_s8, %s3510_s16  ;;  %s4426_s7 = scalar_lea.hbm %s6062_s8, 2048 }
 0x1d4   : > { %s4422_s0 = scalar_lea.hbm %s5369_s5, 1024  ;;  %p4427_p6 = scmp.lt.u32.totalorder %s5369_s5, %s6062_s8 }
 0x1d5   : > { %p4423_p10 = scmp.ne.s32.totalorder %s5369_s5, %s4422_s0  ;;  %p4428_p4 = scmp.lt.u32.totalorder %s4426_s7, %s4422_s0 }
 0x1d6   : > { %p4430_p5 = scmp.lt.u32.totalorder %s4422_s0, %s5369_s5 }
 0x1d7   : > { %p4424_p13 = pnand %p4423_p10, %p6052_p0  ;;  %p4429_p7 = por %p4428_p4, %p4427_p6 }
 0x1d9   : > { %p4425_p2 = pneg %p4424_p13  ;;  %p4431_p9 = por %p4430_p5, %p4429_p7 }
 0x1db   : > { %p4432_p11 = pnand %p4431_p9, %p4425_p2 }
 0x1dd   : > { %4435 = shalt.err (!%p4432_p11)
}
 0x1de   : > { %s4436_s6 = scalar_lea.vmem %s5373_s23, 1024  ;;  %s4733_s21 = smov [#allocation20]  }
 0x1df   : > { %p4437_p8 = scmp.ne.s32.totalorder %s5373_s23, %s4436_s6  ;;  %s4440_s18 = sshll.u32 %s4733_s21, 4  ;;  %s4441_s18 = int_to_ptr.vmem [resolvable:$false] %s4440_s18 }
 0x1e0   : > { %s4442_s4 = scalar_lea.vmem %s4441_s18, 2048  ;;  %p4443_p1 = scmp.lt.s32.totalorder %s5373_s23, %s4441_s18 }
 0x1e1   : > { %p4438_p12 = pnand %p4437_p8, %p6052_p0  ;;  %p4444_p10 = scmp.lt.s32.totalorder %s4442_s4, %s4436_s6 }
 0x1e3   : > { %p4439_p3 = pneg %p4438_p12  ;;  %p4445_p13 = por %p4444_p10, %p4443_p1 }
 0x1e5   : > { %p4446_p6 = pnand %p4445_p13, %p4439_p3 }
 0x1e7   : > { %4449 = shalt.err (!%p4446_p6)
}
 0x1e8   : > { %s6063_s0 = scalar_lea.sflag [#allocation19], %s5037_s24  ;;  %s6064_s16 = sld [smem:[#allocation66_spill]] }
 0x1e9   : > { %3788 = dma.hbm_to_vmem [thread:$0]  (%p6052_p0), %s5369_s5, 1024, %s5373_s23, %s6063_s0, %s6058_s12, %s6058_s12, %s6057_s1  }
 0x1ea   : > { %s863_s6 = scalar_lea.vmem [#allocation23], %s5040_s27 }
 0x1eb   : > { %s870_s21 = sshll.u32 %s863_s6, 4  ;;  %s871_s21 = int_to_ptr.vmem [resolvable:$true] %s870_s21 }
 0x1ee   : > { %s5405_s25 = scalar_lea.hbm %s6064_s16, %s5157_s2  ;;  %s4454_s1 = scalar_lea.hbm %s6064_s16, 32 }
 0x1ef   : > { %s4450_s18 = scalar_lea.hbm %s5405_s25, 16  ;;  %p4455_p5 = scmp.lt.u32.totalorder %s5405_s25, %s6064_s16 }
 0x1f0   : > { %p4451_p2 = scmp.ne.s32.totalorder %s5405_s25, %s4450_s18  ;;  %p4456_p9 = scmp.lt.u32.totalorder %s4454_s1, %s4450_s18 }
 0x1f1   : > { %p4458_p8 = scmp.lt.u32.totalorder %s4450_s18, %s5405_s25 }
 0x1f2   : > { %p4452_p4 = pnand %p4451_p2, %p6052_p0  ;;  %p4457_p11 = por %p4456_p9, %p4455_p5 }
 0x1f4   : > { %p4453_p7 = pneg %p4452_p4  ;;  %p4459_p12 = por %p4458_p8, %p4457_p11 }
 0x1f6   : > { %p4460_p3 = pnand %p4459_p12, %p4453_p7 }
 0x1f8   : > { %4463 = shalt.err (!%p4460_p3)
}
 0x1f9   : > { %s4464_s23 = scalar_lea.vmem %s871_s21, 16  ;;  %s4734_s0 = smov [#allocation23]  }
 0x1fa   : > { %p4465_p1 = scmp.ne.s32.totalorder %s871_s21, %s4464_s23  ;;  %s4468_s10 = sshll.u32 %s4734_s0, 4  ;;  %s4469_s10 = int_to_ptr.vmem [resolvable:$false] %s4468_s10 }
 0x1fb   : > { %s4470_s8 = scalar_lea.vmem %s4469_s10, 32  ;;  %p4471_p6 = scmp.lt.s32.totalorder %s871_s21, %s4469_s10 }
 0x1fc   : > { %p4466_p10 = pnand %p4465_p1, %p6052_p0  ;;  %p4472_p2 = scmp.lt.s32.totalorder %s4470_s8, %s4464_s23 }
 0x1fe   : > { %p4467_p13 = pneg %p4466_p10  ;;  %p4473_p4 = por %p4472_p2, %p4471_p6 }
 0x200   : > { %p4474_p5 = pnand %p4473_p4, %p4467_p13 }
 0x202   : > { %4477 = shalt.err (!%p4474_p5)
}
 0x203   : > { %s6065_s7 = scalar_lea.sflag [#allocation22], %s5037_s24  ;;  %s6066_s4 = sld [smem:[#allocation67_spill]] }
 0x204   : > { %3790 = dma.hbm_to_vmem [thread:$0]  (%p6052_p0), %s5405_s25, 16, %s871_s21, %s6065_s7  }
 0x205   : > { %s897_s12 = scalar_lea.vmem [#allocation26], %s5040_s27 }
 0x206   : > { %s904_s5 = sshll.u32 %s897_s12, 4  ;;  %s905_s5 = int_to_ptr.vmem [resolvable:$true] %s904_s5 }
 0x209   : > { %s5431_s1 = scalar_lea.hbm %s6066_s4, %s5157_s2  ;;  %s4482_s25 = scalar_lea.hbm %s6066_s4, 32 }
 0x20a   : > { %s4478_s23 = scalar_lea.hbm %s5431_s1, 16  ;;  %p4483_p8 = scmp.lt.u32.totalorder %s5431_s1, %s6066_s4 }
 0x20b   : > { %p4479_p7 = scmp.ne.s32.totalorder %s5431_s1, %s4478_s23  ;;  %p4484_p12 = scmp.lt.u32.totalorder %s4482_s25, %s4478_s23 }
 0x20c   : > { %p4486_p1 = scmp.lt.u32.totalorder %s4478_s23, %s5431_s1 }
 0x20d   : > { %p4480_p9 = pnand %p4479_p7, %p6052_p0  ;;  %p4485_p3 = por %p4484_p12, %p4483_p8 }
 0x20f   : > { %p4481_p11 = pneg %p4480_p9  ;;  %p4487_p10 = por %p4486_p1, %p4485_p3 }
 0x211   : > { %p4488_p13 = pnand %p4487_p10, %p4481_p11 }
 0x213   : > { %4491 = shalt.err (!%p4488_p13)
}
 0x214   : > { %s4492_s7 = scalar_lea.vmem %s905_s5, 16  ;;  %s4735_s6 = smov [#allocation26]  }
 0x215   : > { %p4493_p6 = scmp.ne.s32.totalorder %s905_s5, %s4492_s7  ;;  %s4496_s18 = sshll.u32 %s4735_s6, 4  ;;  %s4497_s18 = int_to_ptr.vmem [resolvable:$false] %s4496_s18 }
 0x216   : > { %s4498_s12 = scalar_lea.vmem %s4497_s18, 32  ;;  %p4499_p5 = scmp.lt.s32.totalorder %s905_s5, %s4497_s18 }
 0x217   : > { %p4494_p2 = pnand %p4493_p6, %p6052_p0  ;;  %p4500_p7 = scmp.lt.s32.totalorder %s4498_s12, %s4492_s7 }
 0x219   : > { %p4495_p4 = pneg %p4494_p2  ;;  %p4501_p9 = por %p4500_p7, %p4499_p5 }
 0x21b   : > { %p4502_p8 = pnand %p4501_p9, %p4495_p4 }
 0x21d   : > { %4505 = shalt.err (!%p4502_p8)
}
 0x21e   : > { %s6067_s23 = scalar_lea.sflag [#allocation25], %s5037_s24  ;;  %s6068_s25 = sld [smem:[#allocation68_spill]] }
 0x21f   : > { %3792 = dma.hbm_to_vmem [thread:$0]  (%p6052_p0), %s5431_s1, 16, %s905_s5, %s6067_s23  }
 0x220   : > { %s931_s7 = scalar_lea.vmem [#allocation29], %s5040_s27 }
 0x221   : > { %s938_s6 = sshll.u32 %s931_s7, 4  ;;  %s939_s6 = int_to_ptr.vmem [resolvable:$true] %s938_s6 }
 0x224   : > { %s6069_s21 = smov %s6068_s25  ;;  %s5457_s8 = scalar_lea.hbm %s6068_s25, %s5157_s2 }
 0x225   : > { %s4506_s18 = scalar_lea.hbm %s5457_s8, 16  ;;  %s4510_s1 = scalar_lea.hbm %s6069_s21, 32 }
 0x226   : > { %p4507_p11 = scmp.ne.s32.totalorder %s5457_s8, %s4506_s18  ;;  %p4511_p1 = scmp.lt.u32.totalorder %s5457_s8, %s6069_s21 }
 0x227   : > { %p4512_p10 = scmp.lt.u32.totalorder %s4510_s1, %s4506_s18  ;;  %p4514_p6 = scmp.lt.u32.totalorder %s4506_s18, %s5457_s8 }
 0x228   : > { %p4508_p12 = pnand %p4507_p11, %p6052_p0 }
 0x229   : > { %p4513_p13 = por %p4512_p10, %p4511_p1 }
 0x22a   : > { %p4509_p3 = pneg %p4508_p12 }
 0x22b   : > { %p4515_p2 = por %p4514_p6, %p4513_p13 }
 0x22d   : > { %p4516_p4 = pnand %p4515_p2, %p4509_p3 }
 0x22f   : > { %4519 = shalt.err (!%p4516_p4)
}
 0x230   : > { %s4520_s0 = scalar_lea.vmem %s939_s6, 16  ;;  %s4736_s10 = smov [#allocation29]  }
 0x231   : > { %p4521_p5 = scmp.ne.s32.totalorder %s939_s6, %s4520_s0  ;;  %s4524_s25 = sshll.u32 %s4736_s10, 4  ;;  %s4525_s25 = int_to_ptr.vmem [resolvable:$false] %s4524_s25 }
 0x232   : > { %s4526_s4 = scalar_lea.vmem %s4525_s25, 32  ;;  %p4527_p8 = scmp.lt.s32.totalorder %s939_s6, %s4525_s25 }
 0x233   : > { %p4522_p7 = pnand %p4521_p5, %p6052_p0  ;;  %p4528_p11 = scmp.lt.s32.totalorder %s4526_s4, %s4520_s0 }
 0x235   : > { %p4523_p9 = pneg %p4522_p7  ;;  %p4529_p12 = por %p4528_p11, %p4527_p8 }
 0x237   : > { %p4530_p1 = pnand %p4529_p12, %p4523_p9 }
 0x239   : > { %4533 = shalt.err (!%p4530_p1)
}
 0x23a   : > { %s6070_s7 = scalar_lea.sflag [#allocation28], %s5037_s24  ;;  %s6071_s1 = sld [smem:[#allocation69_spill]] }
 0x23b   : > { %3794 = dma.hbm_to_vmem [thread:$0]  (%p6052_p0), %s5457_s8, 16, %s939_s6, %s6070_s7  }
 0x23c   : > { %s965_s23 = scalar_lea.vmem [#allocation32], %s5040_s27 }
 0x23d   : > { %s972_s0 = sshll.u32 %s965_s23, 4  ;;  %s973_s0 = int_to_ptr.vmem [resolvable:$true] %s972_s0 }
 0x240   : > { %s5483_s5 = scalar_lea.hbm %s6071_s1, %s5157_s2  ;;  %s4538_s8 = scalar_lea.hbm %s6071_s1, 32 }
 0x241   : > { %s4534_s10 = scalar_lea.hbm %s5483_s5, 16  ;;  %p4539_p6 = scmp.lt.u32.totalorder %s5483_s5, %s6071_s1 }
 0x242   : > { %p4535_p3 = scmp.ne.s32.totalorder %s5483_s5, %s4534_s10  ;;  %p4540_p2 = scmp.lt.u32.totalorder %s4538_s8, %s4534_s10 }
 0x243   : > { %p4542_p5 = scmp.lt.u32.totalorder %s4534_s10, %s5483_s5 }
 0x244   : > { %p4536_p10 = pnand %p4535_p3, %p6052_p0  ;;  %p4541_p4 = por %p4540_p2, %p4539_p6 }
 0x246   : > { %p4537_p13 = pneg %p4536_p10  ;;  %p4543_p7 = por %p4542_p5, %p4541_p4 }
 0x248   : > { %p4544_p9 = pnand %p4543_p7, %p4537_p13 }
 0x24a   : > { %4547 = shalt.err (!%p4544_p9)
}
 0x24b   : > { %s4548_s18 = scalar_lea.vmem %s973_s0, 16  ;;  %s4737_s12 = smov [#allocation32]  }
 0x24c   : > { %p4549_p8 = scmp.ne.s32.totalorder %s973_s0, %s4548_s18  ;;  %s4552_s23 = sshll.u32 %s4737_s12, 4  ;;  %s4553_s23 = int_to_ptr.vmem [resolvable:$false] %s4552_s23 }
 0x24d   : > { %s4554_s25 = scalar_lea.vmem %s4553_s23, 32  ;;  %p4555_p1 = scmp.lt.s32.totalorder %s973_s0, %s4553_s23 }
 0x24e   : > { %p4550_p11 = pnand %p4549_p8, %p6052_p0  ;;  %p4556_p3 = scmp.lt.s32.totalorder %s4554_s25, %s4548_s18 }
 0x250   : > { %p4551_p12 = pneg %p4550_p11  ;;  %p4557_p10 = por %p4556_p3, %p4555_p1 }
 0x252   : > { %p4558_p2 = pnand %p4557_p10, %p4551_p12 }
 0x254   : > { %4561 = shalt.err (!%p4558_p2)
}
 0x255   : > { %s6072_s10 = scalar_lea.sflag [#allocation31], %s5037_s24  ;;  %s6073_s6 = sld [smem:[#allocation71_spill]] }
 0x256   : > { %3796 = dma.hbm_to_vmem [thread:$0]  (%p6052_p0), %s5483_s5, 16, %s973_s0, %s6072_s10  }
 0x257   : > { %s999_s18 = scalar_lea.vmem [#allocation35], %s5040_s27 }
 0x258   : > { %s1006_s12 = sshll.u32 %s999_s18, 4  ;;  %s1007_s12 = int_to_ptr.vmem [resolvable:$true] %s1006_s12 }
 0x25b   : > { %s5509_s7 = scalar_lea.hbm %s6073_s6, %s5157_s2  ;;  %s4566_s5 = scalar_lea.hbm %s6073_s6, 32 }
 0x25c   : > { %s4562_s23 = scalar_lea.hbm %s5509_s7, 16  ;;  %p4567_p5 = scmp.lt.u32.totalorder %s5509_s7, %s6073_s6 }
 0x25d   : > { %p4563_p13 = scmp.ne.s32.totalorder %s5509_s7, %s4562_s23  ;;  %p4568_p7 = scmp.lt.u32.totalorder %s4566_s5, %s4562_s23 }
 0x25e   : > { %p4570_p8 = scmp.lt.u32.totalorder %s4562_s23, %s5509_s7 }
 0x25f   : > { %p4564_p6 = pnand %p4563_p13, %p6052_p0  ;;  %p4569_p9 = por %p4568_p7, %p4567_p5 }
 0x261   : > { %p4565_p4 = pneg %p4564_p6  ;;  %p4571_p11 = por %p4570_p8, %p4569_p9 }
 0x263   : > { %p4572_p12 = pnand %p4571_p11, %p4565_p4 }
 0x265   : > { %4575 = shalt.err (!%p4572_p12)
}
 0x266   : > { %s4576_s27 = scalar_lea.vmem %s1007_s12, 16  ;;  %s4738_s2 = smov [#allocation35]  }
 0x267   : > { %p4577_p1 = scmp.ne.s32.totalorder %s1007_s12, %s4576_s27  ;;  %s4580_s4 = sshll.u32 %s4738_s2, 4  ;;  %s4581_s4 = int_to_ptr.vmem [resolvable:$false] %s4580_s4 }
 0x268   : > { %s4582_s1 = scalar_lea.vmem %s4581_s4, 32  ;;  %p4583_p2 = scmp.lt.s32.totalorder %s1007_s12, %s4581_s4 }
 0x269   : > { %p4578_p3 = pnand %p4577_p1, %p6052_p0  ;;  %p4584_p13 = scmp.lt.s32.totalorder %s4582_s1, %s4576_s27 }
 0x26b   : > { %p4579_p10 = pneg %p4578_p3  ;;  %p4585_p6 = por %p4584_p13, %p4583_p2 }
 0x26d   : > { %p4586_p5 = pnand %p4585_p6, %p4579_p10 }
 0x26f   : > { %4589 = shalt.err (!%p4586_p5)
}
 0x270   : > { %s6074_s8 = scalar_lea.sflag [#allocation34], %s5037_s24 }
 0x271   : > { %3798 = dma.hbm_to_vmem [thread:$0]  (%p6052_p0), %s5509_s7, 16, %s1007_s12, %s6074_s8  }
 0x272 PF: > { %s6075_s18 = sld [smem:[#allocation55_spill]] }
 0x278   : > { %p6076_p4 = scmp.ne.s32.totalorder %s6075_s18, 0 }
 0x279   : > { %s6077_s23 = sld [smem:[#allocation51_spill]] (!%p6076_p4) }
 0x27a   : > { %1015 = sbr.rel (%p6076_p4) target bundleno = 4982 (0x1376), region = 104 }
 0x27f   : > { %p6078_p7 = scmp.eq.s32.totalorder (!%p6076_p4), %s6077_s23, 0 }
 0x281   : > { %4641 = dma.done.wait (%p6078_p7), [#allocation4], 256   ;;  %p6079_p9 = pmov %p6078_p7 }
 0x282   : > { %p6080_p8 = pmov %p6078_p7 }
 0x283   : > { %4643 = vsyncadd (%p6079_p9), [#allocation4], 4294967040 }
 0x284   : > { %4645 = dma.done.wait (%p6080_p8), [#allocation7], 288   ;;  %p6081_p11 = pmov %p6078_p7 }
 0x285   : > { %p6082_p12 = pmov %p6078_p7 }
 0x286   : > { %4647 = vsyncadd (%p6081_p11), [#allocation7], 4294967008 }
 0x287   : > { %4649 = dma.done.wait (%p6082_p12), [#allocation10], 768   ;;  %p6083_p0 = pmov %p6078_p7 }
 0x288   : > { %s6084_s30 = sld [smem:[#allocation49_spill]]  ;;  %s6085_s24 = sld [smem:[#allocation53_spill]] }
 0x289   : > { %4651 = vsyncadd (%p6083_p0), [#allocation10], 4294966528  ;;  %s5546_s7 = sand.u32 1, %s6077_s23  }
 0x28a   : > { %s1038_s5 = scalar_lea.sflag [#allocation13], %s5546_s7 }
 0x28e   : > { %s5549_s12 = sand.u32 1, %s6084_s30   ;;  %p6086_p1 = scmp.ne.s32.totalorder %s6085_s24, 0 }
 0x28f   : > { %s5552_s25 = sshll.u32 %s5549_s12, 4 }
 0x290   : > { %s1041_s0 = scalar_lea.vmem [#allocation12], %s5552_s25 }
 0x291   : > { %4653 = dma.done.wait (%p6086_p1), %s1038_s5, 512  }
 0x292   : > { %4655 = vsyncadd (%p6086_p1), %s1038_s5, 4294966784  ;;  %s1050_s10 = scalar_lea.vmem [#allocation14], %s5552_s25  ;;  %s1056_s27 = scalar_lea.sflag [#allocation16], %s5546_s7 }
 0x293   : > { %s1059_s2 = scalar_lea.vmem [#allocation15], %s5552_s25 }
 0x294   : > { %4657 = dma.done.wait (%p6086_p1), %s1056_s27, 512  }
 0x295   : > { %4659 = vsyncadd (%p6086_p1), %s1056_s27, 4294966784  ;;  %s1074_s1 = scalar_lea.sflag [#allocation19], %s5546_s7 }
 0x296   : > { %4661 = dma.done.wait (%p6086_p1), %s1074_s1, 1280  }
 0x297   : > { %4663 = vsyncadd (%p6086_p1), %s1074_s1, 4294966016  ;;  %s3443_s18 = sshll.u32 %s5549_s12, 6  ;;  %s1092_s30 = scalar_lea.sflag [#allocation22], %s5546_s7 }
 0x298   : > { %s5575_s23 = scalar_lea.vmem [#allocation20], %s3443_s18 }
 0x299   : > { %4665 = dma.done.wait (%p6086_p1), %s1092_s30, 32  }
 0x29a   : > { %4667 = vsyncadd (%p6086_p1), %s1092_s30, 4294967264  ;;  %s1108_s1 = scalar_lea.sflag [#allocation25], %s5546_s7 }
 0x29b   : > { %4669 = dma.done.wait (%p6086_p1), %s1108_s1, 32  }
 0x29c   : > { %4671 = vsyncadd (%p6086_p1), %s1108_s1, 4294967264  ;;  %s1124_s4 = scalar_lea.sflag [#allocation28], %s5546_s7 }
 0x29d   : > { %4673 = dma.done.wait (%p6086_p1), %s1124_s4, 32  }
 0x29e   : > { %4675 = vsyncadd (%p6086_p1), %s1124_s4, 4294967264  ;;  %s1140_s8 = scalar_lea.sflag [#allocation31], %s5546_s7  ;;  %s1142_s27 = scalar_lea.vmem [#allocation30], %s5549_s12 }
 0x29f   : > { %4677 = dma.done.wait (%p6086_p1), %s1140_s8, 32  }
 0x2a0   : > { %4679 = vsyncadd (%p6086_p1), %s1140_s8, 4294967264  ;;  %s1150_s1 = scalar_lea.vmem [#allocation32], %s5549_s12  ;;  %s1156_s5 = scalar_lea.sflag [#allocation34], %s5546_s7 }
 0x2a1   : > { %s1158_s18 = scalar_lea.vmem [#allocation33], %s5549_s12 }
 0x2a2   : > { %4681 = dma.done.wait (%p6086_p1), %s1156_s5, 32  }
 0x2a3   : > { %4683 = vsyncadd (%p6086_p1), %s1156_s5, 4294967264  ;;  %s1166_s4 = scalar_lea.vmem [#allocation35], %s5549_s12  ;;  %s6087_s30 = sld [smem:[#allocation50_spill]] }
 0x2a9   : > { %p3444_p3 = scmp.ne.s32.totalorder %s6087_s30, 0 }
 0x2aa   : > { %v1292_v0 = vld [vmem:[#allocation3] sm:$0xff] (!%p3444_p3)  ;;  %vm1294_vm0 = vcmask (!%p3444_p3), 261120   ;;  %v1293_v1 = vld [vmem:[#allocation3 + $0x8] sm:$0xff] (!%p3444_p3) }
 0x2ab   : > { %1291 = sbr.rel (%p3444_p3) target bundleno = 690 (0x2b2), region = 192  ;;  %1295 = vst.msk [vmem:[#allocation2] sm:$0xff] (!%p3444_p3), %vm1294_vm0, %v1292_v0  ;;  %1296 = vst.msk [vmem:[#allocation2 + $0x8] sm:$0xff] (!%p3444_p3), %vm1294_vm0, %v1293_v1 }
 0x2b2 PF: > { %v3940_v2 = vld [vmem:[%s1041_s0] sm:$0xff]   ;;  %v4739_v3 = vmov 0.0   ;;  %v3942_v5 = vld [vmem:[%s1041_s0 + $0x8] sm:$0xff]   ;;  %vm4740_vm1 = vmmov 0   ;;  %vm1323_vm2 = vcmask 261120   ;;  %s6088_s24 = scalar_lea.vmem [#allocation21], %s5549_s12 }
 0x2b3   : > { %3579 = vmatprep.subr.bf16.mxu0 %v4739_v3  ;;  %3587 = vmatprep.subr.bf16.mxu1 %v4739_v3  ;;  %v3941_v4 = vld [vmem:[%s1050_s10] sm:$0xff]   ;;  %v3943_v6 = vld [vmem:[%s1050_s10 + $0x8] sm:$0xff]   ;;  %s6089_s7 = scalar_lea.vmem [#allocation23], %s5549_s12  ;;  %s6090_s0 = scalar_lea.vmem [#allocation24], %s5549_s12  ;;  %vm1820_vm3 = vcmask 1043456   ;;  %vm1700_vm4 = vcmask 64512  }
 0x2b4   : > { %3580 = vmatpush3.bf16.msra.mxu0 %v3940_v2  ;;  %3583 = vmatprep.mubr.msk.bf16.mxu0 %vm4740_vm1, %v4739_v3  ;;  %v5629_v7 = vld [vmem:[#allocation2] sm:$0xff]  ;;  %v5631_v8 = vld [vmem:[#allocation2 + $0x8] sm:$0xff]  ;;  %v1502_v15 = vld [vmem:[#allocation11 + $0x10] sm:$0xff]  ;;  %s4741_s10 = smov 120   ;;  %s4743_s8 = smov 104   ;;  %vm2602_vm5 = vcmask 130048  }
 0x2b5   : > { %3588 = vmatpush3.bf16.msra.mxu1 %v3941_v4  ;;  %3581 = vmatprep.subr.bf16.mxu0 %v4739_v3  ;;  %v1299_v9 = vpack.c.bf16 %v5631_v8, %v5629_v7  ;;  %v3944_v10 = vld [vmem:[%s1059_s2] sm:$0xff]   ;;  %v1501_v12 = vld [vmem:[#allocation11 + $0x8] sm:$0xff]  ;;  %v1503_v16 = vld [vmem:[#allocation11 + $0x18] sm:$0xff]  ;;  %s4744_s5 = smov 8   ;;  %s4745_s30 = smov 16   ;;  %vm2605_vm6 = vcmask 195584  }
 0x2b6   : > { %3589 = vmatprep.subr.bf16.mxu1 %v4739_v3  ;;  %3591 = vmatprep.mubr.msk.bf16.mxu1 %vm4740_vm1, %v4739_v3  ;;  %v1500_v11 = vld [vmem:[#allocation11] sm:$0xff]  ;;  %v3945_v13 = vld [vmem:[%s1059_s2 + $0x8] sm:$0xff]   ;;  %v3761_v17 = vpack.c.bf16 %v1503_v16, %v1502_v15  ;;  %v1498_v43 = vld [vmem:[#allocation9] sm:$0xff]  ;;  %s4742_s2 = smov 112  }
 0x2b7   : > { %v3757_v14 = vpack.c.bf16 %v1501_v12, %v1500_v11  ;;  %v3445_v18 = vld [vmem:[%s6088_s24] ss:$0 sm:$0xff]  ;;  %v1497_v42 = vld [vmem:[#allocation8 + $0x8] sm:$0xff]  ;;  %v1496_v44 = vld [vmem:[#allocation8] sm:$0xff]  ;;  %s6091_s24 = scalar_lea.vmem [#allocation17], %s5552_s25 }
 0x2b8   : > { %3582 = vmatpush3.bf16.msra.mxu0 %v3942_v5  ;;  %v3449_v19 = vld [vmem:[%s6089_s7] ss:$0 sm:$0xff]  ;;  %s6092_s7 = smov %s6091_s24 }
 0x2b9   : > { %3590 = vmatpush3.bf16.msra.mxu1 %v3943_v6  ;;  %3595 = vmatprep.subr.bf16.mxu0 %v4739_v3  ;;  %v3453_v32 = vld [vmem:[%s6090_s0] ss:$0 sm:$0xff]  ;;  %s4746_s0 = smov 24  }
 0x2ba   : > { %3758 = vmatprep.subr.bf16.mxu1 %v3757_v14  ;;  %v1499_v41 = vld [vmem:[#allocation9 + $0x8] sm:$0xff] }
 0x2bb   : > { %3584 = vmatmul.mubr.msk.bf16.vlgmr.msra.gmra.mrb[0].mxu0 %vm1323_vm2, %v1299_v9 }
 0x2bc   : > { %3592 = vmatmul.mubr.msk.bf16.vlgmr.msra.gmra.mrb[0].mxu1 %vm1323_vm2, %v1299_v9  ;;  %3596 = vmatpush3.bf16.msra.mxu0 %v3944_v10  ;;  %v5696_v10 = vld [vmem:[#allocation6] ss:$0 sm:$0xff] }
 0x2bd   : > { %3597 = vmatprep.subr.bf16.mxu0 %v4739_v3  ;;  %3599 = vmatprep.mubr.msk.bf16.mxu0 %vm4740_vm1, %v4739_v3 }
 0x2be   : > { %3760 = vmatpush3.bf16.msra.mxu1 %v3757_v14 }
 0x2bf   : > { %3762 = vmatprep.subr.bf16.mxu1 %v3761_v17 }
 0x2c0   : > { %3598 = vmatpush3.bf16.msra.mxu0 %v3945_v13 }
 0x2c1   : > { %3766 = vmatprep.subr.bf16.mxu0 %v3757_v14 }
 0x2c2   : > { %3764 = vmatpush3.bf16.msra.mxu1 %v3761_v17 }
 0x2c3   : > { %3600 = vmatmul.mubr.msk.bf16.vlgmr.msra.gmra.mrb[4].mxu0 %vm1323_vm2, %v1299_v9  ;;  %3637 = vmatprep.subr.bf16.mxu1 %v4739_v3 }
 0x2c4   : > { %3768 = vmatpush3.bf16.msra.mxu0 %v3757_v14 }
 0x2c5   : > { %3770 = vmatprep.subr.bf16.mxu0 %v3761_v17 }
 0x2c8   : > { %3772 = vmatpush3.bf16.msra.mxu0 %v3761_v17  ;;  %v5700_v17 = vld [vmem:[#allocation6 + $0x1] ss:$0 sm:$0xff] }
 0x2c9   : > { %3625 = vmatprep.subr.bf16.mxu0 %v4739_v3 }
 0x38e   : > { %v1361_v20 = vpop.f32.mrb[0].mxu0 }
 0x38f   : > { %v1362_v21 = vadd.f32 %v3445_v18, %v1361_v20  ;;  %v1425_v22 = vpop.f32.mrb[0].mxu1  ;;  %v3585_v23 = vpop.f32.mrb[1].mxu0 }
 0x390   : > { %v1426_v24 = vadd.f32 %v3449_v19, %v1425_v22  ;;  %v3593_v25 = vpop.f32.mrb[1].mxu1  ;;  %v1364_v26 = vpop.f32.mrb[2].mxu0 }
 0x391   : > { %v1365_v27 = vadd.f32 %v3445_v18, %v1364_v26  ;;  %v1428_v28 = vpop.f32.mrb[2].mxu1  ;;  %3611 = vmatprep.mubr.msk.f32.mxu1 %vm1323_vm2, %v1362_v21  ;;  %v3586_v29 = vpop.f32.mrb[3].mxu0  ;;  %v1504_v50 = vmul.f32 %v1496_v44, %v1362_v21 }
 0x392   : > { %v1429_v30 = vadd.f32 %v3449_v19, %v1428_v28  ;;  %v3594_v31 = vpop.f32.mrb[3].mxu1  ;;  %3622 = vmatprep.mubr.msk.f32.mxu0 %vm1323_vm2, %v1426_v24  ;;  %v1591_v55 = vmul.f32 %v1496_v44, %v1426_v24 }
 0x393   : > { %3612 = vmatmul.mubr.msk.f32.vlgmr.msra.gmra.mrb[4].mxu1 %vm1323_vm2, %v1365_v27  ;;  %v1505_v46 = vmul.f32 %v1497_v42, %v1365_v27 }
 0x394   : > { %3623 = vmatmul.mubr.msk.f32.vlgmr.msra.gmra.mrb[8].mxu0 %vm1323_vm2, %v1429_v30  ;;  %3639 = vmatprep.mubr.msk.bf16.mxu1 %vm4740_vm1, %v4739_v3  ;;  %v1592_v51 = vmul.f32 %v1497_v42, %v1429_v30 }
 0x395   : > { %3627 = vmatprep.mubr.msk.bf16.mxu0 %vm4740_vm1, %v4739_v3 }
 0x396   : > { %v1489_v33 = vpop.f32.mrb[4].mxu0 }
 0x397   : > { %v1490_v34 = vadd.f32 %v3453_v32, %v1489_v33  ;;  %v3601_v35 = vpop.f32.mrb[5].mxu0 }
 0x398   : > { %v1492_v36 = vpop.f32.mrb[6].mxu0 }
 0x399   : > { %v5662_v37 = vpack.c.bf16 %v1490_v34, %v1490_v34  ;;  %v1493_v38 = vadd.f32 %v3453_v32, %v1492_v36  ;;  %v3602_v39 = vpop.f32.mrb[7].mxu0 }
 0x39b   : > { %v1822_v40 = vsel %vm1820_vm3, %v5662_v37, 0  ;;  %v5685_v5 = vpack.c.bf16 %v1493_v38, %v1493_v38 }
 0x39c   : > { %3638 = vmatpush3.bf16.msra.mxu1 %v1822_v40 }
 0x39d   : > { %3649 = vmatprep.subr.bf16.mxu1 %v4739_v3  ;;  %v1868_v9 = vsel %vm1820_vm3, %v5685_v5, 0 }
 0x466   : > { %v3613_v45 = vpop.f32.mrb[4].mxu1 }
 0x467   : > { %v1588_v47 = vmul.f32 %v3613_v45, %v1499_v41  ;;  %v3624_v48 = vpop.f32.mrb[8].mxu0  ;;  %v1578_v49 = vpop.f32.mrb[5].mxu1 }
 0x468   : > { %v1675_v52 = vmul.f32 %v3624_v48, %v1499_v41  ;;  %v1587_v53 = vmul.f32 %v1578_v49, %v1498_v43  ;;  %v1665_v54 = vpop.f32.mrb[9].mxu0 }
 0x469   : > { %v1590_v56 = vadd.f32 %v1588_v47, %v1505_v46  ;;  %v1674_v57 = vmul.f32 %v1665_v54, %v1498_v43 }
 0x46a   : > { %v1677_v58 = vadd.f32 %v1675_v52, %v1592_v51  ;;  %v1589_v59 = vadd.f32 %v1587_v53, %v1504_v50 }
 0x46b   : > { %v1676_v60 = vadd.f32 %v1674_v57, %v1591_v55  ;;  %v1679_v4 = vmul.f32 0.35355338, %v1590_v56 }
 0x46c   : > { %v5667_v61 = vpack.c.bf16 %v1677_v58, %v1677_v58  ;;  %v1678_v0 = vmul.f32 0.35355338, %v1589_v59 }
 0x46d   : > { %v5669_v62 = vpack.c.bf16 %v1676_v60, %v1676_v60  ;;  %v5687_v6 = vpack.c.bf16 %v1679_v4, %v1679_v4 }
 0x46e   : > { %1966 = vrot.lane.b32.xlu1 %v5667_v61, %s4741_s10  ;;  %v5676_v1 = vpack.c.bf16 %v1678_v0, %v1678_v0  ;;  %v1751_v2 = vsel %vm1700_vm4, %v5667_v61, 0 }
 0x46f   : > { %v1705_v63 = vsel %vm1700_vm4, %v5669_v62, 0 }
 0x470   : > { %3626 = vmatpush3.bf16.xpose.msra.mxu0 %v1705_v63 }
 0x471   : > { %3631 = vmatprep.subr.bf16.mxu0 %v4739_v3 }
 0x477   : > { %3628 = vmatmul.mubr.msk.bf16.vlgmr.msra.gmra.mrb[12].mxu0 %vm1700_vm4, %v5676_v1 }
 0x478   : > { %3632 = vmatpush3.bf16.xpose.msra.mxu0 %v1751_v2  ;;  %3633 = vmatprep.mubr.msk.bf16.mxu0 %vm4740_vm1, %v4739_v3 }
 0x479   : > { %3643 = vmatprep.subr.bf16.mxu0 %v4739_v3 }
 0x47f   : > { %3634 = vmatmul.mubr.msk.bf16.vlgmr.msra.gmra.mrb[16].mxu0 %vm1700_vm4, %v5687_v6 }
 0x480   : > { %3644 = vmatpush3.bf16.msra.mxu0 %v1868_v9  ;;  %3645 = vmatprep.mubr.msk.bf16.mxu0 %vm4740_vm1, %v4739_v3 }
 0x481   : > { %3655 = vmatprep.subr.bf16.mxu0 %v4739_v3 }
 0x4e0   : > { %v1967_v34 = vpop.permute.xlu1 %1966 }
 0x4e1   : > { %v1972_v47 = vsel %vm1700_vm4, %v1967_v34, 0 }
 0x54a   : > { %v1741_v11 = vpop.f32.mrb[12].mxu0 }
 0x54b   : > { %v1742_v12 = vadd.f32 %v5696_v10, %v1741_v11  ;;  %v3629_v13 = vpop.f32.mrb[13].mxu0 }
 0x54c   : > { %v1744_v14 = vpop.f32.mrb[14].mxu0 }
 0x54d   : > { %v3630_v15 = vpop.f32.mrb[15].mxu0  ;;  %v1793_v16 = vsel %vm1700_vm4, %v1742_v12, -inf }
 0x54e   : > { %1794 = vmax.xlane.f32.xlu0 %v1793_v16 }
 0x552   : > { %v1787_v18 = vpop.f32.mrb[16].mxu0 }
 0x553   : > { %v1788_v19 = vadd.f32 %v5700_v17, %v1787_v18  ;;  %v3635_v20 = vpop.f32.mrb[17].mxu0 }
 0x554   : > { %v1790_v21 = vpop.f32.mrb[18].mxu0 }
 0x555   : > { %v3636_v22 = vpop.f32.mrb[19].mxu0  ;;  %v1796_v23 = vsel %vm1700_vm4, %v1788_v19, -inf }
 0x556   : > { %1797 = vmax.xlane.f32.xlu0 %v1796_v23 }
 0x56c   : > { %1914 = vrot.lane.b32.xlu0 %v5669_v62, %s4741_s10 }
 0x5db   : > { %v1795_v24 = vpop.xlane.xlu0 %1794 }
 0x5dc   : > { %v1799_v25 = vsub.f32 %v1742_v12, %v1795_v24 }
 0x5de   : > { %v1801_v26 = vmul.f32 1.442695, %v1799_v25 }
 0x5e0   : > { %3958 = vpow2.f32 %v1801_v26 }
 0x5e3   : > { %v1798_v27 = vpop.xlane.xlu0 %1797 }
 0x5e4   : > { %v1800_v28 = vsub.f32 %v1788_v19, %v1798_v27 }
 0x5e6   : > { %v1803_v29 = vmul.f32 1.442695, %v1800_v28 }
 0x5e7   : > { %v1915_v40 = vpop.permute.xlu0 %1914 }
 0x5e8   : > { %3960 = vpow2.f32 %v1803_v29  ;;  %v1920_v42 = vsel %vm1700_vm4, %v1915_v40, 0 }
 0x5ea   : > { %v3959_v30 = vpop.eup %3958 }
 0x5eb   : > { %v1805_v31 = vsel %vm1700_vm4, %v3959_v30, 0.0 }
 0x5ec   : > { %1806 = vadd.xlane.f32.xlu1 %v1805_v31 }
 0x5f2   : > { %v3961_v32 = vpop.eup %3960 }
 0x5f3   : > { %v1808_v33 = vsel %vm1700_vm4, %v3961_v32, 0.0 }
 0x5f4   : > { %1809 = vadd.xlane.f32.xlu1 %v1808_v33 }
 0x605   : > { %1911 = vrot.lane.b32.xlu1 %v5676_v1, %s4741_s10 }
 0x609   : > { %1963 = vrot.lane.b32.xlu1 %v5687_v6, %s4741_s10 }
 0x679   : > { %v1807_v35 = vpop.xlane.xlu1 %1806 }
 0x67a   : > { %3962 = vrcp.f32 %v1807_v35 }
 0x681   : > { %v1810_v36 = vpop.xlane.xlu1 %1809 }
 0x682   : > { %3964 = vrcp.f32 %v1810_v36 }
 0x684   : > { %v3963_v38 = vpop.eup %3962 }
 0x685   : > { %v1813_v39 = vmul.f32 %v3963_v38, %v3959_v30  ;;  %v1912_v46 = vpop.permute.xlu1 %1911 }
 0x687   : > { %v1815_v41 = vpack.c.bf16 %v1813_v39, %v1813_v39 }
 0x689   : > { %3640 = vmatmul.mubr.msk.bf16.vlgmr.msra.gmra.mrb[8].mxu1 %vm1700_vm4, %v1815_v41  ;;  %v1964_v48 = vpop.permute.xlu1 %1963 }
 0x68a   : > { %3650 = vmatpush3.bf16.xpose.msra.mxu1 %v1920_v42  ;;  %3651 = vmatprep.mubr.msk.bf16.mxu1 %vm4740_vm1, %v4739_v3 }
 0x68b   : > { %3661 = vmatprep.subr.bf16.mxu1 %v4739_v3 }
 0x68c   : > { %v3965_v43 = vpop.eup %3964 }
 0x68d   : > { %v1814_v44 = vmul.f32 %v3965_v43, %v3961_v32 }
 0x68f   : > { %v1816_v45 = vpack.c.bf16 %v1814_v44, %v1814_v44 }
 0x691   : > { %3646 = vmatmul.mubr.msk.bf16.vlgmr.msra.gmra.mrb[20].mxu0 %vm1700_vm4, %v1816_v45  ;;  %3652 = vmatmul.mubr.msk.bf16.vlgmr.msra.gmra.mrb[12].mxu1 %vm1700_vm4, %v1912_v46 }
 0x692   : > { %3656 = vmatpush3.bf16.xpose.msra.mxu0 %v1972_v47  ;;  %3657 = vmatprep.mubr.msk.bf16.mxu0 %vm4740_vm1, %v4739_v3 }
 0x693   : > { %3667 = vmatprep.subr.bf16.mxu0 %v4739_v3  ;;  %3663 = vmatprep.mubr.msk.bf16.mxu1 %vm4740_vm1, %v4739_v3 }
 0x699   : > { %3658 = vmatmul.mubr.msk.bf16.vlgmr.msra.gmra.mrb[24].mxu0 %vm1700_vm4, %v1964_v48 }
 0x69a   : > { %3669 = vmatprep.mubr.msk.bf16.mxu0 %vm4740_vm1, %v4739_v3 }
 0x75c   : > { %v5728_v49 = vpop.f32.mrb[8].mxu1 }
 0x75d   : > { %v3641_v50 = vpop.f32.mrb[9].mxu1 }
 0x75e   : > { %v1861_v51 = vpop.f32.mrb[10].mxu1 }
 0x75f   : > { %v3642_v52 = vpop.f32.mrb[11].mxu1 }
 0x764   : > { %v5730_v53 = vpop.f32.mrb[20].mxu0  ;;  %v1956_v54 = vpop.f32.mrb[12].mxu1 }
 0x765   : > { %v1957_v55 = vadd.f32 %v5696_v10, %v1956_v54  ;;  %v3647_v56 = vpop.f32.mrb[21].mxu0  ;;  %v3653_v57 = vpop.f32.mrb[13].mxu1 }
 0x766   : > { %v1907_v58 = vpop.f32.mrb[22].mxu0  ;;  %v1959_v59 = vpop.f32.mrb[14].mxu1 }
 0x767   : > { %v3648_v60 = vpop.f32.mrb[23].mxu0  ;;  %v3654_v63 = vpop.f32.mrb[15].mxu1  ;;  %v2014_v0 = vsel %vm1700_vm4, %v1957_v55, -inf }
 0x768   : > { %2015 = vmax.xlane.f32.xlu0 %v2014_v0 }
 0x76c   : > { %v2008_v2 = vpop.f32.mrb[24].mxu0 }
 0x76d   : > { %v2009_v4 = vadd.f32 %v5700_v17, %v2008_v2  ;;  %v3659_v9 = vpop.f32.mrb[25].mxu0 }
 0x76e   : > { %v2011_v11 = vpop.f32.mrb[26].mxu0 }
 0x76f   : > { %v3660_v12 = vpop.f32.mrb[27].mxu0  ;;  %v2017_v13 = vsel %vm1700_vm4, %v2009_v4, -inf }
 0x770   : > { %2018 = vmax.xlane.f32.xlu1 %v2017_v13 }
 0x781   : > { %2088 = vrot.lane.b32.xlu1 %v5685_v5, %s4741_s10 }
 0x785   : > { %2138 = vrot.lane.b32.xlu1 %v5669_v62, %s4742_s2 }
 0x789   : > { %2188 = vrot.lane.b32.xlu1 %v5667_v61, %s4742_s2 }
 0x78d   : > { %2186 = vrot.lane.b32.xlu1 %v5687_v6, %s4742_s2 }
 0x7f5   : > { %v2016_v14 = vpop.xlane.xlu0 %2015 }
 0x7f6   : > { %v2020_v15 = vsub.f32 %v1957_v55, %v2016_v14 }
 0x7f8   : > { %v2022_v16 = vmul.f32 1.442695, %v2020_v15 }
 0x7fa   : > { %3966 = vpow2.f32 %v2022_v16 }
 0x7fd   : > { %v2019_v18 = vpop.xlane.xlu1 %2018 }
 0x7fe   : > { %v2021_v19 = vsub.f32 %v2009_v4, %v2019_v18 }
 0x800   : > { %v2024_v20 = vmul.f32 1.442695, %v2021_v19 }
 0x801   : > { %v2089_v21 = vpop.permute.xlu1 %2088 }
 0x802   : > { %3968 = vpow2.f32 %v2024_v20  ;;  %v2094_v22 = vsel %vm1820_vm3, %v2089_v21, 0 }
 0x803   : > { %3668 = vmatpush3.bf16.msra.mxu0 %v2094_v22 }
 0x804   : > { %v3967_v23 = vpop.eup %3966  ;;  %3679 = vmatprep.subr.bf16.mxu0 %v4739_v3 }
 0x805   : > { %v2026_v24 = vsel %vm1700_vm4, %v3967_v23, 0.0  ;;  %v2139_v34 = vpop.permute.xlu1 %2138 }
 0x806   : > { %2027 = vadd.xlane.f32.xlu0 %v2026_v24  ;;  %v2144_v39 = vsel %vm1700_vm4, %v2139_v34, 0 }
 0x809   : > { %v2189_v38 = vpop.permute.xlu1 %2188 }
 0x80a   : > { %v2194_v41 = vsel %vm1700_vm4, %v2189_v38, 0 }
 0x80c   : > { %v3969_v25 = vpop.eup %3968 }
 0x80d   : > { %v2029_v26 = vsel %vm1700_vm4, %v3969_v25, 0.0  ;;  %v2187_v43 = vpop.permute.xlu1 %2186 }
 0x80e   : > { %2030 = vadd.xlane.f32.xlu0 %v2029_v26 }
 0x824   : > { %2039 = vrot.lane.b32.xlu0 %v5662_v37, %s4741_s10  ;;  %s6093_s10 = scalar_lea.vmem [#allocation26], %s5549_s12 }
 0x828   : > { %2136 = vrot.lane.b32.xlu0 %v5676_v1, %s4742_s2 }
 0x893   : > { %v2028_v27 = vpop.xlane.xlu0 %2027 }
 0x894   : > { %3970 = vrcp.f32 %v2028_v27 }
 0x89b   : > { %v2031_v28 = vpop.xlane.xlu0 %2030 }
 0x89c   : > { %3972 = vrcp.f32 %v2031_v28 }
 0x89e   : > { %v3971_v29 = vpop.eup %3970 }
 0x89f   : > { %v2034_v30 = vmul.f32 %v3971_v29, %v3967_v23  ;;  %v2040_v31 = vpop.permute.xlu0 %2039 }
 0x8a0   : > { %v2045_v32 = vsel %vm1820_vm3, %v2040_v31, 0 }
 0x8a1   : > { %3662 = vmatpush3.bf16.msra.mxu1 %v2045_v32  ;;  %v2036_v33 = vpack.c.bf16 %v2034_v30, %v2034_v30 }
 0x8a2   : > { %3673 = vmatprep.subr.bf16.mxu1 %v4739_v3 }
 0x8a3   : > { %v2137_v42 = vpop.permute.xlu0 %2136 }
 0x8a4   : > { %3664 = vmatmul.mubr.msk.bf16.vlgmr.msra.gmra.mrb[16].mxu1 %vm1700_vm4, %v2036_v33 }
 0x8a5   : > { %3675 = vmatprep.mubr.msk.bf16.mxu1 %vm4740_vm1, %v4739_v3 }
 0x8a6   : > { %v3973_v35 = vpop.eup %3972 }
 0x8a7   : > { %v2035_v36 = vmul.f32 %v3973_v35, %v3969_v25 }
 0x8a9   : > { %v2037_v40 = vpack.c.bf16 %v2035_v36, %v2035_v36 }
 0x8aa   : > { %3674 = vmatpush3.bf16.xpose.msra.mxu1 %v2144_v39 }
 0x8ab   : > { %3670 = vmatmul.mubr.msk.bf16.vlgmr.msra.gmra.mrb[28].mxu0 %vm1700_vm4, %v2037_v40  ;;  %3685 = vmatprep.subr.bf16.mxu1 %v4739_v3 }
 0x8ac   : > { %3680 = vmatpush3.bf16.xpose.msra.mxu0 %v2194_v41  ;;  %3681 = vmatprep.mubr.msk.bf16.mxu0 %vm4740_vm1, %v4739_v3 }
 0x8ad   : > { %3691 = vmatprep.subr.bf16.mxu0 %v4739_v3 }
 0x8b1   : > { %3676 = vmatmul.mubr.msk.bf16.vlgmr.msra.gmra.mrb[20].mxu1 %vm1700_vm4, %v2137_v42 }
 0x8b2   : > { %3687 = vmatprep.mubr.msk.bf16.mxu1 %vm4740_vm1, %v4739_v3 }
 0x8b3   : > { %3682 = vmatmul.mubr.msk.bf16.vlgmr.msra.gmra.mrb[32].mxu0 %vm1700_vm4, %v2187_v43 }
 0x8b4   : > { %3693 = vmatprep.mubr.msk.bf16.mxu0 %vm4740_vm1, %v4739_v3 }
 0x977   : > { %v5770_v44 = vpop.f32.mrb[16].mxu1 }
 0x978   : > { %v3665_v45 = vpop.f32.mrb[17].mxu1 }
 0x979   : > { %v2084_v46 = vpop.f32.mrb[18].mxu1 }
 0x97a   : > { %v3666_v47 = vpop.f32.mrb[19].mxu1 }
 0x97e   : > { %v5772_v48 = vpop.f32.mrb[28].mxu0 }
 0x97f   : > { %v3925_v50 = vpack.i.bf16 %v5772_v48, %v5770_v44  ;;  %v3671_v51 = vpop.f32.mrb[29].mxu0 }
 0x980   : > { %v2133_v52 = vpop.f32.mrb[30].mxu0 }
 0x981   : > { %v3672_v54 = vpop.f32.mrb[31].mxu0 }
 0x984   : > { %v2180_v55 = vpop.f32.mrb[20].mxu1 }
 0x985   : > { %v2181_v56 = vadd.f32 %v5696_v10, %v2180_v55  ;;  %v3677_v57 = vpop.f32.mrb[21].mxu1 }
 0x986   : > { %v2183_v58 = vpop.f32.mrb[22].mxu1  ;;  %v2230_v59 = vpop.f32.mrb[32].mxu0 }
 0x987   : > { %v2231_v60 = vadd.f32 %v5700_v17, %v2230_v59  ;;  %v3678_v63 = vpop.f32.mrb[23].mxu1  ;;  %v3683_v0 = vpop.f32.mrb[33].mxu0  ;;  %v2236_v2 = vsel %vm1700_vm4, %v2181_v56, -inf }
 0x988   : > { %2237 = vmax.xlane.f32.xlu0 %v2236_v2  ;;  %v2233_v4 = vpop.f32.mrb[34].mxu0 }
 0x989   : > { %v3684_v9 = vpop.f32.mrb[35].mxu0  ;;  %v2239_v11 = vsel %vm1700_vm4, %v2231_v60, -inf }
 0x98a   : > { %2240 = vmax.xlane.f32.xlu1 %v2239_v11 }
 0x99b   : > { %2308 = vrot.lane.b32.xlu1 %v5685_v5, %s4742_s2 }
 0x99f   : > { %2358 = vrot.lane.b32.xlu1 %v5669_v62, %s4743_s8 }
 0x9a3   : > { %2408 = vrot.lane.b32.xlu1 %v5667_v61, %s4743_s8 }
 0x9a7   : > { %2406 = vrot.lane.b32.xlu1 %v5687_v6, %s4743_s8 }
 0xa15   : > { %v2238_v12 = vpop.xlane.xlu0 %2237 }
 0xa16   : > { %v2242_v13 = vsub.f32 %v2181_v56, %v2238_v12 }
 0xa17   : > { %v2241_v14 = vpop.xlane.xlu1 %2240 }
 0xa18   : > { %v2244_v15 = vmul.f32 1.442695, %v2242_v13  ;;  %v2243_v16 = vsub.f32 %v2231_v60, %v2241_v14 }
 0xa1a   : > { %3974 = vpow2.f32 %v2244_v15  ;;  %v2246_v18 = vmul.f32 1.442695, %v2243_v16 }
 0xa1b   : > { %v2309_v19 = vpop.permute.xlu1 %2308 }
 0xa1c   : > { %3976 = vpow2.f32 %v2246_v18  ;;  %v2314_v20 = vsel %vm1820_vm3, %v2309_v19, 0 }
 0xa1d   : > { %3692 = vmatpush3.bf16.msra.mxu0 %v2314_v20 }
 0xa1e   : > { %3703 = vmatprep.subr.bf16.mxu0 %v4739_v3 }
 0xa1f   : > { %v2359_v27 = vpop.permute.xlu1 %2358 }
 0xa23   : > { %v2409_v32 = vpop.permute.xlu1 %2408 }
 0xa24   : > { %v3975_v62 = vpop.eup %3974  ;;  %v2414_v34 = vsel %vm1700_vm4, %v2409_v32, 0 }
 0xa25   : > { %v2248_v61 = vsel %vm1700_vm4, %v3975_v62, 0.0 }
 0xa26   : > { %v3977_v21 = vpop.eup %3976  ;;  %2249 = vadd.xlane.f32.xlu0 %v2248_v61 }
 0xa27   : > { %v2251_v6 = vsel %vm1700_vm4, %v3977_v21, 0.0  ;;  %v2407_v36 = vpop.permute.xlu1 %2406 }
 0xa2a   : > { %2252 = vadd.xlane.f32.xlu0 %v2251_v6 }
 0xa40   : > { %2260 = vrot.lane.b32.xlu0 %v5662_v37, %s4742_s2  ;;  %s6094_s2 = scalar_lea.vmem [#allocation18], %s5552_s25  ;;  %s6096_s25 = scalar_lea.vmem [#allocation27], %s5549_s12 }
 0xa44   : > { %2356 = vrot.lane.b32.xlu0 %v5676_v1, %s4743_s8  ;;  %v2364_v1 = vsel %vm1700_vm4, %v2359_v27, 0 }
 0xab3   : > { %v2250_v22 = vpop.xlane.xlu0 %2249 }
 0xab4   : > { %3978 = vrcp.f32 %v2250_v22  ;;  %v3946_v22 = vld [vmem:[%s6091_s24] sm:$0xff]  }
 0xab7   : > { %v2253_v23 = vpop.xlane.xlu0 %2252 }
 0xab8   : > { %3980 = vrcp.f32 %v2253_v23  ;;  %v3947_v23 = vld [vmem:[%s6092_s7 + $0x8] sm:$0xff]  }
 0xabb   : > { %v2261_v24 = vpop.permute.xlu0 %2260 }
 0xabc   : > { %v2266_v25 = vsel %vm1820_vm3, %v2261_v24, 0 }
 0xabd   : > { %3686 = vmatpush3.bf16.msra.mxu1 %v2266_v25 }
 0xabe   : > { %v3979_v26 = vpop.eup %3978  ;;  %3697 = vmatprep.subr.bf16.mxu1 %v4739_v3 }
 0xabf   : > { %v2256_v28 = vmul.f32 %v3979_v26, %v3975_v62  ;;  %v2357_v35 = vpop.permute.xlu0 %2356 }
 0xac1   : > { %v2258_v29 = vpack.c.bf16 %v2256_v28, %v2256_v28 }
 0xac2   : > { %v3981_v30 = vpop.eup %3980 }
 0xac3   : > { %v2257_v31 = vmul.f32 %v3981_v30, %v3977_v21  ;;  %3688 = vmatmul.mubr.msk.bf16.vlgmr.msra.gmra.mrb[24].mxu1 %vm1700_vm4, %v2258_v29 }
 0xac4   : > { %3699 = vmatprep.mubr.msk.bf16.mxu1 %vm4740_vm1, %v4739_v3 }
 0xac5   : > { %v2259_v33 = vpack.c.bf16 %v2257_v31, %v2257_v31 }
 0xac6   : > { %3698 = vmatpush3.bf16.xpose.msra.mxu1 %v2364_v1 }
 0xac7   : > { %3694 = vmatmul.mubr.msk.bf16.vlgmr.msra.gmra.mrb[36].mxu0 %vm1700_vm4, %v2259_v33  ;;  %3709 = vmatprep.subr.bf16.mxu1 %v4739_v3 }
 0xac8   : > { %3704 = vmatpush3.bf16.xpose.msra.mxu0 %v2414_v34  ;;  %3705 = vmatprep.mubr.msk.bf16.mxu0 %vm4740_vm1, %v4739_v3 }
 0xac9   : > { %3715 = vmatprep.subr.bf16.mxu0 %v4739_v3 }
 0xacd   : > { %3700 = vmatmul.mubr.msk.bf16.vlgmr.msra.gmra.mrb[28].mxu1 %vm1700_vm4, %v2357_v35 }
 0xace   : > { %3711 = vmatprep.mubr.msk.bf16.mxu1 %vm4740_vm1, %v4739_v3 }
 0xacf   : > { %3706 = vmatmul.mubr.msk.bf16.vlgmr.msra.gmra.mrb[40].mxu0 %vm1700_vm4, %v2407_v36 }
 0xad0   : > { %3717 = vmatprep.mubr.msk.bf16.mxu0 %vm4740_vm1, %v4739_v3 }
 0xb96   : > { %v2302_v38 = vpop.f32.mrb[24].mxu1 }
 0xb97   : > { %v3689_v39 = vpop.f32.mrb[25].mxu1 }
 0xb98   : > { %v2305_v40 = vpop.f32.mrb[26].mxu1 }
 0xb99   : > { %v3690_v41 = vpop.f32.mrb[27].mxu1 }
 0xb9a   : > { %v2350_v42 = vpop.f32.mrb[36].mxu0 }
 0xb9b   : > { %v3930_v43 = vpack.i.bf16 %v2350_v42, %v2302_v38  ;;  %v3695_v45 = vpop.f32.mrb[37].mxu0 }
 0xb9c   : > { %v2353_v46 = vpop.f32.mrb[38].mxu0 }
 0xb9d   : > { %v3696_v47 = vpop.f32.mrb[39].mxu0 }
 0xba0   : > { %v2400_v51 = vpop.f32.mrb[28].mxu1 }
 0xba1   : > { %v2401_v52 = vadd.f32 %v5696_v10, %v2400_v51  ;;  %v3701_v54 = vpop.f32.mrb[29].mxu1 }
 0xba2   : > { %v2403_v55 = vpop.f32.mrb[30].mxu1  ;;  %v2450_v56 = vpop.f32.mrb[40].mxu0  ;;  %v3479_v54 = vld [vmem:[%s6093_s10] ss:$0 sm:$0xff] }
 0xba3   : > { %v2451_v57 = vadd.f32 %v5700_v17, %v2450_v56  ;;  %v3702_v58 = vpop.f32.mrb[31].mxu1  ;;  %v3707_v59 = vpop.f32.mrb[41].mxu0  ;;  %v2456_v60 = vsel %vm1700_vm4, %v2401_v52, -inf }
 0xba4   : > { %2457 = vmax.xlane.f32.xlu0 %v2456_v60  ;;  %v2453_v63 = vpop.f32.mrb[42].mxu0 }
 0xba5   : > { %v3708_v0 = vpop.f32.mrb[43].mxu0  ;;  %v2459_v2 = vsel %vm1700_vm4, %v2451_v57, -inf }
 0xba6   : > { %2460 = vmax.xlane.f32.xlu1 %v2459_v2 }
 0xbb7   : > { %2528 = vrot.lane.b32.xlu1 %v5685_v5, %s4743_s8 }
 0xbbb   : > { %3926 = vrot.lane.b32.xlu1 %v3925_v50, %s4744_s5 }
 0xbbf   : > { %3931 = vrot.lane.b32.xlu1 %v3930_v43, %s4745_s30 }
 0xc31   : > { %v2458_v10 = vpop.xlane.xlu0 %2457 }
 0xc32   : > { %v2462_v17 = vsub.f32 %v2401_v52, %v2458_v10 }
 0xc33   : > { %v2461_v4 = vpop.xlane.xlu1 %2460 }
 0xc34   : > { %v2464_v9 = vmul.f32 1.442695, %v2462_v17  ;;  %v2463_v11 = vsub.f32 %v2451_v57, %v2461_v4 }
 0xc36   : > { %3982 = vpow2.f32 %v2464_v9  ;;  %v2466_v12 = vmul.f32 1.442695, %v2463_v11 }
 0xc37   : > { %v2529_v13 = vpop.permute.xlu1 %2528 }
 0xc38   : > { %3984 = vpow2.f32 %v2466_v12  ;;  %v2534_v14 = vsel %vm1820_vm3, %v2529_v13, 0 }
 0xc39   : > { %3716 = vmatpush3.bf16.msra.mxu0 %v2534_v14 }
 0xc3a   : > { %3729 = vmatprep.subr.bf16.mxu0 %v4739_v3 }
 0xc3b   : > { %v3927_v1 = vpop.permute.xlu1 %3926 }
 0xc3c   : > { %v3929_v34 = vunpack.i.h.bf16 %v3927_v1  ;;  %v3928_v35 = vunpack.i.l.bf16 %v3927_v1  ;;  %v3957_v1 = vld [vmem:[%s5575_s23 + $0x38] sm:$0xff]  }
 0xc3e   : > { %v2601_v40 = vsel %vm1700_vm4, %v5730_v53, %v3929_v34  ;;  %v2600_v41 = vsel %vm1700_vm4, %v5728_v49, %v3928_v35 }
 0xc3f   : > { %v3932_v33 = vpop.permute.xlu1 %3931 }
 0xc40   : > { %v3983_v5 = vpop.eup %3982  ;;  %v3934_v36 = vunpack.i.h.bf16 %v3932_v33  ;;  %v3933_v38 = vunpack.i.l.bf16 %v3932_v33  ;;  %v3485_v33 = vld [vmem:[%s6096_s25] ss:$0 sm:$0xff] }
 0xc41   : > { %v2468_v44 = vsel %vm1700_vm4, %v3983_v5, 0.0 }
 0xc42   : > { %v3985_v48 = vpop.eup %3984  ;;  %2469 = vadd.xlane.f32.xlu0 %v2468_v44  ;;  %v2603_v45 = vsel %vm2602_vm5, %v2600_v41, %v3933_v38  ;;  %v2604_v46 = vsel %vm2602_vm5, %v2601_v40, %v3934_v36 }
 0xc43   : > { %v2471_v50 = vsel %vm1700_vm4, %v3985_v48, 0.0 }
 0xc46   : > { %2472 = vadd.xlane.f32.xlu0 %v2471_v50 }
 0xc5c   : > { %2480 = vrot.lane.b32.xlu0 %v5662_v37, %s4743_s8  ;;  %s6095_s8 = smov %s6094_s2 }
 0xccf   : > { %v2470_v15 = vpop.xlane.xlu0 %2469 }
 0xcd0   : > { %3986 = vrcp.f32 %v2470_v15 }
 0xcd3   : > { %v2473_v16 = vpop.xlane.xlu0 %2472 }
 0xcd4   : > { %3988 = vrcp.f32 %v2473_v16 }
 0xcd7   : > { %v2481_v18 = vpop.permute.xlu0 %2480 }
 0xcd8   : > { %v2486_v19 = vsel %vm1820_vm3, %v2481_v18, 0 }
 0xcd9   : > { %3710 = vmatpush3.bf16.msra.mxu1 %v2486_v19 }
 0xcda   : > { %v3987_v20 = vpop.eup %3986  ;;  %3721 = vmatprep.subr.bf16.mxu1 %v4739_v3 }
 0xcdb   : > { %v2476_v62 = vmul.f32 %v3987_v20, %v3983_v5  ;;  %v3949_v5 = vld [vmem:[%s6095_s8 + $0x8] sm:$0xff]  }
 0xcdd   : > { %v2478_v61 = vpack.c.bf16 %v2476_v62, %v2476_v62  ;;  %v3483_v62 = vld [vmem:[%s1142_s27] ss:$0 sm:$0xff]  ;;  %s6098_s27 = sld [smem:[#allocation50_spill]] }
 0xcde   : > { %v3989_v21 = vpop.eup %3988 }
 0xcdf   : > { %v2477_v6 = vmul.f32 %v3989_v21, %v3985_v48  ;;  %3712 = vmatmul.mubr.msk.bf16.vlgmr.msra.gmra.mrb[32].mxu1 %vm1700_vm4, %v2478_v61 }
 0xce0   : > { %3725 = vmatprep.mubr.msk.bf16.mxu1 %vm4740_vm1, %v4739_v3  ;;  %3722 = vmatpush3.bf16.msra.mxu1 %v3946_v22 }
 0xce1   : > { %v2479_v37 = vpack.c.bf16 %v2477_v6, %v2477_v6  ;;  %3723 = vmatprep.subr.bf16.mxu1 %v4739_v3 }
 0xce3   : > { %3718 = vmatmul.mubr.msk.bf16.vlgmr.msra.gmra.mrb[44].mxu0 %vm1700_vm4, %v2479_v37  ;;  %v3484_v37 = vld [vmem:[%s1150_s1] ss:$0 sm:$0xff]  ;;  %p3500_p10 = scmp.ne.s32.totalorder %s6098_s27, 1 }
 0xce4   : > { %3733 = vmatprep.mubr.msk.bf16.mxu0 %vm4740_vm1, %v4739_v3  ;;  %3724 = vmatpush3.bf16.msra.mxu1 %v3947_v23  ;;  %vm2977_vm7 = vcmask (!%p3500_p10), 1040384   ;;  %vm2979_vm8 = vcmask (!%p3500_p10), 254976  }
 0xce5   : > { %3737 = vmatprep.subr.bf16.mxu1 %v4739_v3 }
 0xdb2   : > { %v2522_v24 = vpop.f32.mrb[32].mxu1 }
 0xdb3   : > { %v3713_v25 = vpop.f32.mrb[33].mxu1 }
 0xdb4   : > { %v2525_v26 = vpop.f32.mrb[34].mxu1 }
 0xdb5   : > { %v3714_v27 = vpop.f32.mrb[35].mxu1  ;;  %v3950_v26 = vld [vmem:[%s5575_s23] sm:$0xff]  }
 0xdb6   : > { %v2570_v28 = vpop.f32.mrb[44].mxu0  ;;  %v3951_v27 = vld [vmem:[%s5575_s23 + $0x8] sm:$0xff]  }
 0xdb7   : > { %v3935_v29 = vpack.i.bf16 %v2570_v28, %v2522_v24  ;;  %v3719_v30 = vpop.f32.mrb[45].mxu0  ;;  %v3952_v28 = vld [vmem:[%s5575_s23 + $0x10] sm:$0xff]  }
 0xdb8   : > { %v2573_v31 = vpop.f32.mrb[46].mxu0  ;;  %v3954_v30 = vld [vmem:[%s5575_s23 + $0x20] sm:$0xff]  }
 0xdb9   : > { %3936 = vrot.lane.b32.xlu0 %v3935_v29, %s4746_s0  ;;  %v3720_v32 = vpop.f32.mrb[47].mxu0  ;;  %v3953_v29 = vld [vmem:[%s5575_s23 + $0x18] sm:$0xff]   ;;  %v3955_v31 = vld [vmem:[%s5575_s23 + $0x28] sm:$0xff]  }
 0xdba   : > { %v3956_v32 = vld [vmem:[%s5575_s23 + $0x30] sm:$0xff]   ;;  %s6097_s23 = scalar_lea.vmem [#allocation29], %s5549_s12 }
 0xe2b   : > { %v3937_v39 = vpop.permute.xlu0 %3936 }
 0xe2c   : > { %v3939_v42 = vunpack.i.h.bf16 %v3937_v39  ;;  %v3938_v43 = vunpack.i.l.bf16 %v3937_v39 }
 0xe2e   : > { %v2607_v47 = vsel %vm2605_vm6, %v2604_v46, %v3939_v42  ;;  %v2606_v51 = vsel %vm2605_vm6, %v2603_v45, %v3938_v43 }
 0xe2f   : > { %v2608_v52 = vpack.c.bf16 %v2607_v47, %v2606_v51 }
 0xe31   : > { %3726 = vmatmul.mubr.msk.bf16.vlgmr.msra.gmra.mrb[36].mxu1 %vm1323_vm2, %v2608_v52 }
 0xe32   : > { %3753 = vmatprep.mubr.msk.bf16.mxu1 %vm4740_vm1, %v4739_v3  ;;  %3738 = vmatpush3.bf16.msra.mxu1 %v3950_v26 }
 0xe33   : > { %3739 = vmatprep.subr.bf16.mxu1 %v4739_v3 }
 0xe36   : > { %3740 = vmatpush3.bf16.msra.mxu1 %v3951_v27  ;;  %v3499_v27 = vld [vmem:[%s1166_s4] ss:$0 sm:$0xff] }
 0xe37   : > { %3741 = vmatprep.subr.bf16.mxu1 %v4739_v3 }
 0xe3a   : > { %3742 = vmatpush3.bf16.msra.mxu1 %v3952_v28 }
 0xe3b   : > { %3743 = vmatprep.subr.bf16.mxu1 %v4739_v3 }
 0xe3e   : > { %3744 = vmatpush3.bf16.msra.mxu1 %v3953_v29 }
 0xe3f   : > { %3745 = vmatprep.subr.bf16.mxu1 %v4739_v3 }
 0xe42   : > { %3746 = vmatpush3.bf16.msra.mxu1 %v3954_v30 }
 0xe43   : > { %3747 = vmatprep.subr.bf16.mxu1 %v4739_v3 }
 0xe46   : > { %3748 = vmatpush3.bf16.msra.mxu1 %v3955_v31 }
 0xe47   : > { %3749 = vmatprep.subr.bf16.mxu1 %v4739_v3 }
 0xe4a   : > { %3750 = vmatpush3.bf16.msra.mxu1 %v3956_v32 }
 0xe4b   : > { %3751 = vmatprep.subr.bf16.mxu1 %v4739_v3 }
 0xe4e   : > { %3752 = vmatpush3.bf16.msra.mxu1 %v3957_v1 }
 0xf04   : > { %v2669_v55 = vpop.f32.mrb[36].mxu1 }
 0xf05   : > { %v2670_v56 = vadd.f32 %v3479_v54, %v2669_v55  ;;  %v3727_v53 = vpop.f32.mrb[37].mxu1 }
 0xf06   : > { %v2672_v57 = vpop.f32.mrb[38].mxu1 }
 0xf07   : > { %v2673_v58 = vadd.f32 %v3479_v54, %v2672_v57  ;;  %v3728_v49 = vpop.f32.mrb[39].mxu1  ;;  %v2676_v59 = vadd.f32 %v2670_v56, %v5629_v7 }
 0xf09   : > { %v2678_v60 = vsel %vm1323_vm2, %v2676_v59, 0.0  ;;  %v2677_v63 = vadd.f32 %v2673_v58, %v5631_v8  ;;  %v3948_v8 = vld [vmem:[%s6094_s2] sm:$0xff]  }
 0xf0a   : > { %2679 = vadd.xlane.f32.xlu1 %v2678_v60  ;;  %3730 = vmatpush3.bf16.msra.mxu0 %v3948_v8 }
 0xf0b   : > { %v2681_v0 = vsel %vm1323_vm2, %v2677_v63, 0.0  ;;  %3731 = vmatprep.subr.bf16.mxu0 %v4739_v3 }
 0xf0c   : > { %2682 = vadd.xlane.f32.xlu0 %v2681_v0  ;;  %v3489_v0 = vld [vmem:[%s6097_s23] ss:$0 sm:$0xff] }
 0xf0e   : > { %3732 = vmatpush3.bf16.msra.mxu0 %v3949_v5 }
 0xf97   : > { %v2680_v2 = vpop.xlane.xlu1 %2679 }
 0xf98   : > { %v2685_v10 = vmul.f32 0.03125, %v2680_v2 }
 0xf99   : > { %v2683_v17 = vpop.xlane.xlu0 %2682 }
 0xf9a   : > { %v2687_v4 = vsub.f32 %v2676_v59, %v2685_v10  ;;  %v2686_v9 = vmul.f32 0.03125, %v2683_v17 }
 0xf9c   : > { %v2688_v11 = vsub.f32 %v2677_v63, %v2686_v9  ;;  %v2689_v12 = vmul.f32 %v2687_v4, %v2687_v4 }
 0xf9e   : > { %v2691_v13 = vsel %vm1323_vm2, %v2689_v12, 0.0  ;;  %v2690_v7 = vmul.f32 %v2688_v11, %v2688_v11 }
 0xf9f   : > { %2692 = vadd.xlane.f32.xlu0 %v2691_v13 }
 0xfa0   : > { %v2694_v14 = vsel %vm1323_vm2, %v2690_v7, 0.0 }
 0xfa3   : > { %2695 = vadd.xlane.f32.xlu0 %v2694_v14 }
0x102c   : > { %v2693_v44 = vpop.xlane.xlu0 %2692 }
0x102d   : > { %v2697_v48 = vmul.f32 0.03125, %v2693_v44 }
0x102f   : > { %v2699_v50 = vadd.f32 1e-05, %v2697_v48 }
0x1030   : > { %v2696_v15 = vpop.xlane.xlu0 %2695 }
0x1031   : > { %3990 = vrsqrt.f32 %v2699_v50  ;;  %v2698_v16 = vmul.f32 0.03125, %v2696_v15 }
0x1033   : > { %v2700_v18 = vadd.f32 1e-05, %v2698_v16 }
0x1035   : > { %3992 = vrsqrt.f32 %v2700_v18 }
0x103b   : > { %v3991_v19 = vpop.eup %3990 }
0x103c   : > { %v2703_v20 = vmul.f32 %v3991_v19, %v2687_v4 }
0x103e   : > { %v2712_v21 = vmul.f32 %v3483_v62, %v2703_v20 }
0x103f   : > { %v3993_v61 = vpop.eup %3992 }
0x1040   : > { %v2704_v6 = vmul.f32 %v3993_v61, %v2688_v11  ;;  %v5867_v23 = vadd.f32 %v3484_v37, %v2712_v21 }
0x1042   : > { %v2713_v22 = vmul.f32 %v3483_v62, %v2704_v6 }
0x1044   : > { %v5869_v24 = vadd.f32 %v3484_v37, %v2713_v22 }
0x1046   : > { %v2723_v25 = vpack.c.bf16 %v5869_v24, %v5867_v23 }
0x1048   : > { %3734 = vmatmul.mubr.msk.bf16.vlgmr.msra.gmra.mrb[48].mxu0 %vm1323_vm2, %v2723_v25 }
0x111b   : > { %v2784_v34 = vpop.f32.mrb[48].mxu0 }
0x111c   : > { %v2785_v35 = vadd.f32 %v3485_v33, %v2784_v34  ;;  %v3735_v36 = vpop.f32.mrb[49].mxu0 }
0x111d   : > { %v2787_v38 = vpop.f32.mrb[50].mxu0 }
0x111e   : > { %v2791_v39 = vmul.f32 %v2785_v35, %v2785_v35  ;;  %v2788_v40 = vadd.f32 %v3485_v33, %v2787_v38  ;;  %v3736_v41 = vpop.f32.mrb[51].mxu0 }
0x1120   : > { %v2793_v42 = vmul.f32 %v2791_v39, %v2785_v35  ;;  %v2792_v43 = vmul.f32 %v2788_v40, %v2788_v40 }
0x1122   : > { %v2795_v45 = vmul.f32 0.044715, %v2793_v42  ;;  %v2794_v46 = vmul.f32 %v2792_v43, %v2788_v40 }
0x1124   : > { %v2797_v47 = vadd.f32 %v2795_v45, %v2785_v35  ;;  %v2796_v51 = vmul.f32 0.044715, %v2794_v46 }
0x1126   : > { %v2799_v52 = vmul.f32 0.7978846, %v2797_v47  ;;  %v2798_v3 = vadd.f32 %v2796_v51, %v2788_v40 }
0x1128   : > { %3994 = vtanh.f32 %v2799_v52  ;;  %v2800_v54 = vmul.f32 0.7978846, %v2798_v3 }
0x112a   : > { %3996 = vtanh.f32 %v2800_v54 }
0x1132   : > { %v3995_v55 = vpop.eup %3994 }
0x1133   : > { %v2803_v56 = vadd.f32 1.0, %v3995_v55 }
0x1134   : > { %v3997_v53 = vpop.eup %3996 }
0x1135   : > { %v2805_v57 = vmul.f32 0.5, %v2803_v56  ;;  %v2804_v58 = vadd.f32 1.0, %v3997_v53 }
0x1137   : > { %v2806_v49 = vmul.f32 0.5, %v2804_v58  ;;  %v2807_v59 = vmul.f32 %v2805_v57, %v2785_v35 }
0x1139   : > { %v2808_v60 = vmul.f32 %v2806_v49, %v2788_v40 }
0x113b   : > { %v2809_v63 = vpack.c.bf16 %v2808_v60, %v2807_v59 }
0x113d   : > { %3754 = vmatmul.mubr.bf16.vlgmr.msra.gmra.mrb[40].mxu1 %v2809_v63 }
0x1210   : > { %v2915_v2 = vpop.f32.mrb[40].mxu1 }
0x1211   : > { %v2916_v10 = vadd.f32 %v3489_v0, %v2915_v2  ;;  %v3755_v17 = vpop.f32.mrb[41].mxu1 }
0x1212   : > { %v2918_v4 = vpop.f32.mrb[42].mxu1 }
0x1213   : > { %v2919_v9 = vadd.f32 %v3489_v0, %v2918_v4  ;;  %v3756_v11 = vpop.f32.mrb[43].mxu1  ;;  %v2922_v12 = vadd.f32 %v2916_v10, %v5867_v23 }
0x1215   : > { %v2924_v13 = vsel %vm1323_vm2, %v2922_v12, 0.0  ;;  %v2923_v7 = vadd.f32 %v2919_v9, %v5869_v24  ;;  %v3498_v24 = vld [vmem:[%s1158_s18] ss:$0 sm:$0xff] }
0x1216   : > { %2925 = vadd.xlane.f32.xlu1 %v2924_v13 }
0x1217   : > { %v2927_v14 = vsel %vm1323_vm2, %v2923_v7, 0.0 }
0x1218   : > { %2928 = vadd.xlane.f32.xlu0 %v2927_v14 }
0x12a3   : > { %v2926_v8 = vpop.xlane.xlu1 %2925 }
0x12a4   : > { %v2930_v5 = vmul.f32 0.03125, %v2926_v8 }
0x12a5   : > { %v2929_v44 = vpop.xlane.xlu0 %2928 }
0x12a6   : > { %v2932_v48 = vsub.f32 %v2922_v12, %v2930_v5  ;;  %v2931_v50 = vmul.f32 0.03125, %v2929_v44 }
0x12a8   : > { %v2933_v15 = vsub.f32 %v2923_v7, %v2931_v50  ;;  %v2934_v16 = vmul.f32 %v2932_v48, %v2932_v48 }
0x12aa   : > { %v2936_v18 = vsel %vm1323_vm2, %v2934_v16, 0.0  ;;  %v2935_v19 = vmul.f32 %v2933_v15, %v2933_v15 }
0x12ab   : > { %2937 = vadd.xlane.f32.xlu1 %v2936_v18 }
0x12ac   : > { %v2939_v20 = vsel %vm1323_vm2, %v2935_v19, 0.0 }
0x12ad   : > { %2940 = vadd.xlane.f32.xlu0 %v2939_v20 }
0x1338   : > { %v2938_v62 = vpop.xlane.xlu1 %2937 }
0x1339   : > { %v2942_v61 = vmul.f32 0.03125, %v2938_v62 }
0x133a   : > { %v2941_v21 = vpop.xlane.xlu0 %2940 }
0x133b   : > { %v2944_v6 = vadd.f32 1e-05, %v2942_v61  ;;  %v2943_v37 = vmul.f32 0.03125, %v2941_v21 }
0x133d   : > { %3998 = vrsqrt.f32 %v2944_v6  ;;  %v2945_v22 = vadd.f32 1e-05, %v2943_v37 }
0x133f   : > { %4000 = vrsqrt.f32 %v2945_v22 }
0x1347   : > { %v3999_v23 = vpop.eup %3998 }
0x1348   : > { %v2948_v25 = vmul.f32 %v3999_v23, %v2932_v48 }
0x1349   : > { %v4001_v26 = vpop.eup %4000 }
0x134a   : > { %v2957_v28 = vmul.f32 %v3498_v24, %v2948_v25  ;;  %v2949_v29 = vmul.f32 %v4001_v26, %v2933_v15  ;;  %2973 = sbr.rel (%p3500_p10) target bundleno = 4948 (0x1354), region = 196 }
0x134c   : > { %v2966_v30 = vadd.f32 %v3499_v27, %v2957_v28  ;;  %v2958_v31 = vmul.f32 %v3498_v24, %v2949_v29 }
0x134e   : > { %2968 = vst.msk [vmem:[#allocation2] sm:$0xff] %vm1323_vm2, %v2966_v30  ;;  %v2967_v32 = vadd.f32 %v3499_v27, %v2958_v31 }
0x1350   : > { %2969 = vst.msk [vmem:[#allocation2 + $0x8] sm:$0xff] %vm1323_vm2, %v2967_v32  ;;  %v2975_v1 = vrot.slane (!%p3500_p10), %v2967_v32, 7 }
0x1352   : > { %v2978_v33 = vsel %vm2977_vm7, %v2966_v30, %v2975_v1 }
0x1353   : > { %2980 = vst.msk [vmem:[#allocation36] sm:$0x3] %vm2979_vm8, %v2978_v33 }
0x1354 PF: > { %s6099_s12 = sld [smem:[#allocation51_spill]]  ;;  %s4747_s18 = smov [#allocation36]  }
0x1355   : > { %s2990_s1 = sshll.u32 %s4747_s18, 4  ;;  %s2991_s1 = int_to_ptr.vmem [resolvable:$true] %s2990_s1 }
0x1356   : > { %s4590_s4 = scalar_lea.vmem %s2991_s1, 32  ;;  %p4597_p4 = scmp.lt.s32.totalorder %s2991_s1, %s2991_s1 }
0x1357   : > { %p4591_p13 = scmp.ne.s32.totalorder %s2991_s1, %s4590_s4  ;;  %p4598_p7 = scmp.lt.s32.totalorder %s4590_s4, %s4590_s4 }
0x1359   : > { %p4599_p9 = por %p4598_p7, %p4597_p4 }
0x135a   : > { %p3855_p2 = scmp.eq.s32.totalorder %s6099_s12, 1 }
0x135c   : > { %p4592_p6 = pnand %p4591_p13, %p3855_p2 }
0x135e   : > { %p4593_p5 = pneg %p4592_p6 }
0x1360   : > { %p4600_p8 = pnand %p4599_p9, %p4593_p5 }
0x1362   : > { %4603 = shalt.err (!%p4600_p8)
}
0x1363   : > { %s6100_s24 = sld [smem:[#allocation72_spill]] }
0x1369   : > { %s4604_s7 = scalar_lea.hbm %s6100_s24, 32 }
0x136a   : > { %p4605_p11 = scmp.ne.s32.totalorder %s6100_s24, %s4604_s7  ;;  %p4610_p1 = scmp.lt.u32.totalorder %s4604_s7, %s6100_s24 }
0x136c   : > { %p4606_p12 = pnand %p4605_p11, %p3855_p2 }
0x136e   : > { %p4607_p0 = pneg %p4606_p12 }
0x1370   : > { %p4612_p3 = pnand %p4610_p1, %p4607_p0 }
0x1372   : > { %4615 = shalt.err (!%p4612_p3)
}
0x1373   : > { %3826 = dma.vmem_to_hbm [thread:$0]  (%p3855_p2), %s2991_s1, 32, %s6100_s24, [#allocation5]  }
0x1374   : > { %4685 = dma.done.wait (%p3855_p2), [#allocation5], 32  }
0x1375   : > { %4687 = vsyncadd (%p3855_p2), [#allocation5], 4294967264 }
0x1376 PF: > { %s59_s28 = sadd.s32 1, %s4710_s28   ;;  %s6101_s2 = sld [smem:[#allocation49_spill]] }
0x1377   : > { %p56_p10 = scmp.ge.s32.totalorder %s59_s28, 4   ;;  %s6102_s27 = sld [smem:[#allocation54_spill]] }
0x1378   : > { %s6103_s18 = sld [smem:[#allocation52_spill]]  ;;  %s6104_s25 = smov %s4698_s26 }
0x1379   :  { %58 = sbr.rel (!%p56_p10) target bundleno = 40 (0x28), region = 352 }
0x137d   : > { %s6105_s26 = smov %s6102_s27  ;;  %s6106_s27 = smov %s4706_s3 }
0x137e   : > { %s6107_s3 = smov %s6103_s18 }
0x1380   :  { %3003 = vsyncpa [#allocation4], 1 }
0x1381   :  { %3005 = vsyncpa [#allocation4 + $0x1], 1 }
0x1382   :  { %3006 = vsyncpa [#allocation7], 1 }
0x1383   :  { %3007 = vsyncpa [#allocation10], 1 }
0x1384   :  { %3008 = vsyncpa [#allocation13], 1 }
0x1385   :  { %3010 = vsyncpa [#allocation13 + $0x1], 1 }
0x1386   :  { %3011 = vsyncpa [#allocation16], 1 }
0x1387   :  { %3013 = vsyncpa [#allocation16 + $0x1], 1 }
0x1388   :  { %3014 = vsyncpa [#allocation19], 1 }
0x1389   :  { %3016 = vsyncpa [#allocation19 + $0x1], 1 }
0x138a   :  { %3017 = vsyncpa [#allocation22], 1 }
0x138b   :  { %3019 = vsyncpa [#allocation22 + $0x1], 1 }
0x138c   :  { %3020 = vsyncpa [#allocation25], 1 }
0x138d   :  { %3022 = vsyncpa [#allocation25 + $0x1], 1 }
0x138e   :  { %3023 = vsyncpa [#allocation28], 1 }
0x138f   :  { %3025 = vsyncpa [#allocation28 + $0x1], 1 }
0x1390   :  { %3026 = vsyncpa [#allocation31], 1 }
0x1391   :  { %3028 = vsyncpa [#allocation31 + $0x1], 1 }
0x1392   :  { %3029 = vsyncpa [#allocation34], 1 }
0x1393   :  { %3031 = vsyncpa [#allocation34 + $0x1], 1 }
0x1394   :  { %3032 = vsyncpa [#allocation5], 1 }
0x1395   :  { %3034 = vsyncpa [#allocation5 + $0x1], 1 }

</bundles_post_ra>
